<compile_context>
chip_gen: v6e
topology: v6e:2x2x1
jax: 0.10.0
libtpu: 0.0.40
codegen_flags: <defaults>
</compile_context>

<pallas_src>
import functools
import re

import jax
import jax.numpy as jnp
from jax.experimental import pallas as pl
from jax.experimental.pallas import tpu as pltpu


# ----------------------------------------------------------------------------
# Device-aware VMEM budgeting & tile selection.
# ----------------------------------------------------------------------------
def _round_up(v, m):
    return -(-v // m) * m


def _tpu_generation(kind):
    m = re.search(r"(\d+)", kind)
    return int(m.group(1)) if m else 0


def _vmem_limit_bytes():
    """Scoped-VMEM limit to request (v7x has 64 MiB physical, v5e/v6e 128)."""
    cap = 0
    try:
        cap = int(pltpu.get_tpu_info().vmem_capacity_bytes)
    except Exception:
        cap = 0
    if cap < (16 << 20):
        kind = ""
        try:
            kind = jax.devices()[0].device_kind.lower()
        except Exception:
            pass
        cap = (64 << 20) if _tpu_generation(kind) >= 7 else (128 << 20)
    return min(cap * 3 // 4, 100 << 20)


def _bf16_transcendentals_supported():
    """bf16 EUP/VPU exists on v6e and later; keep f32 gates on v5e/older."""
    try:
        kind = jax.devices()[0].device_kind.lower()
    except Exception:
        return False
    return _tpu_generation(kind) >= 6


def _choose_row_tile(n_rows, line, ch, cx, vmem_limit):
    """Tile size along the non-conv axis.

    Per-row footprint counts double-buffered I/O blocks plus the kernel's real
    temporaries (hx/rhx lane concats, padded conv inputs, gate planes and the
    transposed copies) so the request stays inside `vmem_limit` (important on
    v7x's 64 MiB VMEM).
    """
    per_row_bytes = line * 4 * (20 * ch + 8 * cx)
    budget = int(vmem_limit * 0.45)
    t = max(8, budget // max(per_row_bytes, 1))
    t = min(t, max(8, 8192 // max(line, 1)))       # keep the matmul M moderate
    t = max(8, (t // 8) * 8)                       # sublane granularity
    if t >= n_rows:
        if n_rows < 16:
            return n_rows                          # single full block
        t = max(8, ((n_rows // 2) // 8) * 8)       # >=2 blocks for megacore
    steps = -(-n_rows // t)
    if steps > 1 and steps % 2:                    # even #steps: v7x has 2 TCs
        for s in (steps - 1, steps + 1):
            if s < 2:
                continue
            cand = min(_round_up(-(-n_rows // s), 8), n_rows)
            if (-(-n_rows // cand)) % 2 == 0 and cand * per_row_bytes <= budget:
                return cand
    return t


def _cost_estimate(positions, K, ch, cx, dtype):
    cin = ch + cx
    flops = 2 * K * positions * cin * 3 * ch          # zr (2ch) + q (ch) convs
    transcendentals = 3 * positions * ch              # sigmoid(2ch) + tanh(ch)
    bytes_io = positions * (2 * ch + cx) * dtype.itemsize
    return pl.CostEstimate(flops=int(flops),
                           transcendentals=int(transcendentals),
                           bytes_accessed=int(bytes_io))


# ----------------------------------------------------------------------------
# Pallas kernel: one full GRU stage (fused separable convs + gating).
# ----------------------------------------------------------------------------
def gru_stage_kernel(h_ref, x_ref, wzr_ref, wq_ref, bzr_ref, bq_ref, out_ref, *,
                     ch, line_axis, transpose_block, matmul_dtype, gate_dtype):
    # h_ref/x_ref/out_ref: channels-last blocks; conv runs along `line_axis`.
    # wzr_ref: (K, Ch+Cx, 2*Ch) fused z/r weights (input = [h | x])
    # wq_ref : (K, Ch+Cx,   Ch) q weights         (input = [r*h | x])
    # bzr_ref: (1, 2*Ch), bq_ref: (1, Ch), both f32.
    f32 = jnp.float32
    hv = h_ref[...]
    xv = x_ref[...]
    if transpose_block:
        # Put the conv axis on the leading dim so the shifted conv taps are
        # view-like leading-axis slices instead of sublane relayouts.
        hv = jnp.transpose(hv, (1, 0, 2))
        xv = jnp.transpose(xv, (1, 0, 2))
    h32 = hv.astype(f32)
    L = hv.shape[line_axis]
    cdim = hv.ndim - 1

    def conv1d(inp, w_ref):
        # 'same' 1-D conv along `line_axis`: pad once, then K shifted,
        # accumulating MXU matmuls contracting over the fused channel dim.
        # TODO(synk): on v7x, drive the MXU accumulator explicitly
        # (matmul_push_rhs / matmul_acc_lhs) if the bundle dump shows the
        # 5-tap `acc + d` chain lowering to full-width VPU adds.
        K = w_ref.shape[0]
        pad = (K - 1) // 2
        zshape = list(inp.shape)
        zshape[line_axis] = pad
        zeros = jnp.zeros(zshape, inp.dtype)
        padded = jnp.concatenate([zeros, inp, zeros], axis=line_axis)
        acc = None
        for k in range(K):                                   # static unroll
            sl = jax.lax.slice_in_dim(padded, k, k + L, axis=line_axis)
            d = jax.lax.dot_general(
                sl, w_ref[k], (((cdim,), (0,)), ((), ())),
                preferred_element_type=f32)
            acc = d if acc is None else acc + d
        return acc

    h_mm = hv.astype(matmul_dtype)
    x_mm = xv.astype(matmul_dtype)
    hx = jnp.concatenate([h_mm, x_mm], axis=-1)        # lane-axis concat

    zr = jax.nn.sigmoid(
        (conv1d(hx, wzr_ref) + bzr_ref[...].astype(f32)).astype(gate_dtype)
    ).astype(f32)
    z = zr[..., :ch]
    r = zr[..., ch:]

    rhx = jnp.concatenate([(r * h32).astype(matmul_dtype), x_mm], axis=-1)
    q = jnp.tanh(
        (conv1d(rhx, wq_ref) + bq_ref[...].astype(f32)).astype(gate_dtype)
    ).astype(f32)

    res = h32 + z * (q - h32)                          # == (1-z)*h + z*q
    if transpose_block:
        res = jnp.transpose(res, (1, 0, 2))
    out_ref[...] = res.astype(out_ref.dtype)


# ----------------------------------------------------------------------------
# pallas_call wrappers for the two stages.
# ----------------------------------------------------------------------------
def _weight_specs(K, ch, cx):
    cin = ch + cx
    z3 = lambda *idx: (0, 0, 0)
    z2 = lambda *idx: (0, 0)
    return [
        pl.BlockSpec((K, cin, 2 * ch), z3),
        pl.BlockSpec((K, cin, ch), z3),
        pl.BlockSpec((1, 2 * ch), z2),
        pl.BlockSpec((1, ch), z2),
    ]


def run_stage1(h3, x3, wzr, wq, bzr, bq, *, tr, vmem_limit, matmul_dtype,
               gate_dtype, use_transpose):
    # h3: (R, W, Ch), x3: (R, W, Cx); conv along W; tile over rows (R = N*H).
    R, W, Ch = h3.shape
    Cx = x3.shape[-1]
    K = wzr.shape[0]
    kernel = functools.partial(
        gru_stage_kernel, ch=Ch,
        line_axis=0 if use_transpose else 1,
        transpose_block=use_transpose,
        matmul_dtype=matmul_dtype, gate_dtype=gate_dtype)
    row_spec = lambda c: pl.BlockSpec((tr, W, c), lambda i: (i, 0, 0))
    return pl.pallas_call(
        kernel,
        out_shape=jax.ShapeDtypeStruct((R, W, Ch), h3.dtype),
        grid=(R // tr,),
        in_specs=[row_spec(Ch), row_spec(Cx)] + _weight_specs(K, Ch, Cx),
        out_specs=row_spec(Ch),
        compiler_params=pltpu.CompilerParams(
            dimension_semantics=("parallel",),
            vmem_limit_bytes=vmem_limit),
        cost_estimate=_cost_estimate(R * W, K, Ch, Cx, h3.dtype),
    )(h3, x3, wzr, wq, bzr, bq)


def run_stage2(h4, x4, wzr, wq, bzr, bq, *, tw, vmem_limit, matmul_dtype,
               gate_dtype):
    # h4: (N, H, W, Ch), x4: (N, H, W, Cx); conv along H; blocks (H, tw, C)
    # are read straight from the NHWC tensors (no HBM transpose between the
    # stages), with the conv axis already on the leading dim.
    N, H, W, Ch = h4.shape
    Cx = x4.shape[-1]
    K = wzr.shape[0]
    kernel = functools.partial(
        gru_stage_kernel, ch=Ch, line_axis=0, transpose_block=False,
        matmul_dtype=matmul_dtype, gate_dtype=gate_dtype)
    col_spec = lambda c: pl.BlockSpec((None, H, tw, c),
                                      lambda n, j: (n, 0, j, 0))
    return pl.pallas_call(
        kernel,
        out_shape=jax.ShapeDtypeStruct((N, H, W, Ch), h4.dtype),
        grid=(N, W // tw),
        in_specs=[col_spec(Ch), col_spec(Cx)] + _weight_specs(K, Ch, Cx),
        out_specs=col_spec(Ch),
        compiler_params=pltpu.CompilerParams(
            dimension_semantics=("parallel", "parallel"),
            vmem_limit_bytes=vmem_limit),
        cost_estimate=_cost_estimate(N * H * W, K, Ch, Cx, h4.dtype),
    )(h4, x4, wzr, wq, bzr, bq)


# ----------------------------------------------------------------------------
# Parameter prep: fuse z/r gates along Cout, keep q as the module's own conv.
# ----------------------------------------------------------------------------
def _prep_stage_params(wz, bz, wr, br, wq, bq, matmul_dtype):
    # w*: (K, Ch+Cx, Ch) HWIO with the unit spatial dim removed; input-channel
    # order is [h, x], matching torch.cat([h, x], dim=1).
    ch = wz.shape[-1]
    w_zr = jnp.concatenate([wz, wr], axis=-1)                  # (K, Cin, 2*Ch)
    b_zr = jnp.concatenate([bz, br]).reshape(1, 2 * ch).astype(jnp.float32)
    b_q = bq.reshape(1, ch).astype(jnp.float32)
    return (w_zr.astype(matmul_dtype), wq.astype(matmul_dtype), b_zr, b_q)


# ----------------------------------------------------------------------------
# Full SepConvGRU forward (stage 1: (1,5) over W, stage 2: (5,1) over H).
# ----------------------------------------------------------------------------
@functools.partial(jax.jit, static_argnames=(
    "matmul_dtype", "gate_dtype", "use_transpose", "tr", "tw", "vmem_limit"))
def _forward_jit(h_nhwc, x_nhwc, params, *, matmul_dtype, gate_dtype,
                 use_transpose, tr, tw, vmem_limit):
    N, H, W, Ch = h_nhwc.shape
    Cx = x_nhwc.shape[-1]

    p1 = _prep_stage_params(params["wz1"][0], params["bz1"],
                            params["wr1"][0], params["br1"],
                            params["wq1"][0], params["bq1"], matmul_dtype)
    p2 = _prep_stage_params(params["wz2"][:, 0], params["bz2"],
                            params["wr2"][:, 0], params["br2"],
                            params["wq2"][:, 0], params["bq2"], matmul_dtype)

    # ---- stage 1: conv along W on the flattened (N*H, W, C) view ----
    R = N * H
    h3 = h_nhwc.reshape(R, W, Ch)
    x3 = x_nhwc.reshape(R, W, Cx)
    Rp = _round_up(R, tr)
    if Rp != R:
        h3 = jnp.pad(h3, ((0, Rp - R), (0, 0), (0, 0)))
        x3 = jnp.pad(x3, ((0, Rp - R), (0, 0), (0, 0)))
    h3 = run_stage1(h3, x3, *p1, tr=tr, vmem_limit=vmem_limit,
                    matmul_dtype=matmul_dtype, gate_dtype=gate_dtype,
                    use_transpose=use_transpose)
    hn = h3[:R].reshape(N, H, W, Ch)

    # ---- stage 2: conv along H, tiling (N, W) blocks of the NHWC tensors ----
    Wp = _round_up(W, tw)
    h4, x4 = hn, x_nhwc
    if Wp != W:
        h4 = jnp.pad(h4, ((0, 0), (0, 0), (0, Wp - W), (0, 0)))
        x4 = jnp.pad(x4, ((0, 0), (0, 0), (0, Wp - W), (0, 0)))
    h4 = run_stage2(h4, x4, *p2, tw=tw, vmem_limit=vmem_limit,
                    matmul_dtype=matmul_dtype, gate_dtype=gate_dtype)
    return h4[:, :, :W, :]


_CONFIG_CACHE = {}


def _candidate_configs(matmul_dtype):
    """(gate_dtype, use_transpose) candidates, fastest first, safest last."""
    bf16_gates = (matmul_dtype == jnp.bfloat16) and _bf16_transcendentals_supported()
    cfgs = []
    if bf16_gates:
        cfgs.append((jnp.bfloat16, True))
    cfgs.append((jnp.float32, True))
    cfgs.append((jnp.float32, False))    # previous (proven) sublane-slice path
    return cfgs


def sepconv_gru_forward_nhwc(h_nhwc, x_nhwc, params, matmul_dtype=jnp.bfloat16):
    """Channels-last entry point (use this across GMA/RAFT refinement
    iterations to avoid per-call NCHW<->NHWC transposes)."""
    N, H, W, Ch = h_nhwc.shape
    Cx = x_nhwc.shape[-1]
    # TODO(synk): for Ch < 128 pad channels to 128 (lane-dense stores, full
    # MXU contraction depth); the production hidden_dim=128 is already dense.
    vmem_limit = _vmem_limit_bytes()
    tr = _choose_row_tile(N * H, W, Ch, Cx, vmem_limit)
    tw = _choose_row_tile(W, H, Ch, Cx, vmem_limit)

    key = (N, H, W, Ch, Cx, matmul_dtype)
    cached = _CONFIG_CACHE.get(key)
    cfgs = [cached] if cached is not None else _candidate_configs(matmul_dtype)

    last_err = None
    for gate_dtype, use_transpose in cfgs:
        try:
            out = _forward_jit(h_nhwc, x_nhwc, params,
                               matmul_dtype=matmul_dtype, gate_dtype=gate_dtype,
                               use_transpose=use_transpose, tr=tr, tw=tw,
                               vmem_limit=vmem_limit)
            if cached is None:
                jax.block_until_ready(out)   # surface compile errors pre-cache
                _CONFIG_CACHE[key] = (gate_dtype, use_transpose)
            return out
        except Exception as e:               # lowering/compile failure -> next
            last_err = e
    raise last_err


def sepconv_gru_forward(h_nchw, x_nchw, params, matmul_dtype=jnp.bfloat16):
    """PyTorch-compatible NCHW wrapper around the NHWC implementation."""
    hn = jnp.transpose(h_nchw, (0, 2, 3, 1))
    xn = jnp.transpose(x_nchw, (0, 2, 3, 1))
    out = sepconv_gru_forward_nhwc(hn, xn, params, matmul_dtype=matmul_dtype)
    return jnp.transpose(out, (0, 3, 1, 2))


# ----------------------------------------------------------------------------
# Deterministic parameter init (shapes from SepConvGRU.__init__), HWIO layout.
# ----------------------------------------------------------------------------
def init_params(key, hidden_dim, input_dim):
    cin = hidden_dim + input_dim
    scale = 1.0 / jnp.sqrt(float(cin * 5))
    params = {}
    names = ["z1", "r1", "q1", "z2", "r2", "q2"]
    keys = jax.random.split(key, 2 * len(names))
    for i, name in enumerate(names):
        kshape = ((1, 5, cin, hidden_dim) if name.endswith("1")
                  else (5, 1, cin, hidden_dim))
        params["w" + name] = jax.random.uniform(
            keys[2 * i], kshape, jnp.float32, -scale, scale)
        params["b" + name] = jax.random.uniform(
            keys[2 * i + 1], (hidden_dim,), jnp.float32, -scale, scale)
    return params


# ----------------------------------------------------------------------------
# Pure-JAX reference (mirrors the PyTorch forward exactly) for validation.
# ----------------------------------------------------------------------------
def ref_forward(h_nchw, x_nchw, params):
    hn = jnp.transpose(h_nchw, (0, 2, 3, 1))
    xn = jnp.transpose(x_nchw, (0, 2, 3, 1))

    def conv(inp, w, b):
        out = jax.lax.conv_general_dilated(
            inp, w, (1, 1), "SAME",
            dimension_numbers=("NHWC", "HWIO", "NHWC"))
        return out + b

    sig = jax.nn.sigmoid
    hx = jnp.concatenate([hn, xn], -1)
    z = sig(conv(hx, params["wz1"], params["bz1"]))
    r = sig(conv(hx, params["wr1"], params["br1"]))
    q = jnp.tanh(conv(jnp.concatenate([r * hn, xn], -1),
                      params["wq1"], params["bq1"]))
    hn = (1 - z) * hn + z * q
    hx = jnp.concatenate([hn, xn], -1)
    z = sig(conv(hx, params["wz2"], params["bz2"]))
    r = sig(conv(hx, params["wr2"], params["br2"]))
    q = jnp.tanh(conv(jnp.concatenate([r * hn, xn], -1),
                      params["wq2"], params["bq2"]))
    hn = (1 - z) * hn + z * q
    return jnp.transpose(hn, (0, 3, 1, 2))


if __name__ == "__main__":
    N, hidden_dim, input_dim, H, W = 2, 32, 32, 8, 8

    key = jax.random.PRNGKey(0)
    k_h, k_x, k_p = jax.random.split(key, 3)
    h = jax.random.normal(k_h, (N, hidden_dim, H, W), jnp.float32)
    x = jax.random.normal(k_x, (N, input_dim, H, W), jnp.float32)
    params = init_params(k_p, hidden_dim, input_dim)

    ref = jax.block_until_ready(ref_forward(h, x, params))

    # Exact path: f32 matmul operands and f32 gates — tight tolerance.
    out_f32 = jax.block_until_ready(
        sepconv_gru_forward(h, x, params, matmul_dtype=jnp.float32))
    assert out_f32.shape == (N, hidden_dim, H, W)
    err32 = float(jnp.max(jnp.abs(out_f32 - ref)))
    assert jnp.allclose(out_f32, ref, atol=2e-4, rtol=2e-4), err32

    # Fast path: bf16 matmul operands (f32 accumulation) and, on v6e/v7x,
    # bf16 gate transcendentals — tightened tolerance vs. previous version.
    out_bf16 = jax.block_until_ready(
        sepconv_gru_forward(h, x, params, matmul_dtype=jnp.bfloat16))
    assert out_bf16.shape == (N, hidden_dim, H, W)
    err16 = float(jnp.max(jnp.abs(out_bf16 - ref)))
    assert jnp.allclose(out_bf16, ref, atol=5e-2, rtol=5e-2), err16

    print("KERNEL_OK")
</pallas_src>

<mosaic_0001>
module attributes {stable_mosaic.version = 11 : i64} {
  func.func @gru_stage_kernel(%arg0: i32, %arg1: memref<8x8x32xf32, #tpu.memory_space<vmem>>, %arg2: memref<8x8x32xf32, #tpu.memory_space<vmem>>, %arg3: memref<5x64x64xf32, #tpu.memory_space<vmem>>, %arg4: memref<5x64x32xf32, #tpu.memory_space<vmem>>, %arg5: memref<1x64xf32, #tpu.memory_space<vmem>>, %arg6: memref<1x32xf32, #tpu.memory_space<vmem>>, %arg7: memref<8x8x32xf32, #tpu.memory_space<vmem>>) attributes {dimension_semantics = [#tpu.dimension_semantics<parallel>], iteration_bounds = array<i64: 2>, scalar_prefetch = 0 : i64, scratch_operands = 0 : i64, tpu.core_type = #tpu.core_type<tc>, window_params = [{transform_indices = @transform_0, window_bounds = array<i64: 8, 8, 32>}, {transform_indices = @transform_1, window_bounds = array<i64: 8, 8, 32>}, {pipeline_mode = #tpu.pipeline_mode<synchronous>, transform_indices = @transform_2, window_bounds = array<i64: 5, 64, 64>}, {pipeline_mode = #tpu.pipeline_mode<synchronous>, transform_indices = @transform_3, window_bounds = array<i64: 5, 64, 32>}, {pipeline_mode = #tpu.pipeline_mode<synchronous>, transform_indices = @transform_4, window_bounds = array<i64: 1, 64>}, {pipeline_mode = #tpu.pipeline_mode<synchronous>, transform_indices = @transform_5, window_bounds = array<i64: 1, 32>}, {transform_indices = @transform_6, window_bounds = array<i64: 8, 8, 32>}]} {
    %c0 = arith.constant 0 : index
    %c0_0 = arith.constant 0 : index
    %c0_1 = arith.constant 0 : index
    %0 = vector.load %arg1[%c0, %c0_0, %c0_1] : memref<8x8x32xf32, #tpu.memory_space<vmem>>, vector<8x8x32xf32>
    %c0_2 = arith.constant 0 : index
    %c0_3 = arith.constant 0 : index
    %c0_4 = arith.constant 0 : index
    %1 = vector.load %arg2[%c0_2, %c0_3, %c0_4] : memref<8x8x32xf32, #tpu.memory_space<vmem>>, vector<8x8x32xf32>
    %2 = tpu.transpose %0, [1, 0, 2] : vector<8x8x32xf32> -> vector<8x8x32xf32>
    %3 = tpu.transpose %1, [1, 0, 2] : vector<8x8x32xf32> -> vector<8x8x32xf32>
    %4 = tpu.concatenate %2, %3 in 2 : vector<8x8x32xf32>, vector<8x8x32xf32> -> vector<8x8x64xf32>
    %cst = arith.constant 0.000000e+00 : f32
    %5 = vector.broadcast %cst : f32 to vector<2x8x64xf32>
    %6 = tpu.concatenate %5, %4, %5 in 0 : vector<2x8x64xf32>, vector<8x8x64xf32>, vector<2x8x64xf32> -> vector<12x8x64xf32>
    %7 = vector.extract_strided_slice %6 {offsets = [0, 0, 0], sizes = [8, 8, 64], strides = [1, 1, 1]} : vector<12x8x64xf32> to vector<8x8x64xf32>
    %c0_5 = arith.constant 0 : index
    %c0_6 = arith.constant 0 : index
    %c0_7 = arith.constant 0 : index
    %8 = vector.load %arg3[%c0_5, %c0_6, %c0_7] : memref<5x64x64xf32, #tpu.memory_space<vmem>>, vector<1x64x64xf32>
    %9 = vector.shape_cast %8 : vector<1x64x64xf32> to vector<64x64xf32>
    %cst_8 = arith.constant dense<0.000000e+00> : vector<8x8x64xf32>
    %10 = tpu.matmul %7, %9, %cst_8 {dimension_numbers = #tpu.dot_dimension_numbers<[2], [0], [0, 1], [1], [0, 0, 0, 1, 1, 1], [], []>} : vector<8x8x64xf32>, vector<64x64xf32>, vector<8x8x64xf32> -> vector<8x8x64xf32>
    %11 = vector.extract_strided_slice %6 {offsets = [1, 0, 0], sizes = [8, 8, 64], strides = [1, 1, 1]} : vector<12x8x64xf32> to vector<8x8x64xf32>
    %c1 = arith.constant 1 : index
    %c0_9 = arith.constant 0 : index
    %c0_10 = arith.constant 0 : index
    %12 = vector.load %arg3[%c1, %c0_9, %c0_10] : memref<5x64x64xf32, #tpu.memory_space<vmem>>, vector<1x64x64xf32>
    %13 = vector.shape_cast %12 : vector<1x64x64xf32> to vector<64x64xf32>
    %cst_11 = arith.constant dense<0.000000e+00> : vector<8x8x64xf32>
    %14 = tpu.matmul %11, %13, %cst_11 {dimension_numbers = #tpu.dot_dimension_numbers<[2], [0], [0, 1], [1], [0, 0, 0, 1, 1, 1], [], []>} : vector<8x8x64xf32>, vector<64x64xf32>, vector<8x8x64xf32> -> vector<8x8x64xf32>
    %15 = arith.addf %10, %14 : vector<8x8x64xf32>
    %16 = vector.extract_strided_slice %6 {offsets = [2, 0, 0], sizes = [8, 8, 64], strides = [1, 1, 1]} : vector<12x8x64xf32> to vector<8x8x64xf32>
    %c2 = arith.constant 2 : index
    %c0_12 = arith.constant 0 : index
    %c0_13 = arith.constant 0 : index
    %17 = vector.load %arg3[%c2, %c0_12, %c0_13] : memref<5x64x64xf32, #tpu.memory_space<vmem>>, vector<1x64x64xf32>
    %18 = vector.shape_cast %17 : vector<1x64x64xf32> to vector<64x64xf32>
    %cst_14 = arith.constant dense<0.000000e+00> : vector<8x8x64xf32>
    %19 = tpu.matmul %16, %18, %cst_14 {dimension_numbers = #tpu.dot_dimension_numbers<[2], [0], [0, 1], [1], [0, 0, 0, 1, 1, 1], [], []>} : vector<8x8x64xf32>, vector<64x64xf32>, vector<8x8x64xf32> -> vector<8x8x64xf32>
    %20 = arith.addf %15, %19 : vector<8x8x64xf32>
    %21 = vector.extract_strided_slice %6 {offsets = [3, 0, 0], sizes = [8, 8, 64], strides = [1, 1, 1]} : vector<12x8x64xf32> to vector<8x8x64xf32>
    %c3 = arith.constant 3 : index
    %c0_15 = arith.constant 0 : index
    %c0_16 = arith.constant 0 : index
    %22 = vector.load %arg3[%c3, %c0_15, %c0_16] : memref<5x64x64xf32, #tpu.memory_space<vmem>>, vector<1x64x64xf32>
    %23 = vector.shape_cast %22 : vector<1x64x64xf32> to vector<64x64xf32>
    %cst_17 = arith.constant dense<0.000000e+00> : vector<8x8x64xf32>
    %24 = tpu.matmul %21, %23, %cst_17 {dimension_numbers = #tpu.dot_dimension_numbers<[2], [0], [0, 1], [1], [0, 0, 0, 1, 1, 1], [], []>} : vector<8x8x64xf32>, vector<64x64xf32>, vector<8x8x64xf32> -> vector<8x8x64xf32>
    %25 = arith.addf %20, %24 : vector<8x8x64xf32>
    %26 = vector.extract_strided_slice %6 {offsets = [4, 0, 0], sizes = [8, 8, 64], strides = [1, 1, 1]} : vector<12x8x64xf32> to vector<8x8x64xf32>
    %c4 = arith.constant 4 : index
    %c0_18 = arith.constant 0 : index
    %c0_19 = arith.constant 0 : index
    %27 = vector.load %arg3[%c4, %c0_18, %c0_19] : memref<5x64x64xf32, #tpu.memory_space<vmem>>, vector<1x64x64xf32>
    %28 = vector.shape_cast %27 : vector<1x64x64xf32> to vector<64x64xf32>
    %cst_20 = arith.constant dense<0.000000e+00> : vector<8x8x64xf32>
    %29 = tpu.matmul %26, %28, %cst_20 {dimension_numbers = #tpu.dot_dimension_numbers<[2], [0], [0, 1], [1], [0, 0, 0, 1, 1, 1], [], []>} : vector<8x8x64xf32>, vector<64x64xf32>, vector<8x8x64xf32> -> vector<8x8x64xf32>
    %30 = arith.addf %25, %29 : vector<8x8x64xf32>
    %c0_21 = arith.constant 0 : index
    %c0_22 = arith.constant 0 : index
    %31 = vector.load %arg5[%c0_21, %c0_22] : memref<1x64xf32, #tpu.memory_space<vmem>>, vector<1x64xf32>
    %32 = vector.shape_cast %31 : vector<1x64xf32> to vector<1x1x64xf32>
    %33 = vector.broadcast %32 : vector<1x1x64xf32> to vector<8x8x64xf32>
    %34 = arith.addf %30, %33 : vector<8x8x64xf32>
    %35 = arith.negf %34 : vector<8x8x64xf32>
    %36 = math.exp %35 : vector<8x8x64xf32>
    %cst_23 = arith.constant 1.000000e+00 : f32
    %37 = vector.broadcast %cst_23 : f32 to vector<8x8x64xf32>
    %38 = arith.addf %37, %36 : vector<8x8x64xf32>
    %39 = arith.divf %37, %38 : vector<8x8x64xf32>
    %40 = vector.extract_strided_slice %39 {offsets = [0, 0, 0], sizes = [8, 8, 32], strides = [1, 1, 1]} : vector<8x8x64xf32> to vector<8x8x32xf32>
    %41 = vector.extract_strided_slice %39 {offsets = [0, 0, 32], sizes = [8, 8, 32], strides = [1, 1, 1]} : vector<8x8x64xf32> to vector<8x8x32xf32>
    %42 = arith.mulf %41, %2 : vector<8x8x32xf32>
    %43 = tpu.concatenate %42, %3 in 2 : vector<8x8x32xf32>, vector<8x8x32xf32> -> vector<8x8x64xf32>
    %cst_24 = arith.constant 0.000000e+00 : f32
    %44 = vector.broadcast %cst_24 : f32 to vector<2x8x64xf32>
    %45 = tpu.concatenate %44, %43, %44 in 0 : vector<2x8x64xf32>, vector<8x8x64xf32>, vector<2x8x64xf32> -> vector<12x8x64xf32>
    %46 = vector.extract_strided_slice %45 {offsets = [0, 0, 0], sizes = [8, 8, 64], strides = [1, 1, 1]} : vector<12x8x64xf32> to vector<8x8x64xf32>
    %c0_25 = arith.constant 0 : index
    %c0_26 = arith.constant 0 : index
    %c0_27 = arith.constant 0 : index
    %47 = vector.load %arg4[%c0_25, %c0_26, %c0_27] : memref<5x64x32xf32, #tpu.memory_space<vmem>>, vector<1x64x32xf32>
    %48 = vector.shape_cast %47 : vector<1x64x32xf32> to vector<64x32xf32>
    %cst_28 = arith.constant dense<0.000000e+00> : vector<8x8x32xf32>
    %49 = tpu.matmul %46, %48, %cst_28 {dimension_numbers = #tpu.dot_dimension_numbers<[2], [0], [0, 1], [1], [0, 0, 0, 1, 1, 1], [], []>} : vector<8x8x64xf32>, vector<64x32xf32>, vector<8x8x32xf32> -> vector<8x8x32xf32>
    %50 = vector.extract_strided_slice %45 {offsets = [1, 0, 0], sizes = [8, 8, 64], strides = [1, 1, 1]} : vector<12x8x64xf32> to vector<8x8x64xf32>
    %c1_29 = arith.constant 1 : index
    %c0_30 = arith.constant 0 : index
    %c0_31 = arith.constant 0 : index
    %51 = vector.load %arg4[%c1_29, %c0_30, %c0_31] : memref<5x64x32xf32, #tpu.memory_space<vmem>>, vector<1x64x32xf32>
    %52 = vector.shape_cast %51 : vector<1x64x32xf32> to vector<64x32xf32>
    %cst_32 = arith.constant dense<0.000000e+00> : vector<8x8x32xf32>
    %53 = tpu.matmul %50, %52, %cst_32 {dimension_numbers = #tpu.dot_dimension_numbers<[2], [0], [0, 1], [1], [0, 0, 0, 1, 1, 1], [], []>} : vector<8x8x64xf32>, vector<64x32xf32>, vector<8x8x32xf32> -> vector<8x8x32xf32>
    %54 = arith.addf %49, %53 : vector<8x8x32xf32>
    %55 = vector.extract_strided_slice %45 {offsets = [2, 0, 0], sizes = [8, 8, 64], strides = [1, 1, 1]} : vector<12x8x64xf32> to vector<8x8x64xf32>
    %c2_33 = arith.constant 2 : index
    %c0_34 = arith.constant 0 : index
    %c0_35 = arith.constant 0 : index
    %56 = vector.load %arg4[%c2_33, %c0_34, %c0_35] : memref<5x64x32xf32, #tpu.memory_space<vmem>>, vector<1x64x32xf32>
    %57 = vector.shape_cast %56 : vector<1x64x32xf32> to vector<64x32xf32>
    %cst_36 = arith.constant dense<0.000000e+00> : vector<8x8x32xf32>
    %58 = tpu.matmul %55, %57, %cst_36 {dimension_numbers = #tpu.dot_dimension_numbers<[2], [0], [0, 1], [1], [0, 0, 0, 1, 1, 1], [], []>} : vector<8x8x64xf32>, vector<64x32xf32>, vector<8x8x32xf32> -> vector<8x8x32xf32>
    %59 = arith.addf %54, %58 : vector<8x8x32xf32>
    %60 = vector.extract_strided_slice %45 {offsets = [3, 0, 0], sizes = [8, 8, 64], strides = [1, 1, 1]} : vector<12x8x64xf32> to vector<8x8x64xf32>
    %c3_37 = arith.constant 3 : index
    %c0_38 = arith.constant 0 : index
    %c0_39 = arith.constant 0 : index
    %61 = vector.load %arg4[%c3_37, %c0_38, %c0_39] : memref<5x64x32xf32, #tpu.memory_space<vmem>>, vector<1x64x32xf32>
    %62 = vector.shape_cast %61 : vector<1x64x32xf32> to vector<64x32xf32>
    %cst_40 = arith.constant dense<0.000000e+00> : vector<8x8x32xf32>
    %63 = tpu.matmul %60, %62, %cst_40 {dimension_numbers = #tpu.dot_dimension_numbers<[2], [0], [0, 1], [1], [0, 0, 0, 1, 1, 1], [], []>} : vector<8x8x64xf32>, vector<64x32xf32>, vector<8x8x32xf32> -> vector<8x8x32xf32>
    %64 = arith.addf %59, %63 : vector<8x8x32xf32>
    %65 = vector.extract_strided_slice %45 {offsets = [4, 0, 0], sizes = [8, 8, 64], strides = [1, 1, 1]} : vector<12x8x64xf32> to vector<8x8x64xf32>
    %c4_41 = arith.constant 4 : index
    %c0_42 = arith.constant 0 : index
    %c0_43 = arith.constant 0 : index
    %66 = vector.load %arg4[%c4_41, %c0_42, %c0_43] : memref<5x64x32xf32, #tpu.memory_space<vmem>>, vector<1x64x32xf32>
    %67 = vector.shape_cast %66 : vector<1x64x32xf32> to vector<64x32xf32>
    %cst_44 = arith.constant dense<0.000000e+00> : vector<8x8x32xf32>
    %68 = tpu.matmul %65, %67, %cst_44 {dimension_numbers = #tpu.dot_dimension_numbers<[2], [0], [0, 1], [1], [0, 0, 0, 1, 1, 1], [], []>} : vector<8x8x64xf32>, vector<64x32xf32>, vector<8x8x32xf32> -> vector<8x8x32xf32>
    %69 = arith.addf %64, %68 : vector<8x8x32xf32>
    %c0_45 = arith.constant 0 : index
    %c0_46 = arith.constant 0 : index
    %70 = vector.load %arg6[%c0_45, %c0_46] : memref<1x32xf32, #tpu.memory_space<vmem>>, vector<1x32xf32>
    %71 = vector.shape_cast %70 : vector<1x32xf32> to vector<1x1x32xf32>
    %72 = vector.broadcast %71 : vector<1x1x32xf32> to vector<8x8x32xf32>
    %73 = arith.addf %69, %72 : vector<8x8x32xf32>
    %74 = math.tanh %73 : vector<8x8x32xf32>
    %75 = arith.subf %74, %2 : vector<8x8x32xf32>
    %76 = arith.mulf %40, %75 : vector<8x8x32xf32>
    %77 = arith.addf %2, %76 : vector<8x8x32xf32>
    %78 = tpu.transpose %77, [1, 0, 2] : vector<8x8x32xf32> -> vector<8x8x32xf32>
    %c0_47 = arith.constant 0 : index
    %c0_48 = arith.constant 0 : index
    %c0_49 = arith.constant 0 : index
    %79 = vector.load %arg7[%c0_47, %c0_48, %c0_49] : memref<8x8x32xf32, #tpu.memory_space<vmem>>, vector<8x8x32xf32>
    tpu.vector_store %arg7[%c0_47, %c0_48, %c0_49], %78 {strides = array<i32>} : memref<8x8x32xf32, #tpu.memory_space<vmem>>, vector<8x8x32xf32>,
    return
  }
  func.func @transform_0(%arg0: i32) -> (i32, i32, i32) {
    %c0_i32 = arith.constant 0 : i32
    %c0_i32_0 = arith.constant 0 : i32
    %c0_i32_1 = arith.constant 0 : i32
    return %arg0, %c0_i32, %c0_i32_0 : i32, i32, i32
  }
  func.func @transform_1(%arg0: i32) -> (i32, i32, i32) {
    %c0_i32 = arith.constant 0 : i32
    %c0_i32_0 = arith.constant 0 : i32
    %c0_i32_1 = arith.constant 0 : i32
    return %arg0, %c0_i32, %c0_i32_0 : i32, i32, i32
  }
  func.func @transform_2(%arg0: i32) -> (i32, i32, i32) {
    %c0_i32 = arith.constant 0 : i32
    %c0_i32_0 = arith.constant 0 : i32
    %c0_i32_1 = arith.constant 0 : i32
    %c0_i32_2 = arith.constant 0 : i32
    return %c0_i32, %c0_i32_0, %c0_i32_1 : i32, i32, i32
  }
  func.func @transform_3(%arg0: i32) -> (i32, i32, i32) {
    %c0_i32 = arith.constant 0 : i32
    %c0_i32_0 = arith.constant 0 : i32
    %c0_i32_1 = arith.constant 0 : i32
    %c0_i32_2 = arith.constant 0 : i32
    return %c0_i32, %c0_i32_0, %c0_i32_1 : i32, i32, i32
  }
  func.func @transform_4(%arg0: i32) -> (i32, i32) {
    %c0_i32 = arith.constant 0 : i32
    %c0_i32_0 = arith.constant 0 : i32
    %c0_i32_1 = arith.constant 0 : i32
    return %c0_i32, %c0_i32_0 : i32, i32
  }
  func.func @transform_5(%arg0: i32) -> (i32, i32) {
    %c0_i32 = arith.constant 0 : i32
    %c0_i32_0 = arith.constant 0 : i32
    %c0_i32_1 = arith.constant 0 : i32
    return %c0_i32, %c0_i32_0 : i32, i32
  }
  func.func @transform_6(%arg0: i32) -> (i32, i32, i32) {
    %c0_i32 = arith.constant 0 : i32
    %c0_i32_0 = arith.constant 0 : i32
    %c0_i32_1 = arith.constant 0 : i32
    return %arg0, %c0_i32, %c0_i32_0 : i32, i32, i32
  }
}

module attributes {stable_mosaic.version = 11 : i64} {
  func.func @gru_stage_kernel(%arg0: i32, %arg1: i32, %arg2: memref<1x8x8x32xf32, #tpu.memory_space<vmem>>, %arg3: memref<1x8x8x32xf32, #tpu.memory_space<vmem>>, %arg4: memref<5x64x64xf32, #tpu.memory_space<vmem>>, %arg5: memref<5x64x32xf32, #tpu.memory_space<vmem>>, %arg6: memref<1x64xf32, #tpu.memory_space<vmem>>, %arg7: memref<1x32xf32, #tpu.memory_space<vmem>>, %arg8: memref<1x8x8x32xf32, #tpu.memory_space<vmem>>) attributes {dimension_semantics = [#tpu.dimension_semantics<parallel>, #tpu.dimension_semantics<parallel>], iteration_bounds = array<i64: 2, 1>, scalar_prefetch = 0 : i64, scratch_operands = 0 : i64, tpu.core_type = #tpu.core_type<tc>, window_params = [{transform_indices = @transform_0, window_bounds = array<i64: 1, 8, 8, 32>}, {transform_indices = @transform_1, window_bounds = array<i64: 1, 8, 8, 32>}, {pipeline_mode = #tpu.pipeline_mode<synchronous>, transform_indices = @transform_2, window_bounds = array<i64: 5, 64, 64>}, {pipeline_mode = #tpu.pipeline_mode<synchronous>, transform_indices = @transform_3, window_bounds = array<i64: 5, 64, 32>}, {pipeline_mode = #tpu.pipeline_mode<synchronous>, transform_indices = @transform_4, window_bounds = array<i64: 1, 64>}, {pipeline_mode = #tpu.pipeline_mode<synchronous>, transform_indices = @transform_5, window_bounds = array<i64: 1, 32>}, {transform_indices = @transform_6, window_bounds = array<i64: 1, 8, 8, 32>}]} {
    %c0 = arith.constant 0 : index
    %c0_0 = arith.constant 0 : index
    %c0_1 = arith.constant 0 : index
    %c0_2 = arith.constant 0 : index
    %0 = vector.load %arg2[%c0, %c0_0, %c0_1, %c0_2] : memref<1x8x8x32xf32, #tpu.memory_space<vmem>>, vector<1x8x8x32xf32>
    %1 = vector.shape_cast %0 : vector<1x8x8x32xf32> to vector<8x8x32xf32>
    %c0_3 = arith.constant 0 : index
    %c0_4 = arith.constant 0 : index
    %c0_5 = arith.constant 0 : index
    %c0_6 = arith.constant 0 : index
    %2 = vector.load %arg3[%c0_3, %c0_4, %c0_5, %c0_6] : memref<1x8x8x32xf32, #tpu.memory_space<vmem>>, vector<1x8x8x32xf32>
    %3 = vector.shape_cast %2 : vector<1x8x8x32xf32> to vector<8x8x32xf32>
    %4 = tpu.concatenate %1, %3 in 2 : vector<8x8x32xf32>, vector<8x8x32xf32> -> vector<8x8x64xf32>
    %cst = arith.constant 0.000000e+00 : f32
    %5 = vector.broadcast %cst : f32 to vector<2x8x64xf32>
    %6 = tpu.concatenate %5, %4, %5 in 0 : vector<2x8x64xf32>, vector<8x8x64xf32>, vector<2x8x64xf32> -> vector<12x8x64xf32>
    %7 = vector.extract_strided_slice %6 {offsets = [0, 0, 0], sizes = [8, 8, 64], strides = [1, 1, 1]} : vector<12x8x64xf32> to vector<8x8x64xf32>
    %c0_7 = arith.constant 0 : index
    %c0_8 = arith.constant 0 : index
    %c0_9 = arith.constant 0 : index
    %8 = vector.load %arg4[%c0_7, %c0_8, %c0_9] : memref<5x64x64xf32, #tpu.memory_space<vmem>>, vector<1x64x64xf32>
    %9 = vector.shape_cast %8 : vector<1x64x64xf32> to vector<64x64xf32>
    %cst_10 = arith.constant dense<0.000000e+00> : vector<8x8x64xf32>
    %10 = tpu.matmul %7, %9, %cst_10 {dimension_numbers = #tpu.dot_dimension_numbers<[2], [0], [0, 1], [1], [0, 0, 0, 1, 1, 1], [], []>} : vector<8x8x64xf32>, vector<64x64xf32>, vector<8x8x64xf32> -> vector<8x8x64xf32>
    %11 = vector.extract_strided_slice %6 {offsets = [1, 0, 0], sizes = [8, 8, 64], strides = [1, 1, 1]} : vector<12x8x64xf32> to vector<8x8x64xf32>
    %c1 = arith.constant 1 : index
    %c0_11 = arith.constant 0 : index
    %c0_12 = arith.constant 0 : index
    %12 = vector.load %arg4[%c1, %c0_11, %c0_12] : memref<5x64x64xf32, #tpu.memory_space<vmem>>, vector<1x64x64xf32>
    %13 = vector.shape_cast %12 : vector<1x64x64xf32> to vector<64x64xf32>
    %cst_13 = arith.constant dense<0.000000e+00> : vector<8x8x64xf32>
    %14 = tpu.matmul %11, %13, %cst_13 {dimension_numbers = #tpu.dot_dimension_numbers<[2], [0], [0, 1], [1], [0, 0, 0, 1, 1, 1], [], []>} : vector<8x8x64xf32>, vector<64x64xf32>, vector<8x8x64xf32> -> vector<8x8x64xf32>
    %15 = arith.addf %10, %14 : vector<8x8x64xf32>
    %16 = vector.extract_strided_slice %6 {offsets = [2, 0, 0], sizes = [8, 8, 64], strides = [1, 1, 1]} : vector<12x8x64xf32> to vector<8x8x64xf32>
    %c2 = arith.constant 2 : index
    %c0_14 = arith.constant 0 : index
    %c0_15 = arith.constant 0 : index
    %17 = vector.load %arg4[%c2, %c0_14, %c0_15] : memref<5x64x64xf32, #tpu.memory_space<vmem>>, vector<1x64x64xf32>
    %18 = vector.shape_cast %17 : vector<1x64x64xf32> to vector<64x64xf32>
    %cst_16 = arith.constant dense<0.000000e+00> : vector<8x8x64xf32>
    %19 = tpu.matmul %16, %18, %cst_16 {dimension_numbers = #tpu.dot_dimension_numbers<[2], [0], [0, 1], [1], [0, 0, 0, 1, 1, 1], [], []>} : vector<8x8x64xf32>, vector<64x64xf32>, vector<8x8x64xf32> -> vector<8x8x64xf32>
    %20 = arith.addf %15, %19 : vector<8x8x64xf32>
    %21 = vector.extract_strided_slice %6 {offsets = [3, 0, 0], sizes = [8, 8, 64], strides = [1, 1, 1]} : vector<12x8x64xf32> to vector<8x8x64xf32>
    %c3 = arith.constant 3 : index
    %c0_17 = arith.constant 0 : index
    %c0_18 = arith.constant 0 : index
    %22 = vector.load %arg4[%c3, %c0_17, %c0_18] : memref<5x64x64xf32, #tpu.memory_space<vmem>>, vector<1x64x64xf32>
    %23 = vector.shape_cast %22 : vector<1x64x64xf32> to vector<64x64xf32>
    %cst_19 = arith.constant dense<0.000000e+00> : vector<8x8x64xf32>
    %24 = tpu.matmul %21, %23, %cst_19 {dimension_numbers = #tpu.dot_dimension_numbers<[2], [0], [0, 1], [1], [0, 0, 0, 1, 1, 1], [], []>} : vector<8x8x64xf32>, vector<64x64xf32>, vector<8x8x64xf32> -> vector<8x8x64xf32>
    %25 = arith.addf %20, %24 : vector<8x8x64xf32>
    %26 = vector.extract_strided_slice %6 {offsets = [4, 0, 0], sizes = [8, 8, 64], strides = [1, 1, 1]} : vector<12x8x64xf32> to vector<8x8x64xf32>
    %c4 = arith.constant 4 : index
    %c0_20 = arith.constant 0 : index
    %c0_21 = arith.constant 0 : index
    %27 = vector.load %arg4[%c4, %c0_20, %c0_21] : memref<5x64x64xf32, #tpu.memory_space<vmem>>, vector<1x64x64xf32>
    %28 = vector.shape_cast %27 : vector<1x64x64xf32> to vector<64x64xf32>
    %cst_22 = arith.constant dense<0.000000e+00> : vector<8x8x64xf32>
    %29 = tpu.matmul %26, %28, %cst_22 {dimension_numbers = #tpu.dot_dimension_numbers<[2], [0], [0, 1], [1], [0, 0, 0, 1, 1, 1], [], []>} : vector<8x8x64xf32>, vector<64x64xf32>, vector<8x8x64xf32> -> vector<8x8x64xf32>
    %30 = arith.addf %25, %29 : vector<8x8x64xf32>
    %c0_23 = arith.constant 0 : index
    %c0_24 = arith.constant 0 : index
    %31 = vector.load %arg6[%c0_23, %c0_24] : memref<1x64xf32, #tpu.memory_space<vmem>>, vector<1x64xf32>
    %32 = vector.shape_cast %31 : vector<1x64xf32> to vector<1x1x64xf32>
    %33 = vector.broadcast %32 : vector<1x1x64xf32> to vector<8x8x64xf32>
    %34 = arith.addf %30, %33 : vector<8x8x64xf32>
    %35 = arith.negf %34 : vector<8x8x64xf32>
    %36 = math.exp %35 : vector<8x8x64xf32>
    %cst_25 = arith.constant 1.000000e+00 : f32
    %37 = vector.broadcast %cst_25 : f32 to vector<8x8x64xf32>
    %38 = arith.addf %37, %36 : vector<8x8x64xf32>
    %39 = arith.divf %37, %38 : vector<8x8x64xf32>
    %40 = vector.extract_strided_slice %39 {offsets = [0, 0, 0], sizes = [8, 8, 32], strides = [1, 1, 1]} : vector<8x8x64xf32> to vector<8x8x32xf32>
    %41 = vector.extract_strided_slice %39 {offsets = [0, 0, 32], sizes = [8, 8, 32], strides = [1, 1, 1]} : vector<8x8x64xf32> to vector<8x8x32xf32>
    %42 = arith.mulf %41, %1 : vector<8x8x32xf32>
    %43 = tpu.concatenate %42, %3 in 2 : vector<8x8x32xf32>, vector<8x8x32xf32> -> vector<8x8x64xf32>
    %cst_26 = arith.constant 0.000000e+00 : f32
    %44 = vector.broadcast %cst_26 : f32 to vector<2x8x64xf32>
    %45 = tpu.concatenate %44, %43, %44 in 0 : vector<2x8x64xf32>, vector<8x8x64xf32>, vector<2x8x64xf32> -> vector<12x8x64xf32>
    %46 = vector.extract_strided_slice %45 {offsets = [0, 0, 0], sizes = [8, 8, 64], strides = [1, 1, 1]} : vector<12x8x64xf32> to vector<8x8x64xf32>
    %c0_27 = arith.constant 0 : index
    %c0_28 = arith.constant 0 : index
    %c0_29 = arith.constant 0 : index
    %47 = vector.load %arg5[%c0_27, %c0_28, %c0_29] : memref<5x64x32xf32, #tpu.memory_space<vmem>>, vector<1x64x32xf32>
    %48 = vector.shape_cast %47 : vector<1x64x32xf32> to vector<64x32xf32>
    %cst_30 = arith.constant dense<0.000000e+00> : vector<8x8x32xf32>
    %49 = tpu.matmul %46, %48, %cst_30 {dimension_numbers = #tpu.dot_dimension_numbers<[2], [0], [0, 1], [1], [0, 0, 0, 1, 1, 1], [], []>} : vector<8x8x64xf32>, vector<64x32xf32>, vector<8x8x32xf32> -> vector<8x8x32xf32>
    %50 = vector.extract_strided_slice %45 {offsets = [1, 0, 0], sizes = [8, 8, 64], strides = [1, 1, 1]} : vector<12x8x64xf32> to vector<8x8x64xf32>
    %c1_31 = arith.constant 1 : index
    %c0_32 = arith.constant 0 : index
    %c0_33 = arith.constant 0 : index
    %51 = vector.load %arg5[%c1_31, %c0_32, %c0_33] : memref<5x64x32xf32, #tpu.memory_space<vmem>>, vector<1x64x32xf32>
    %52 = vector.shape_cast %51 : vector<1x64x32xf32> to vector<64x32xf32>
    %cst_34 = arith.constant dense<0.000000e+00> : vector<8x8x32xf32>
    %53 = tpu.matmul %50, %52, %cst_34 {dimension_numbers = #tpu.dot_dimension_numbers<[2], [0], [0, 1], [1], [0, 0, 0, 1, 1, 1], [], []>} : vector<8x8x64xf32>, vector<64x32xf32>, vector<8x8x32xf32> -> vector<8x8x32xf32>
    %54 = arith.addf %49, %53 : vector<8x8x32xf32>
    %55 = vector.extract_strided_slice %45 {offsets = [2, 0, 0], sizes = [8, 8, 64], strides = [1, 1, 1]} : vector<12x8x64xf32> to vector<8x8x64xf32>
    %c2_35 = arith.constant 2 : index
    %c0_36 = arith.constant 0 : index
    %c0_37 = arith.constant 0 : index
    %56 = vector.load %arg5[%c2_35, %c0_36, %c0_37] : memref<5x64x32xf32, #tpu.memory_space<vmem>>, vector<1x64x32xf32>
    %57 = vector.shape_cast %56 : vector<1x64x32xf32> to vector<64x32xf32>
    %cst_38 = arith.constant dense<0.000000e+00> : vector<8x8x32xf32>
    %58 = tpu.matmul %55, %57, %cst_38 {dimension_numbers = #tpu.dot_dimension_numbers<[2], [0], [0, 1], [1], [0, 0, 0, 1, 1, 1], [], []>} : vector<8x8x64xf32>, vector<64x32xf32>, vector<8x8x32xf32> -> vector<8x8x32xf32>
    %59 = arith.addf %54, %58 : vector<8x8x32xf32>
    %60 = vector.extract_strided_slice %45 {offsets = [3, 0, 0], sizes = [8, 8, 64], strides = [1, 1, 1]} : vector<12x8x64xf32> to vector<8x8x64xf32>
    %c3_39 = arith.constant 3 : index
    %c0_40 = arith.constant 0 : index
    %c0_41 = arith.constant 0 : index
    %61 = vector.load %arg5[%c3_39, %c0_40, %c0_41] : memref<5x64x32xf32, #tpu.memory_space<vmem>>, vector<1x64x32xf32>
    %62 = vector.shape_cast %61 : vector<1x64x32xf32> to vector<64x32xf32>
    %cst_42 = arith.constant dense<0.000000e+00> : vector<8x8x32xf32>
    %63 = tpu.matmul %60, %62, %cst_42 {dimension_numbers = #tpu.dot_dimension_numbers<[2], [0], [0, 1], [1], [0, 0, 0, 1, 1, 1], [], []>} : vector<8x8x64xf32>, vector<64x32xf32>, vector<8x8x32xf32> -> vector<8x8x32xf32>
    %64 = arith.addf %59, %63 : vector<8x8x32xf32>
    %65 = vector.extract_strided_slice %45 {offsets = [4, 0, 0], sizes = [8, 8, 64], strides = [1, 1, 1]} : vector<12x8x64xf32> to vector<8x8x64xf32>
    %c4_43 = arith.constant 4 : index
    %c0_44 = arith.constant 0 : index
    %c0_45 = arith.constant 0 : index
    %66 = vector.load %arg5[%c4_43, %c0_44, %c0_45] : memref<5x64x32xf32, #tpu.memory_space<vmem>>, vector<1x64x32xf32>
    %67 = vector.shape_cast %66 : vector<1x64x32xf32> to vector<64x32xf32>
    %cst_46 = arith.constant dense<0.000000e+00> : vector<8x8x32xf32>
    %68 = tpu.matmul %65, %67, %cst_46 {dimension_numbers = #tpu.dot_dimension_numbers<[2], [0], [0, 1], [1], [0, 0, 0, 1, 1, 1], [], []>} : vector<8x8x64xf32>, vector<64x32xf32>, vector<8x8x32xf32> -> vector<8x8x32xf32>
    %69 = arith.addf %64, %68 : vector<8x8x32xf32>
    %c0_47 = arith.constant 0 : index
    %c0_48 = arith.constant 0 : index
    %70 = vector.load %arg7[%c0_47, %c0_48] : memref<1x32xf32, #tpu.memory_space<vmem>>, vector<1x32xf32>
    %71 = vector.shape_cast %70 : vector<1x32xf32> to vector<1x1x32xf32>
    %72 = vector.broadcast %71 : vector<1x1x32xf32> to vector<8x8x32xf32>
    %73 = arith.addf %69, %72 : vector<8x8x32xf32>
    %74 = math.tanh %73 : vector<8x8x32xf32>
    %75 = arith.subf %74, %1 : vector<8x8x32xf32>
    %76 = arith.mulf %40, %75 : vector<8x8x32xf32>
    %77 = arith.addf %1, %76 : vector<8x8x32xf32>
    %c0_49 = arith.constant 0 : index
    %c0_50 = arith.constant 0 : index
    %c0_51 = arith.constant 0 : index
    %c0_52 = arith.constant 0 : index
    %78 = vector.load %arg8[%c0_49, %c0_50, %c0_51, %c0_52] : memref<1x8x8x32xf32, #tpu.memory_space<vmem>>, vector<1x8x8x32xf32>
    %79 = vector.shape_cast %78 : vector<1x8x8x32xf32> to vector<8x8x32xf32>
    %80 = vector.shape_cast %77 : vector<8x8x32xf32> to vector<1x8x8x32xf32>
    tpu.vector_store %arg8[%c0_49, %c0_50, %c0_51, %c0_52], %80 {strides = array<i32>} : memref<1x8x8x32xf32, #tpu.memory_space<vmem>>, vector<1x8x8x32xf32>,
    return
  }
  func.func @transform_0(%arg0: i32, %arg1: i32) -> (i32, i32, i32, i32) {
    %c0_i32 = arith.constant 0 : i32
    %c0_i32_0 = arith.constant 0 : i32
    %c0_i32_1 = arith.constant 0 : i32
    return %arg0, %c0_i32, %arg1, %c0_i32_0 : i32, i32, i32, i32
  }
  func.func @transform_1(%arg0: i32, %arg1: i32) -> (i32, i32, i32, i32) {
    %c0_i32 = arith.constant 0 : i32
    %c0_i32_0 = arith.constant 0 : i32
    %c0_i32_1 = arith.constant 0 : i32
    return %arg0, %c0_i32, %arg1, %c0_i32_0 : i32, i32, i32, i32
  }
  func.func @transform_2(%arg0: i32, %arg1: i32) -> (i32, i32, i32) {
    %c0_i32 = arith.constant 0 : i32
    %c0_i32_0 = arith.constant 0 : i32
    %c0_i32_1 = arith.constant 0 : i32
    %c0_i32_2 = arith.constant 0 : i32
    return %c0_i32, %c0_i32_0, %c0_i32_1 : i32, i32, i32
  }
  func.func @transform_3(%arg0: i32, %arg1: i32) -> (i32, i32, i32) {
    %c0_i32 = arith.constant 0 : i32
    %c0_i32_0 = arith.constant 0 : i32
    %c0_i32_1 = arith.constant 0 : i32
    %c0_i32_2 = arith.constant 0 : i32
    return %c0_i32, %c0_i32_0, %c0_i32_1 : i32, i32, i32
  }
  func.func @transform_4(%arg0: i32, %arg1: i32) -> (i32, i32) {
    %c0_i32 = arith.constant 0 : i32
    %c0_i32_0 = arith.constant 0 : i32
    %c0_i32_1 = arith.constant 0 : i32
    return %c0_i32, %c0_i32_0 : i32, i32
  }
  func.func @transform_5(%arg0: i32, %arg1: i32) -> (i32, i32) {
    %c0_i32 = arith.constant 0 : i32
    %c0_i32_0 = arith.constant 0 : i32
    %c0_i32_1 = arith.constant 0 : i32
    return %c0_i32, %c0_i32_0 : i32, i32
  }
  func.func @transform_6(%arg0: i32, %arg1: i32) -> (i32, i32, i32, i32) {
    %c0_i32 = arith.constant 0 : i32
    %c0_i32_0 = arith.constant 0 : i32
    %c0_i32_1 = arith.constant 0 : i32
    return %arg0, %c0_i32, %arg1, %c0_i32_0 : i32, i32, i32, i32
  }
}

module attributes {stable_mosaic.version = 11 : i64} {
  func.func @gru_stage_kernel(%arg0: i32, %arg1: memref<8x8x32xf32, #tpu.memory_space<vmem>>, %arg2: memref<8x8x32xf32, #tpu.memory_space<vmem>>, %arg3: memref<5x64x64xf32, #tpu.memory_space<vmem>>, %arg4: memref<5x64x32xf32, #tpu.memory_space<vmem>>, %arg5: memref<1x64xf32, #tpu.memory_space<vmem>>, %arg6: memref<1x32xf32, #tpu.memory_space<vmem>>, %arg7: memref<8x8x32xf32, #tpu.memory_space<vmem>>) attributes {dimension_semantics = [#tpu.dimension_semantics<parallel>], iteration_bounds = array<i64: 2>, scalar_prefetch = 0 : i64, scratch_operands = 0 : i64, tpu.core_type = #tpu.core_type<tc>, window_params = [{transform_indices = @transform_0, window_bounds = array<i64: 8, 8, 32>}, {transform_indices = @transform_1, window_bounds = array<i64: 8, 8, 32>}, {pipeline_mode = #tpu.pipeline_mode<synchronous>, transform_indices = @transform_2, window_bounds = array<i64: 5, 64, 64>}, {pipeline_mode = #tpu.pipeline_mode<synchronous>, transform_indices = @transform_3, window_bounds = array<i64: 5, 64, 32>}, {pipeline_mode = #tpu.pipeline_mode<synchronous>, transform_indices = @transform_4, window_bounds = array<i64: 1, 64>}, {pipeline_mode = #tpu.pipeline_mode<synchronous>, transform_indices = @transform_5, window_bounds = array<i64: 1, 32>}, {transform_indices = @transform_6, window_bounds = array<i64: 8, 8, 32>}]} {
    %c0 = arith.constant 0 : index
    %c0_0 = arith.constant 0 : index
    %c0_1 = arith.constant 0 : index
    %0 = vector.load %arg1[%c0, %c0_0, %c0_1] : memref<8x8x32xf32, #tpu.memory_space<vmem>>, vector<8x8x32xf32>
    %c0_2 = arith.constant 0 : index
    %c0_3 = arith.constant 0 : index
    %c0_4 = arith.constant 0 : index
    %1 = vector.load %arg2[%c0_2, %c0_3, %c0_4] : memref<8x8x32xf32, #tpu.memory_space<vmem>>, vector<8x8x32xf32>
    %2 = tpu.concatenate %0, %1 in 2 : vector<8x8x32xf32>, vector<8x8x32xf32> -> vector<8x8x64xf32>
    %cst = arith.constant 0.000000e+00 : f32
    %3 = vector.broadcast %cst : f32 to vector<8x2x64xf32>
    %4 = tpu.concatenate %3, %2, %3 in 1 : vector<8x2x64xf32>, vector<8x8x64xf32>, vector<8x2x64xf32> -> vector<8x12x64xf32>
    %5 = vector.extract_strided_slice %4 {offsets = [0, 0, 0], sizes = [8, 8, 64], strides = [1, 1, 1]} : vector<8x12x64xf32> to vector<8x8x64xf32>
    %c0_5 = arith.constant 0 : index
    %c0_6 = arith.constant 0 : index
    %c0_7 = arith.constant 0 : index
    %6 = vector.load %arg3[%c0_5, %c0_6, %c0_7] : memref<5x64x64xf32, #tpu.memory_space<vmem>>, vector<1x64x64xf32>
    %7 = vector.shape_cast %6 : vector<1x64x64xf32> to vector<64x64xf32>
    %cst_8 = arith.constant dense<0.000000e+00> : vector<8x8x64xf32>
    %8 = tpu.matmul %5, %7, %cst_8 {dimension_numbers = #tpu.dot_dimension_numbers<[2], [0], [0, 1], [1], [0, 0, 0, 1, 1, 1], [], []>} : vector<8x8x64xf32>, vector<64x64xf32>, vector<8x8x64xf32> -> vector<8x8x64xf32>
    %9 = vector.extract_strided_slice %4 {offsets = [0, 1, 0], sizes = [8, 8, 64], strides = [1, 1, 1]} : vector<8x12x64xf32> to vector<8x8x64xf32>
    %c1 = arith.constant 1 : index
    %c0_9 = arith.constant 0 : index
    %c0_10 = arith.constant 0 : index
    %10 = vector.load %arg3[%c1, %c0_9, %c0_10] : memref<5x64x64xf32, #tpu.memory_space<vmem>>, vector<1x64x64xf32>
    %11 = vector.shape_cast %10 : vector<1x64x64xf32> to vector<64x64xf32>
    %cst_11 = arith.constant dense<0.000000e+00> : vector<8x8x64xf32>
    %12 = tpu.matmul %9, %11, %cst_11 {dimension_numbers = #tpu.dot_dimension_numbers<[2], [0], [0, 1], [1], [0, 0, 0, 1, 1, 1], [], []>} : vector<8x8x64xf32>, vector<64x64xf32>, vector<8x8x64xf32> -> vector<8x8x64xf32>
    %13 = arith.addf %8, %12 : vector<8x8x64xf32>
    %14 = vector.extract_strided_slice %4 {offsets = [0, 2, 0], sizes = [8, 8, 64], strides = [1, 1, 1]} : vector<8x12x64xf32> to vector<8x8x64xf32>
    %c2 = arith.constant 2 : index
    %c0_12 = arith.constant 0 : index
    %c0_13 = arith.constant 0 : index
    %15 = vector.load %arg3[%c2, %c0_12, %c0_13] : memref<5x64x64xf32, #tpu.memory_space<vmem>>, vector<1x64x64xf32>
    %16 = vector.shape_cast %15 : vector<1x64x64xf32> to vector<64x64xf32>
    %cst_14 = arith.constant dense<0.000000e+00> : vector<8x8x64xf32>
    %17 = tpu.matmul %14, %16, %cst_14 {dimension_numbers = #tpu.dot_dimension_numbers<[2], [0], [0, 1], [1], [0, 0, 0, 1, 1, 1], [], []>} : vector<8x8x64xf32>, vector<64x64xf32>, vector<8x8x64xf32> -> vector<8x8x64xf32>
    %18 = arith.addf %13, %17 : vector<8x8x64xf32>
    %19 = vector.extract_strided_slice %4 {offsets = [0, 3, 0], sizes = [8, 8, 64], strides = [1, 1, 1]} : vector<8x12x64xf32> to vector<8x8x64xf32>
    %c3 = arith.constant 3 : index
    %c0_15 = arith.constant 0 : index
    %c0_16 = arith.constant 0 : index
    %20 = vector.load %arg3[%c3, %c0_15, %c0_16] : memref<5x64x64xf32, #tpu.memory_space<vmem>>, vector<1x64x64xf32>
    %21 = vector.shape_cast %20 : vector<1x64x64xf32> to vector<64x64xf32>
    %cst_17 = arith.constant dense<0.000000e+00> : vector<8x8x64xf32>
    %22 = tpu.matmul %19, %21, %cst_17 {dimension_numbers = #tpu.dot_dimension_numbers<[2], [0], [0, 1], [1], [0, 0, 0, 1, 1, 1], [], []>} : vector<8x8x64xf32>, vector<64x64xf32>, vector<8x8x64xf32> -> vector<8x8x64xf32>
    %23 = arith.addf %18, %22 : vector<8x8x64xf32>
    %24 = vector.extract_strided_slice %4 {offsets = [0, 4, 0], sizes = [8, 8, 64], strides = [1, 1, 1]} : vector<8x12x64xf32> to vector<8x8x64xf32>
    %c4 = arith.constant 4 : index
    %c0_18 = arith.constant 0 : index
    %c0_19 = arith.constant 0 : index
    %25 = vector.load %arg3[%c4, %c0_18, %c0_19] : memref<5x64x64xf32, #tpu.memory_space<vmem>>, vector<1x64x64xf32>
    %26 = vector.shape_cast %25 : vector<1x64x64xf32> to vector<64x64xf32>
    %cst_20 = arith.constant dense<0.000000e+00> : vector<8x8x64xf32>
    %27 = tpu.matmul %24, %26, %cst_20 {dimension_numbers = #tpu.dot_dimension_numbers<[2], [0], [0, 1], [1], [0, 0, 0, 1, 1, 1], [], []>} : vector<8x8x64xf32>, vector<64x64xf32>, vector<8x8x64xf32> -> vector<8x8x64xf32>
    %28 = arith.addf %23, %27 : vector<8x8x64xf32>
    %c0_21 = arith.constant 0 : index
    %c0_22 = arith.constant 0 : index
    %29 = vector.load %arg5[%c0_21, %c0_22] : memref<1x64xf32, #tpu.memory_space<vmem>>, vector<1x64xf32>
    %30 = vector.shape_cast %29 : vector<1x64xf32> to vector<1x1x64xf32>
    %31 = vector.broadcast %30 : vector<1x1x64xf32> to vector<8x8x64xf32>
    %32 = arith.addf %28, %31 : vector<8x8x64xf32>
    %33 = arith.negf %32 : vector<8x8x64xf32>
    %34 = math.exp %33 : vector<8x8x64xf32>
    %cst_23 = arith.constant 1.000000e+00 : f32
    %35 = vector.broadcast %cst_23 : f32 to vector<8x8x64xf32>
    %36 = arith.addf %35, %34 : vector<8x8x64xf32>
    %37 = arith.divf %35, %36 : vector<8x8x64xf32>
    %38 = vector.extract_strided_slice %37 {offsets = [0, 0, 0], sizes = [8, 8, 32], strides = [1, 1, 1]} : vector<8x8x64xf32> to vector<8x8x32xf32>
    %39 = vector.extract_strided_slice %37 {offsets = [0, 0, 32], sizes = [8, 8, 32], strides = [1, 1, 1]} : vector<8x8x64xf32> to vector<8x8x32xf32>
    %40 = arith.mulf %39, %0 : vector<8x8x32xf32>
    %41 = tpu.concatenate %40, %1 in 2 : vector<8x8x32xf32>, vector<8x8x32xf32> -> vector<8x8x64xf32>
    %cst_24 = arith.constant 0.000000e+00 : f32
    %42 = vector.broadcast %cst_24 : f32 to vector<8x2x64xf32>
    %43 = tpu.concatenate %42, %41, %42 in 1 : vector<8x2x64xf32>, vector<8x8x64xf32>, vector<8x2x64xf32> -> vector<8x12x64xf32>
    %44 = vector.extract_strided_slice %43 {offsets = [0, 0, 0], sizes = [8, 8, 64], strides = [1, 1, 1]} : vector<8x12x64xf32> to vector<8x8x64xf32>
    %c0_25 = arith.constant 0 : index
    %c0_26 = arith.constant 0 : index
    %c0_27 = arith.constant 0 : index
    %45 = vector.load %arg4[%c0_25, %c0_26, %c0_27] : memref<5x64x32xf32, #tpu.memory_space<vmem>>, vector<1x64x32xf32>
    %46 = vector.shape_cast %45 : vector<1x64x32xf32> to vector<64x32xf32>
    %cst_28 = arith.constant dense<0.000000e+00> : vector<8x8x32xf32>
    %47 = tpu.matmul %44, %46, %cst_28 {dimension_numbers = #tpu.dot_dimension_numbers<[2], [0], [0, 1], [1], [0, 0, 0, 1, 1, 1], [], []>} : vector<8x8x64xf32>, vector<64x32xf32>, vector<8x8x32xf32> -> vector<8x8x32xf32>
    %48 = vector.extract_strided_slice %43 {offsets = [0, 1, 0], sizes = [8, 8, 64], strides = [1, 1, 1]} : vector<8x12x64xf32> to vector<8x8x64xf32>
    %c1_29 = arith.constant 1 : index
    %c0_30 = arith.constant 0 : index
    %c0_31 = arith.constant 0 : index
    %49 = vector.load %arg4[%c1_29, %c0_30, %c0_31] : memref<5x64x32xf32, #tpu.memory_space<vmem>>, vector<1x64x32xf32>
    %50 = vector.shape_cast %49 : vector<1x64x32xf32> to vector<64x32xf32>
    %cst_32 = arith.constant dense<0.000000e+00> : vector<8x8x32xf32>
    %51 = tpu.matmul %48, %50, %cst_32 {dimension_numbers = #tpu.dot_dimension_numbers<[2], [0], [0, 1], [1], [0, 0, 0, 1, 1, 1], [], []>} : vector<8x8x64xf32>, vector<64x32xf32>, vector<8x8x32xf32> -> vector<8x8x32xf32>
    %52 = arith.addf %47, %51 : vector<8x8x32xf32>
    %53 = vector.extract_strided_slice %43 {offsets = [0, 2, 0], sizes = [8, 8, 64], strides = [1, 1, 1]} : vector<8x12x64xf32> to vector<8x8x64xf32>
    %c2_33 = arith.constant 2 : index
    %c0_34 = arith.constant 0 : index
    %c0_35 = arith.constant 0 : index
    %54 = vector.load %arg4[%c2_33, %c0_34, %c0_35] : memref<5x64x32xf32, #tpu.memory_space<vmem>>, vector<1x64x32xf32>
    %55 = vector.shape_cast %54 : vector<1x64x32xf32> to vector<64x32xf32>
    %cst_36 = arith.constant dense<0.000000e+00> : vector<8x8x32xf32>
    %56 = tpu.matmul %53, %55, %cst_36 {dimension_numbers = #tpu.dot_dimension_numbers<[2], [0], [0, 1], [1], [0, 0, 0, 1, 1, 1], [], []>} : vector<8x8x64xf32>, vector<64x32xf32>, vector<8x8x32xf32> -> vector<8x8x32xf32>
    %57 = arith.addf %52, %56 : vector<8x8x32xf32>
    %58 = vector.extract_strided_slice %43 {offsets = [0, 3, 0], sizes = [8, 8, 64], strides = [1, 1, 1]} : vector<8x12x64xf32> to vector<8x8x64xf32>
    %c3_37 = arith.constant 3 : index
    %c0_38 = arith.constant 0 : index
    %c0_39 = arith.constant 0 : index
    %59 = vector.load %arg4[%c3_37, %c0_38, %c0_39] : memref<5x64x32xf32, #tpu.memory_space<vmem>>, vector<1x64x32xf32>
    %60 = vector.shape_cast %59 : vector<1x64x32xf32> to vector<64x32xf32>
    %cst_40 = arith.constant dense<0.000000e+00> : vector<8x8x32xf32>
    %61 = tpu.matmul %58, %60, %cst_40 {dimension_numbers = #tpu.dot_dimension_numbers<[2], [0], [0, 1], [1], [0, 0, 0, 1, 1, 1], [], []>} : vector<8x8x64xf32>, vector<64x32xf32>, vector<8x8x32xf32> -> vector<8x8x32xf32>
    %62 = arith.addf %57, %61 : vector<8x8x32xf32>
    %63 = vector.extract_strided_slice %43 {offsets = [0, 4, 0], sizes = [8, 8, 64], strides = [1, 1, 1]} : vector<8x12x64xf32> to vector<8x8x64xf32>
    %c4_41 = arith.constant 4 : index
    %c0_42 = arith.constant 0 : index
    %c0_43 = arith.constant 0 : index
    %64 = vector.load %arg4[%c4_41, %c0_42, %c0_43] : memref<5x64x32xf32, #tpu.memory_space<vmem>>, vector<1x64x32xf32>
    %65 = vector.shape_cast %64 : vector<1x64x32xf32> to vector<64x32xf32>
    %cst_44 = arith.constant dense<0.000000e+00> : vector<8x8x32xf32>
    %66 = tpu.matmul %63, %65, %cst_44 {dimension_numbers = #tpu.dot_dimension_numbers<[2], [0], [0, 1], [1], [0, 0, 0, 1, 1, 1], [], []>} : vector<8x8x64xf32>, vector<64x32xf32>, vector<8x8x32xf32> -> vector<8x8x32xf32>
    %67 = arith.addf %62, %66 : vector<8x8x32xf32>
    %c0_45 = arith.constant 0 : index
    %c0_46 = arith.constant 0 : index
    %68 = vector.load %arg6[%c0_45, %c0_46] : memref<1x32xf32, #tpu.memory_space<vmem>>, vector<1x32xf32>
    %69 = vector.shape_cast %68 : vector<1x32xf32> to vector<1x1x32xf32>
    %70 = vector.broadcast %69 : vector<1x1x32xf32> to vector<8x8x32xf32>
    %71 = arith.addf %67, %70 : vector<8x8x32xf32>
    %72 = math.tanh %71 : vector<8x8x32xf32>
    %73 = arith.subf %72, %0 : vector<8x8x32xf32>
    %74 = arith.mulf %38, %73 : vector<8x8x32xf32>
    %75 = arith.addf %0, %74 : vector<8x8x32xf32>
    %c0_47 = arith.constant 0 : index
    %c0_48 = arith.constant 0 : index
    %c0_49 = arith.constant 0 : index
    %76 = vector.load %arg7[%c0_47, %c0_48, %c0_49] : memref<8x8x32xf32, #tpu.memory_space<vmem>>, vector<8x8x32xf32>
    tpu.vector_store %arg7[%c0_47, %c0_48, %c0_49], %75 {strides = array<i32>} : memref<8x8x32xf32, #tpu.memory_space<vmem>>, vector<8x8x32xf32>,
    return
  }
  func.func @transform_0(%arg0: i32) -> (i32, i32, i32) {
    %c0_i32 = arith.constant 0 : i32
    %c0_i32_0 = arith.constant 0 : i32
    %c0_i32_1 = arith.constant 0 : i32
    return %arg0, %c0_i32, %c0_i32_0 : i32, i32, i32
  }
  func.func @transform_1(%arg0: i32) -> (i32, i32, i32) {
    %c0_i32 = arith.constant 0 : i32
    %c0_i32_0 = arith.constant 0 : i32
    %c0_i32_1 = arith.constant 0 : i32
    return %arg0, %c0_i32, %c0_i32_0 : i32, i32, i32
  }
  func.func @transform_2(%arg0: i32) -> (i32, i32, i32) {
    %c0_i32 = arith.constant 0 : i32
    %c0_i32_0 = arith.constant 0 : i32
    %c0_i32_1 = arith.constant 0 : i32
    %c0_i32_2 = arith.constant 0 : i32
    return %c0_i32, %c0_i32_0, %c0_i32_1 : i32, i32, i32
  }
  func.func @transform_3(%arg0: i32) -> (i32, i32, i32) {
    %c0_i32 = arith.constant 0 : i32
    %c0_i32_0 = arith.constant 0 : i32
    %c0_i32_1 = arith.constant 0 : i32
    %c0_i32_2 = arith.constant 0 : i32
    return %c0_i32, %c0_i32_0, %c0_i32_1 : i32, i32, i32
  }
  func.func @transform_4(%arg0: i32) -> (i32, i32) {
    %c0_i32 = arith.constant 0 : i32
    %c0_i32_0 = arith.constant 0 : i32
    %c0_i32_1 = arith.constant 0 : i32
    return %c0_i32, %c0_i32_0 : i32, i32
  }
  func.func @transform_5(%arg0: i32) -> (i32, i32) {
    %c0_i32 = arith.constant 0 : i32
    %c0_i32_0 = arith.constant 0 : i32
    %c0_i32_1 = arith.constant 0 : i32
    return %c0_i32, %c0_i32_0 : i32, i32
  }
  func.func @transform_6(%arg0: i32) -> (i32, i32, i32) {
    %c0_i32 = arith.constant 0 : i32
    %c0_i32_0 = arith.constant 0 : i32
    %c0_i32_1 = arith.constant 0 : i32
    return %arg0, %c0_i32, %c0_i32_0 : i32, i32, i32
  }
}

module attributes {stable_mosaic.version = 11 : i64} {
  func.func @gru_stage_kernel(%arg0: i32, %arg1: i32, %arg2: memref<1x8x8x32xf32, #tpu.memory_space<vmem>>, %arg3: memref<1x8x8x32xf32, #tpu.memory_space<vmem>>, %arg4: memref<5x64x64xf32, #tpu.memory_space<vmem>>, %arg5: memref<5x64x32xf32, #tpu.memory_space<vmem>>, %arg6: memref<1x64xf32, #tpu.memory_space<vmem>>, %arg7: memref<1x32xf32, #tpu.memory_space<vmem>>, %arg8: memref<1x8x8x32xf32, #tpu.memory_space<vmem>>) attributes {dimension_semantics = [#tpu.dimension_semantics<parallel>, #tpu.dimension_semantics<parallel>], iteration_bounds = array<i64: 2, 1>, scalar_prefetch = 0 : i64, scratch_operands = 0 : i64, tpu.core_type = #tpu.core_type<tc>, window_params = [{transform_indices = @transform_0, window_bounds = array<i64: 1, 8, 8, 32>}, {transform_indices = @transform_1, window_bounds = array<i64: 1, 8, 8, 32>}, {pipeline_mode = #tpu.pipeline_mode<synchronous>, transform_indices = @transform_2, window_bounds = array<i64: 5, 64, 64>}, {pipeline_mode = #tpu.pipeline_mode<synchronous>, transform_indices = @transform_3, window_bounds = array<i64: 5, 64, 32>}, {pipeline_mode = #tpu.pipeline_mode<synchronous>, transform_indices = @transform_4, window_bounds = array<i64: 1, 64>}, {pipeline_mode = #tpu.pipeline_mode<synchronous>, transform_indices = @transform_5, window_bounds = array<i64: 1, 32>}, {transform_indices = @transform_6, window_bounds = array<i64: 1, 8, 8, 32>}]} {
    %c0 = arith.constant 0 : index
    %c0_0 = arith.constant 0 : index
    %c0_1 = arith.constant 0 : index
    %c0_2 = arith.constant 0 : index
    %0 = vector.load %arg2[%c0, %c0_0, %c0_1, %c0_2] : memref<1x8x8x32xf32, #tpu.memory_space<vmem>>, vector<1x8x8x32xf32>
    %1 = vector.shape_cast %0 : vector<1x8x8x32xf32> to vector<8x8x32xf32>
    %c0_3 = arith.constant 0 : index
    %c0_4 = arith.constant 0 : index
    %c0_5 = arith.constant 0 : index
    %c0_6 = arith.constant 0 : index
    %2 = vector.load %arg3[%c0_3, %c0_4, %c0_5, %c0_6] : memref<1x8x8x32xf32, #tpu.memory_space<vmem>>, vector<1x8x8x32xf32>
    %3 = vector.shape_cast %2 : vector<1x8x8x32xf32> to vector<8x8x32xf32>
    %4 = tpu.concatenate %1, %3 in 2 : vector<8x8x32xf32>, vector<8x8x32xf32> -> vector<8x8x64xf32>
    %cst = arith.constant 0.000000e+00 : f32
    %5 = vector.broadcast %cst : f32 to vector<2x8x64xf32>
    %6 = tpu.concatenate %5, %4, %5 in 0 : vector<2x8x64xf32>, vector<8x8x64xf32>, vector<2x8x64xf32> -> vector<12x8x64xf32>
    %7 = vector.extract_strided_slice %6 {offsets = [0, 0, 0], sizes = [8, 8, 64], strides = [1, 1, 1]} : vector<12x8x64xf32> to vector<8x8x64xf32>
    %c0_7 = arith.constant 0 : index
    %c0_8 = arith.constant 0 : index
    %c0_9 = arith.constant 0 : index
    %8 = vector.load %arg4[%c0_7, %c0_8, %c0_9] : memref<5x64x64xf32, #tpu.memory_space<vmem>>, vector<1x64x64xf32>
    %9 = vector.shape_cast %8 : vector<1x64x64xf32> to vector<64x64xf32>
    %cst_10 = arith.constant dense<0.000000e+00> : vector<8x8x64xf32>
    %10 = tpu.matmul %7, %9, %cst_10 {dimension_numbers = #tpu.dot_dimension_numbers<[2], [0], [0, 1], [1], [0, 0, 0, 1, 1, 1], [], []>} : vector<8x8x64xf32>, vector<64x64xf32>, vector<8x8x64xf32> -> vector<8x8x64xf32>
    %11 = vector.extract_strided_slice %6 {offsets = [1, 0, 0], sizes = [8, 8, 64], strides = [1, 1, 1]} : vector<12x8x64xf32> to vector<8x8x64xf32>
    %c1 = arith.constant 1 : index
    %c0_11 = arith.constant 0 : index
    %c0_12 = arith.constant 0 : index
    %12 = vector.load %arg4[%c1, %c0_11, %c0_12] : memref<5x64x64xf32, #tpu.memory_space<vmem>>, vector<1x64x64xf32>
    %13 = vector.shape_cast %12 : vector<1x64x64xf32> to vector<64x64xf32>
    %cst_13 = arith.constant dense<0.000000e+00> : vector<8x8x64xf32>
    %14 = tpu.matmul %11, %13, %cst_13 {dimension_numbers = #tpu.dot_dimension_numbers<[2], [0], [0, 1], [1], [0, 0, 0, 1, 1, 1], [], []>} : vector<8x8x64xf32>, vector<64x64xf32>, vector<8x8x64xf32> -> vector<8x8x64xf32>
    %15 = arith.addf %10, %14 : vector<8x8x64xf32>
    %16 = vector.extract_strided_slice %6 {offsets = [2, 0, 0], sizes = [8, 8, 64], strides = [1, 1, 1]} : vector<12x8x64xf32> to vector<8x8x64xf32>
    %c2 = arith.constant 2 : index
    %c0_14 = arith.constant 0 : index
    %c0_15 = arith.constant 0 : index
    %17 = vector.load %arg4[%c2, %c0_14, %c0_15] : memref<5x64x64xf32, #tpu.memory_space<vmem>>, vector<1x64x64xf32>
    %18 = vector.shape_cast %17 : vector<1x64x64xf32> to vector<64x64xf32>
    %cst_16 = arith.constant dense<0.000000e+00> : vector<8x8x64xf32>
    %19 = tpu.matmul %16, %18, %cst_16 {dimension_numbers = #tpu.dot_dimension_numbers<[2], [0], [0, 1], [1], [0, 0, 0, 1, 1, 1], [], []>} : vector<8x8x64xf32>, vector<64x64xf32>, vector<8x8x64xf32> -> vector<8x8x64xf32>
    %20 = arith.addf %15, %19 : vector<8x8x64xf32>
    %21 = vector.extract_strided_slice %6 {offsets = [3, 0, 0], sizes = [8, 8, 64], strides = [1, 1, 1]} : vector<12x8x64xf32> to vector<8x8x64xf32>
    %c3 = arith.constant 3 : index
    %c0_17 = arith.constant 0 : index
    %c0_18 = arith.constant 0 : index
    %22 = vector.load %arg4[%c3, %c0_17, %c0_18] : memref<5x64x64xf32, #tpu.memory_space<vmem>>, vector<1x64x64xf32>
    %23 = vector.shape_cast %22 : vector<1x64x64xf32> to vector<64x64xf32>
    %cst_19 = arith.constant dense<0.000000e+00> : vector<8x8x64xf32>
    %24 = tpu.matmul %21, %23, %cst_19 {dimension_numbers = #tpu.dot_dimension_numbers<[2], [0], [0, 1], [1], [0, 0, 0, 1, 1, 1], [], []>} : vector<8x8x64xf32>, vector<64x64xf32>, vector<8x8x64xf32> -> vector<8x8x64xf32>
    %25 = arith.addf %20, %24 : vector<8x8x64xf32>
    %26 = vector.extract_strided_slice %6 {offsets = [4, 0, 0], sizes = [8, 8, 64], strides = [1, 1, 1]} : vector<12x8x64xf32> to vector<8x8x64xf32>
    %c4 = arith.constant 4 : index
    %c0_20 = arith.constant 0 : index
    %c0_21 = arith.constant 0 : index
    %27 = vector.load %arg4[%c4, %c0_20, %c0_21] : memref<5x64x64xf32, #tpu.memory_space<vmem>>, vector<1x64x64xf32>
    %28 = vector.shape_cast %27 : vector<1x64x64xf32> to vector<64x64xf32>
    %cst_22 = arith.constant dense<0.000000e+00> : vector<8x8x64xf32>
    %29 = tpu.matmul %26, %28, %cst_22 {dimension_numbers = #tpu.dot_dimension_numbers<[2], [0], [0, 1], [1], [0, 0, 0, 1, 1, 1], [], []>} : vector<8x8x64xf32>, vector<64x64xf32>, vector<8x8x64xf32> -> vector<8x8x64xf32>
    %30 = arith.addf %25, %29 : vector<8x8x64xf32>
    %c0_23 = arith.constant 0 : index
    %c0_24 = arith.constant 0 : index
    %31 = vector.load %arg6[%c0_23, %c0_24] : memref<1x64xf32, #tpu.memory_space<vmem>>, vector<1x64xf32>
    %32 = vector.shape_cast %31 : vector<1x64xf32> to vector<1x1x64xf32>
    %33 = vector.broadcast %32 : vector<1x1x64xf32> to vector<8x8x64xf32>
    %34 = arith.addf %30, %33 : vector<8x8x64xf32>
    %35 = arith.negf %34 : vector<8x8x64xf32>
    %36 = math.exp %35 : vector<8x8x64xf32>
    %cst_25 = arith.constant 1.000000e+00 : f32
    %37 = vector.broadcast %cst_25 : f32 to vector<8x8x64xf32>
    %38 = arith.addf %37, %36 : vector<8x8x64xf32>
    %39 = arith.divf %37, %38 : vector<8x8x64xf32>
    %40 = vector.extract_strided_slice %39 {offsets = [0, 0, 0], sizes = [8, 8, 32], strides = [1, 1, 1]} : vector<8x8x64xf32> to vector<8x8x32xf32>
    %41 = vector.extract_strided_slice %39 {offsets = [0, 0, 32], sizes = [8, 8, 32], strides = [1, 1, 1]} : vector<8x8x64xf32> to vector<8x8x32xf32>
    %42 = arith.mulf %41, %1 : vector<8x8x32xf32>
    %43 = tpu.concatenate %42, %3 in 2 : vector<8x8x32xf32>, vector<8x8x32xf32> -> vector<8x8x64xf32>
    %cst_26 = arith.constant 0.000000e+00 : f32
    %44 = vector.broadcast %cst_26 : f32 to vector<2x8x64xf32>
    %45 = tpu.concatenate %44, %43, %44 in 0 : vector<2x8x64xf32>, vector<8x8x64xf32>, vector<2x8x64xf32> -> vector<12x8x64xf32>
    %46 = vector.extract_strided_slice %45 {offsets = [0, 0, 0], sizes = [8, 8, 64], strides = [1, 1, 1]} : vector<12x8x64xf32> to vector<8x8x64xf32>
    %c0_27 = arith.constant 0 : index
    %c0_28 = arith.constant 0 : index
    %c0_29 = arith.constant 0 : index
    %47 = vector.load %arg5[%c0_27, %c0_28, %c0_29] : memref<5x64x32xf32, #tpu.memory_space<vmem>>, vector<1x64x32xf32>
    %48 = vector.shape_cast %47 : vector<1x64x32xf32> to vector<64x32xf32>
    %cst_30 = arith.constant dense<0.000000e+00> : vector<8x8x32xf32>
    %49 = tpu.matmul %46, %48, %cst_30 {dimension_numbers = #tpu.dot_dimension_numbers<[2], [0], [0, 1], [1], [0, 0, 0, 1, 1, 1], [], []>} : vector<8x8x64xf32>, vector<64x32xf32>, vector<8x8x32xf32> -> vector<8x8x32xf32>
    %50 = vector.extract_strided_slice %45 {offsets = [1, 0, 0], sizes = [8, 8, 64], strides = [1, 1, 1]} : vector<12x8x64xf32> to vector<8x8x64xf32>
    %c1_31 = arith.constant 1 : index
    %c0_32 = arith.constant 0 : index
    %c0_33 = arith.constant 0 : index
    %51 = vector.load %arg5[%c1_31, %c0_32, %c0_33] : memref<5x64x32xf32, #tpu.memory_space<vmem>>, vector<1x64x32xf32>
    %52 = vector.shape_cast %51 : vector<1x64x32xf32> to vector<64x32xf32>
    %cst_34 = arith.constant dense<0.000000e+00> : vector<8x8x32xf32>
    %53 = tpu.matmul %50, %52, %cst_34 {dimension_numbers = #tpu.dot_dimension_numbers<[2], [0], [0, 1], [1], [0, 0, 0, 1, 1, 1], [], []>} : vector<8x8x64xf32>, vector<64x32xf32>, vector<8x8x32xf32> -> vector<8x8x32xf32>
    %54 = arith.addf %49, %53 : vector<8x8x32xf32>
    %55 = vector.extract_strided_slice %45 {offsets = [2, 0, 0], sizes = [8, 8, 64], strides = [1, 1, 1]} : vector<12x8x64xf32> to vector<8x8x64xf32>
    %c2_35 = arith.constant 2 : index
    %c0_36 = arith.constant 0 : index
    %c0_37 = arith.constant 0 : index
    %56 = vector.load %arg5[%c2_35, %c0_36, %c0_37] : memref<5x64x32xf32, #tpu.memory_space<vmem>>, vector<1x64x32xf32>
    %57 = vector.shape_cast %56 : vector<1x64x32xf32> to vector<64x32xf32>
    %cst_38 = arith.constant dense<0.000000e+00> : vector<8x8x32xf32>
    %58 = tpu.matmul %55, %57, %cst_38 {dimension_numbers = #tpu.dot_dimension_numbers<[2], [0], [0, 1], [1], [0, 0, 0, 1, 1, 1], [], []>} : vector<8x8x64xf32>, vector<64x32xf32>, vector<8x8x32xf32> -> vector<8x8x32xf32>
    %59 = arith.addf %54, %58 : vector<8x8x32xf32>
    %60 = vector.extract_strided_slice %45 {offsets = [3, 0, 0], sizes = [8, 8, 64], strides = [1, 1, 1]} : vector<12x8x64xf32> to vector<8x8x64xf32>
    %c3_39 = arith.constant 3 : index
    %c0_40 = arith.constant 0 : index
    %c0_41 = arith.constant 0 : index
    %61 = vector.load %arg5[%c3_39, %c0_40, %c0_41] : memref<5x64x32xf32, #tpu.memory_space<vmem>>, vector<1x64x32xf32>
    %62 = vector.shape_cast %61 : vector<1x64x32xf32> to vector<64x32xf32>
    %cst_42 = arith.constant dense<0.000000e+00> : vector<8x8x32xf32>
    %63 = tpu.matmul %60, %62, %cst_42 {dimension_numbers = #tpu.dot_dimension_numbers<[2], [0], [0, 1], [1], [0, 0, 0, 1, 1, 1], [], []>} : vector<8x8x64xf32>, vector<64x32xf32>, vector<8x8x32xf32> -> vector<8x8x32xf32>
    %64 = arith.addf %59, %63 : vector<8x8x32xf32>
    %65 = vector.extract_strided_slice %45 {offsets = [4, 0, 0], sizes = [8, 8, 64], strides = [1, 1, 1]} : vector<12x8x64xf32> to vector<8x8x64xf32>
    %c4_43 = arith.constant 4 : index
    %c0_44 = arith.constant 0 : index
    %c0_45 = arith.constant 0 : index
    %66 = vector.load %arg5[%c4_43, %c0_44, %c0_45] : memref<5x64x32xf32, #tpu.memory_space<vmem>>, vector<1x64x32xf32>
    %67 = vector.shape_cast %66 : vector<1x64x32xf32> to vector<64x32xf32>
    %cst_46 = arith.constant dense<0.000000e+00> : vector<8x8x32xf32>
    %68 = tpu.matmul %65, %67, %cst_46 {dimension_numbers = #tpu.dot_dimension_numbers<[2], [0], [0, 1], [1], [0, 0, 0, 1, 1, 1], [], []>} : vector<8x8x64xf32>, vector<64x32xf32>, vector<8x8x32xf32> -> vector<8x8x32xf32>
    %69 = arith.addf %64, %68 : vector<8x8x32xf32>
    %c0_47 = arith.constant 0 : index
    %c0_48 = arith.constant 0 : index
    %70 = vector.load %arg7[%c0_47, %c0_48] : memref<1x32xf32, #tpu.memory_space<vmem>>, vector<1x32xf32>
    %71 = vector.shape_cast %70 : vector<1x32xf32> to vector<1x1x32xf32>
    %72 = vector.broadcast %71 : vector<1x1x32xf32> to vector<8x8x32xf32>
    %73 = arith.addf %69, %72 : vector<8x8x32xf32>
    %74 = math.tanh %73 : vector<8x8x32xf32>
    %75 = arith.subf %74, %1 : vector<8x8x32xf32>
    %76 = arith.mulf %40, %75 : vector<8x8x32xf32>
    %77 = arith.addf %1, %76 : vector<8x8x32xf32>
    %c0_49 = arith.constant 0 : index
    %c0_50 = arith.constant 0 : index
    %c0_51 = arith.constant 0 : index
    %c0_52 = arith.constant 0 : index
    %78 = vector.load %arg8[%c0_49, %c0_50, %c0_51, %c0_52] : memref<1x8x8x32xf32, #tpu.memory_space<vmem>>, vector<1x8x8x32xf32>
    %79 = vector.shape_cast %78 : vector<1x8x8x32xf32> to vector<8x8x32xf32>
    %80 = vector.shape_cast %77 : vector<8x8x32xf32> to vector<1x8x8x32xf32>
    tpu.vector_store %arg8[%c0_49, %c0_50, %c0_51, %c0_52], %80 {strides = array<i32>} : memref<1x8x8x32xf32, #tpu.memory_space<vmem>>, vector<1x8x8x32xf32>,
    return
  }
  func.func @transform_0(%arg0: i32, %arg1: i32) -> (i32, i32, i32, i32) {
    %c0_i32 = arith.constant 0 : i32
    %c0_i32_0 = arith.constant 0 : i32
    %c0_i32_1 = arith.constant 0 : i32
    return %arg0, %c0_i32, %arg1, %c0_i32_0 : i32, i32, i32, i32
  }
  func.func @transform_1(%arg0: i32, %arg1: i32) -> (i32, i32, i32, i32) {
    %c0_i32 = arith.constant 0 : i32
    %c0_i32_0 = arith.constant 0 : i32
    %c0_i32_1 = arith.constant 0 : i32
    return %arg0, %c0_i32, %arg1, %c0_i32_0 : i32, i32, i32, i32
  }
  func.func @transform_2(%arg0: i32, %arg1: i32) -> (i32, i32, i32) {
    %c0_i32 = arith.constant 0 : i32
    %c0_i32_0 = arith.constant 0 : i32
    %c0_i32_1 = arith.constant 0 : i32
    %c0_i32_2 = arith.constant 0 : i32
    return %c0_i32, %c0_i32_0, %c0_i32_1 : i32, i32, i32
  }
  func.func @transform_3(%arg0: i32, %arg1: i32) -> (i32, i32, i32) {
    %c0_i32 = arith.constant 0 : i32
    %c0_i32_0 = arith.constant 0 : i32
    %c0_i32_1 = arith.constant 0 : i32
    %c0_i32_2 = arith.constant 0 : i32
    return %c0_i32, %c0_i32_0, %c0_i32_1 : i32, i32, i32
  }
  func.func @transform_4(%arg0: i32, %arg1: i32) -> (i32, i32) {
    %c0_i32 = arith.constant 0 : i32
    %c0_i32_0 = arith.constant 0 : i32
    %c0_i32_1 = arith.constant 0 : i32
    return %c0_i32, %c0_i32_0 : i32, i32
  }
  func.func @transform_5(%arg0: i32, %arg1: i32) -> (i32, i32) {
    %c0_i32 = arith.constant 0 : i32
    %c0_i32_0 = arith.constant 0 : i32
    %c0_i32_1 = arith.constant 0 : i32
    return %c0_i32, %c0_i32_0 : i32, i32
  }
  func.func @transform_6(%arg0: i32, %arg1: i32) -> (i32, i32, i32, i32) {
    %c0_i32 = arith.constant 0 : i32
    %c0_i32_0 = arith.constant 0 : i32
    %c0_i32_1 = arith.constant 0 : i32
    return %arg0, %c0_i32, %arg1, %c0_i32_0 : i32, i32, i32, i32
  }
}

</mosaic_0001>

<bundles_post_ra>
// kernel: _forward_jit.2
= control target key start
LH: loop header
LB: loop body
LE: loop exit
PB: predicated region body
PF: predicated region fallthrough
CT: control target
= control target key end

     0   :  { %s2974_s21 = smov 0   ;;  %s3606_s0 = inlined_call_operand.vmem [shape: f32[16,8,32], index: 0, kind: input, shape index: {}]   ;;  %s3607_s1 = inlined_call_operand.vmem [shape: f32[16,8,32], index: 1, kind: input, shape index: {}]   ;;  %s3608_s2 = inlined_call_operand.vmem [shape: f32[5,64,64], index: 2, kind: input, shape index: {}]   ;;  %s3609_s3 = inlined_call_operand.vmem [shape: f32[5,64,32], index: 3, kind: input, shape index: {}]   ;;  %s3610_s4 = inlined_call_operand.vmem [shape: f32[1,64], index: 4, kind: input, shape index: {}]   ;;  %s3611_s5 = inlined_call_operand.vmem [shape: f32[1,32], index: 5, kind: input, shape index: {}]   ;;  %s3612_s6 = inlined_call_operand.vmem [shape: f32[16,8,32], index: 6, kind: output, shape index: {}]  }
   0x1 LB: > { %s2246_s22 = sadd.s32 4294967295, %s2932_s21   ;;  %p2250_p0 = scmp.ge.s32.totalorder %s2932_s21, 1  ;;  %s2932_s21 = sphi %s2974_s21, %s16_s21  }
   0x2   : > { %p224_p1 = scmp.lt.s32.totalorder %s2932_s21, 3 }
   0x4   : > { %p225_p2 = pnand %p2250_p0, %p224_p1 }
   0x5   : > { %s2251_s23 = sshll.u32 (!%p225_p2), %s2246_s22, 3  ;;  %s2937_s22 = smov (!%p225_p2), 32  }
   0x6   : > { %228 = sbr.rel (%p225_p2) target bundleno = 805 (0x325), region = 44  ;;  %p260_p3 = scmp.lt.s32.totalorder (!%p225_p2), %s2251_s23, 15 }
   0x7   : > { %s2938_s27 = smov (!%p225_p2), 96  }
   0xb   : > { %v298_v0 = vlaneseq  ;;  %v2934_v1 = vmov 1983009808   ;;  %v613_v3 = vld [vmem:[%s3608_s2 + $0x38] sm:$0xff]  ;;  %v612_v5 = vld [vmem:[%s3608_s2 + $0x30] sm:$0xff]  ;;  %s3614_s23 = smov (!%p260_p3, %s2251_s23), 15  ;;  %v611_v11 = vld [vmem:[%s3608_s2 + $0x28] sm:$0xff] }
   0xc   : > { %v296_v2 = vunpack.c.l.s4 %v2934_v1  ;;  %v2264_v4 = vld [vmem:[%s3608_s2 + $0x78] sm:$0xff]  ;;  %2589 = vmatprep.subr.mxu1 %v613_v3  ;;  %v2263_v6 = vld [vmem:[%s3608_s2 + $0x70] sm:$0xff]  ;;  %v2935_v9 = vmov 1934713408   ;;  %v2262_v12 = vld [vmem:[%s3608_s2 + $0x68] sm:$0xff]  ;;  %s3000_s12 = sshll.u32 %s3614_s23, 3 }
   0xd   : > { %2561 = vmatprep.subr.mxu0 %v2264_v4  ;;  %v299_v8 = vshrl.u32 %v298_v0, 7  ;;  %v360_v10 = vunpack.c.l.s4 %v2935_v9  ;;  %2590 = vmatpush3.msra.mxu1 %v613_v3  ;;  %v610_v13 = vld [vmem:[%s3608_s2 + $0x20] sm:$0xff]  ;;  %s3012_s19 = scalar_lea.vmem %s3607_s1, %s3000_s12  ;;  %v609_v15 = vld [vmem:[%s3608_s2 + $0x18] sm:$0xff]  ;;  %v608_v19 = vld [vmem:[%s3608_s2 + $0x10] sm:$0xff]  ;;  %s3048_s11 = scalar_lea.vmem %s3606_s0, %s3000_s12  ;;  %v2936_v54 = vmov 0.0   ;;  %vm597_vm0 = vcmask 261120  }
   0xe   : > { %v297_v7 = vunpack.c.0.s8 %v296_v2  ;;  %2562 = vmatpush3.msra.mxu0 %v2264_v4  ;;  %2591 = vmatprep.subr.mxu1 %v612_v5  ;;  %v2261_v14 = vld [vmem:[%s3608_s2 + $0x60] sm:$0xff]  ;;  %v2260_v16 = vld [vmem:[%s3608_s2 + $0x58] sm:$0xff]  ;;  %v2259_v20 = vld [vmem:[%s3608_s2 + $0x50] sm:$0xff]  ;;  %vm623_vm1 = vcmask 523264  }
   0xf   : > { %2563 = vmatprep.subr.mxu0 %v2263_v6  ;;  %2592 = vmatpush3.msra.mxu1 %v612_v5  ;;  %v361_v18 = vunpack.c.0.s8 %v360_v10  ;;  %v2854_v21 = vld [vmem:[%s3012_s19] ss:$16 sps:$4 sm:$0xff]   ;;  %v607_v22 = vld [vmem:[%s3608_s2 + $0x8] sm:$0xff]  ;;  %v2856_v23 = vld [vmem:[%s3012_s19 + $0x4] ss:$16 sps:$4 sm:$0xff]  }
  0x10   : > { %2564 = vmatpush3.msra.mxu0 %v2263_v6  ;;  %2593 = vmatprep.subr.mxu1 %v611_v11  ;;  %v3020_v17 = vsub.s32 %v297_v7, %v299_v8  ;;  %v2857_v24 = vld [vmem:[%s3012_s19 + $0x8] ss:$16 sps:$4 sm:$0xff]   ;;  %v2859_v25 = vld [vmem:[%s3012_s19 + $0xc] ss:$16 sps:$4 sm:$0xff]   ;;  %v2860_v29 = vld [vmem:[%s3012_s19 + $0x20] ss:$16 sps:$4 sm:$0xff]  }
  0x11   : > { %2565 = vmatprep.subr.mxu0 %v2262_v12  ;;  %2594 = vmatpush3.msra.mxu1 %v611_v11  ;;  %v2258_v26 = vld [vmem:[%s3608_s2 + $0x48] sm:$0xff]  ;;  %v3038_v27 = vsub.s32 %v361_v18, %v299_v8  ;;  %v2862_v30 = vld [vmem:[%s3012_s19 + $0x24] ss:$16 sps:$4 sm:$0xff]   ;;  %v2866_v55 = vld [vmem:[%s3048_s11] ss:$16 sps:$4 sm:$0xff]  }
  0x12   : > { %2566 = vmatpush3.msra.mxu0 %v2262_v12  ;;  %2595 = vmatprep.subr.mxu1 %v610_v13  ;;  %v437_v28 = vrot.slane %v2854_v21, %v3020_v17  ;;  %v2863_v31 = vld [vmem:[%s3012_s19 + $0x28] ss:$16 sps:$4 sm:$0xff]   ;;  %v453_v32 = vrot.slane %v2857_v24, %v3020_v17  ;;  %v2865_v33 = vld [vmem:[%s3012_s19 + $0x2c] ss:$16 sps:$4 sm:$0xff]   ;;  %v444_v34 = vrot.slane %v2856_v23, %v3020_v17  ;;  %v606_v36 = vld [vmem:[%s3608_s2] sm:$0xff] }
  0x13   : > { %2567 = vmatprep.subr.mxu0 %v2261_v14  ;;  %2596 = vmatpush3.msra.mxu1 %v610_v13  ;;  %v460_v35 = vrot.slane %v2859_v25, %v3020_v17  ;;  %v469_v37 = vrot.slane %v2860_v29, %v3020_v17  ;;  %v485_v38 = vrot.slane %v2863_v31, %v3020_v17  ;;  %v2257_v45 = vld [vmem:[%s3608_s2 + $0x40] sm:$0xff]  ;;  %v2868_v56 = vld [vmem:[%s3048_s11 + $0x8] ss:$16 sps:$4 sm:$0xff]   ;;  %v2300_v5 = vld [vmem:[%s3608_s2 + $0xf0] sm:$0xff] }
  0x14   : > { %2568 = vmatpush3.msra.mxu0 %v2261_v14  ;;  %2597 = vmatprep.subr.mxu1 %v609_v15  ;;  %v476_v39 = vrot.slane %v2862_v30, %v3020_v17  ;;  %v493_v40 = vcombine.low %v437_v28, %v453_v32  ;;  %v494_v41 = vcombine.high %v437_v28, %v453_v32  ;;  %v2870_v57 = vld [vmem:[%s3048_s11 + $0x20] ss:$16 sps:$4 sm:$0xff]   ;;  %v2872_v61 = vld [vmem:[%s3048_s11 + $0x28] ss:$16 sps:$4 sm:$0xff]   ;;  %v2875_v18 = vld [vmem:[%s3048_s11 + $0xc] ss:$16 sps:$4 sm:$0xff]  }
  0x15   : > { %2569 = vmatprep.subr.mxu0 %v2260_v16  ;;  %2598 = vmatpush3.msra.mxu1 %v609_v15  ;;  %v492_v42 = vrot.slane %v2865_v33, %v3020_v17  ;;  %v525_v43 = vcombine.low %v469_v37, %v485_v38  ;;  %v526_v44 = vcombine.high %v469_v37, %v485_v38  ;;  %v3077_v62 = vld [vmem:[%s3608_s2 + $0xb8] sm:$0xff]  ;;  %v2299_v12 = vld [vmem:[%s3608_s2 + $0xe8] sm:$0xff]  ;;  %v2298_v14 = vld [vmem:[%s3608_s2 + $0xe0] sm:$0xff] }
  0x16   : > { %2570 = vmatpush3.msra.mxu0 %v2260_v16  ;;  %2599 = vmatprep.subr.mxu1 %v608_v19  ;;  %v501_v46 = vrot.slane %v493_v40, %v3038_v27  ;;  %v508_v47 = vrot.slane %v494_v41, %v3038_v27  ;;  %v509_v48 = vcombine.low %v444_v34, %v460_v35  ;;  %v2301_v63 = vld [vmem:[%s3608_s2 + $0xf8] sm:$0xff]  ;;  %v2874_v15 = vld [vmem:[%s3048_s11 + $0x4] ss:$16 sps:$4 sm:$0xff]  }
  0x17   : > { %2571 = vmatprep.subr.mxu0 %v2259_v20  ;;  %2600 = vmatpush3.msra.mxu1 %v608_v19  ;;  %v533_v49 = vrot.slane %v525_v43, %v3038_v27  ;;  %v540_v50 = vrot.slane %v526_v44, %v3038_v27  ;;  %v541_v51 = vcombine.low %v476_v39, %v492_v42  ;;  %v2876_v19 = vld [vmem:[%s3048_s11 + $0x24] ss:$16 sps:$4 sm:$0xff]   ;;  %v2297_v28 = vld [vmem:[%s3608_s2 + $0xd8] sm:$0xff] }
  0x18   : > { %2572 = vmatpush3.msra.mxu0 %v2259_v20  ;;  %2601 = vmatprep.subr.mxu1 %v607_v22  ;;  %v517_v58 = vrot.slane %v509_v48, %v3038_v27  ;;  %v510_v59 = vcombine.high %v444_v34, %v460_v35  ;;  %v542_v60 = vcombine.high %v476_v39, %v492_v42  ;;  %v2877_v20 = vld [vmem:[%s3048_s11 + $0x2c] ss:$16 sps:$4 sm:$0xff]   ;;  %v2296_v33 = vld [vmem:[%s3608_s2 + $0xd0] sm:$0xff]  ;;  %v2294_v41 = vld [vmem:[%s3608_s2 + $0xc0] sm:$0xff] }
  0x19   : > { %2573 = vmatprep.subr.mxu0 %v2258_v26  ;;  %2602 = vmatpush3.msra.mxu1 %v607_v22  ;;  %v557_v52 = vcombine.low %v501_v46, %v533_v49  ;;  %v559_v53 = vcombine.low %v508_v47, %v540_v50  ;;  %v558_v0 = vcombine.high %v501_v46, %v533_v49 }
  0x1a   : > { %2574 = vmatpush3.msra.mxu0 %v2258_v26  ;;  %2603 = vmatprep.subr.mxu1 %v606_v36  ;;  %v560_v1 = vcombine.high %v508_v47, %v540_v50  ;;  %v549_v2 = vrot.slane %v541_v51, %v3038_v27  ;;  %v301_v3 = vrot.slane %v2866_v55, %v3020_v17 }
  0x1b   : > { %2575 = vmatprep.subr.mxu0 %v2257_v45  ;;  %2604 = vmatpush3.msra.mxu1 %v606_v36  ;;  %v317_v4 = vrot.slane %v2868_v56, %v3020_v17  ;;  %v524_v6 = vrot.slane %v510_v59, %v3038_v27  ;;  %v333_v7 = vrot.slane %v2870_v57, %v3020_v17  ;;  %v2295_v36 = vld [vmem:[%s3608_s2 + $0xc8] sm:$0xff] }
  0x1c   : > { %2605 = vmatprep.mubr.f32.mxu1 %v2936_v54  ;;  %2576 = vmatpush3.msra.mxu0 %v2257_v45  ;;  %v349_v8 = vrot.slane %v2872_v61, %v3020_v17  ;;  %v561_v9 = vcombine.low %v517_v58, %v549_v2  ;;  %v562_v10 = vcombine.high %v517_v58, %v549_v2  ;;  %v2284_v58 = vld [vmem:[%s3608_s2 + $0xb0] sm:$0xff]  ;;  %v2283_v61 = vld [vmem:[%s3608_s2 + $0xa8] sm:$0xff] }
  0x1d   : > { %573 = vrot.lane.b32.xlu0 %v557_v52, %s2937_s22  ;;  %577 = vrot.lane.b32.xlu1 %v559_v53, %s2937_s22  ;;  %v556_v11 = vrot.slane %v542_v60, %v3038_v27  ;;  %v357_v13 = vcombine.low %v301_v3, %v317_v4  ;;  %v358_v24 = vcombine.high %v301_v3, %v317_v4  ;;  %v2281_v3 = vld [vmem:[%s3608_s2 + $0x98] sm:$0xff] }
  0x1e   : > { %2577 = vmatprep.mubr.f32.mxu0 %v2936_v54  ;;  %2606 = vmatmul.mubr.f32.vlgmr.msra.gmra.mxu1 %v2936_v54  ;;  %v389_v16 = vcombine.low %v333_v7, %v349_v8  ;;  %v390_v25 = vcombine.high %v333_v7, %v349_v8  ;;  %v308_v26 = vrot.slane %v2874_v15, %v3020_v17  ;;  %v2280_v7 = vld [vmem:[%s3608_s2 + $0x90] sm:$0xff]  ;;  %v2313_v15 = vld [vmem:[%s3608_s2 + $0x120] sm:$0xff] }
  0x1f   : > { %2617 = vmatprep.subr.mxu0 %v3077_v62  ;;  %2645 = vmatprep.subr.mxu1 %v2301_v63  ;;  %v563_v21 = vcombine.low %v524_v6, %v556_v11  ;;  %v564_v22 = vcombine.high %v524_v6, %v556_v11  ;;  %v365_v23 = vrot.slane %v357_v13, %v3038_v27  ;;  %v2278_v11 = vld [vmem:[%s3608_s2 + $0x80] sm:$0xff]  ;;  %v2315_v13 = vld [vmem:[%s3608_s2 + $0x130] sm:$0xff] }
  0x20   : > { %2646 = vmatpush3.msra.mxu1 %v2301_v63  ;;  %v397_v29 = vrot.slane %v389_v16, %v3038_v27  ;;  %v324_v30 = vrot.slane %v2875_v18, %v3020_v17  ;;  %v340_v31 = vrot.slane %v2876_v19, %v3020_v17  ;;  %v356_v32 = vrot.slane %v2877_v20, %v3020_v17  ;;  %v2312_v18 = vld [vmem:[%s3608_s2 + $0x118] sm:$0xff]  ;;  %v2311_v19 = vld [vmem:[%s3608_s2 + $0x110] sm:$0xff] }
  0x21   : > { %575 = vrot.lane.b32.xlu0 %v558_v0, %s2937_s22  ;;  %579 = vrot.lane.b32.xlu1 %v560_v1, %s2937_s22  ;;  %v372_v34 = vrot.slane %v358_v24, %v3038_v27  ;;  %v404_v38 = vrot.slane %v390_v25, %v3038_v27  ;;  %v2282_v1 = vld [vmem:[%s3608_s2 + $0xa0] sm:$0xff]  ;;  %v2339_v24 = vld [vmem:[%s3609_s3 + $0x78] sm:$0xff] }
  0x22   : > { %2647 = vmatprep.subr.mxu1 %v2300_v5  ;;  %v3126_v35 = vcombine.high %v365_v23, %v397_v29  ;;  %v3131_v37 = vcombine.low %v365_v23, %v397_v29  ;;  %v373_v39 = vcombine.low %v308_v26, %v324_v30  ;;  %v405_v40 = vcombine.low %v340_v31, %v356_v32  ;;  %v1377_v23 = vld [vmem:[%s3609_s3 + $0x38] sm:$0xff]  ;;  %v1376_v25 = vld [vmem:[%s3609_s3 + $0x30] sm:$0xff]  ;;  %v2337_v29 = vld [vmem:[%s3609_s3 + $0x68] sm:$0xff] }
  0x23   : > { %2648 = vmatpush3.msra.mxu1 %v2300_v5  ;;  %v3141_v42 = vcombine.high %v372_v34, %v404_v38  ;;  %v374_v43 = vcombine.high %v308_v26, %v324_v30  ;;  %v3143_v44 = vcombine.low %v372_v34, %v404_v38  ;;  %v406_v47 = vcombine.high %v340_v31, %v356_v32  ;;  %v2338_v26 = vld [vmem:[%s3609_s3 + $0x70] sm:$0xff]  ;;  %v1374_v30 = vld [vmem:[%s3609_s3 + $0x20] sm:$0xff]  ;;  %v1373_v32 = vld [vmem:[%s3609_s3 + $0x18] sm:$0xff] }
  0x24   : > { %2649 = vmatprep.subr.mxu1 %v2299_v12  ;;  %v381_v45 = vrot.slane %v373_v39, %v3038_v27  ;;  %v413_v46 = vrot.slane %v405_v40, %v3038_v27  ;;  %v2336_v31 = vld [vmem:[%s3609_s3 + $0x60] sm:$0xff]  ;;  %v1372_v34 = vld [vmem:[%s3609_s3 + $0x10] sm:$0xff]  ;;  %v1371_v38 = vld [vmem:[%s3609_s3 + $0x8] sm:$0xff] }
  0x25   : > { %581 = vrot.lane.b32.xlu0 %v561_v9, %s2937_s22  ;;  %583 = vrot.lane.b32.xlu1 %v562_v10, %s2937_s22  ;;  %v388_v50 = vrot.slane %v374_v43, %v3038_v27  ;;  %v420_v51 = vrot.slane %v406_v47, %v3038_v27  ;;  %v2279_v9 = vld [vmem:[%s3608_s2 + $0x88] sm:$0xff]  ;;  %v1370_v40 = vld [vmem:[%s3609_s3] sm:$0xff] }
  0x26   : > { %2650 = vmatpush3.msra.mxu1 %v2299_v12  ;;  %v3151_v48 = vcombine.high %v381_v45, %v413_v46  ;;  %v3153_v49 = vcombine.low %v381_v45, %v413_v46  ;;  %v2316_v12 = vld [vmem:[%s3608_s2 + $0x138] sm:$0xff]  ;;  %v2333_v39 = vld [vmem:[%s3609_s3 + $0x48] sm:$0xff] }
  0x27   : > { %2651 = vmatprep.subr.mxu1 %v2298_v14  ;;  %v3161_v52 = vcombine.high %v388_v50, %v420_v51  ;;  %v3163_v53 = vcombine.low %v388_v50, %v420_v51 }
  0x28   : > { %2652 = vmatpush3.msra.mxu1 %v2298_v14  ;;  %v2314_v14 = vld [vmem:[%s3608_s2 + $0x128] sm:$0xff] }
  0x29   : > { %585 = vrot.lane.b32.xlu0 %v563_v21, %s2937_s22  ;;  %587 = vrot.lane.b32.xlu1 %v564_v22, %s2937_s22  ;;  %v2310_v21 = vld [vmem:[%s3608_s2 + $0x108] sm:$0xff]  ;;  %v2309_v22 = vld [vmem:[%s3608_s2 + $0x100] sm:$0xff] }
  0x2a   : > { %2653 = vmatprep.subr.mxu1 %v2297_v28 }
  0x2b   : > { %2654 = vmatpush3.msra.mxu1 %v2297_v28  ;;  %v1375_v28 = vld [vmem:[%s3609_s3 + $0x28] sm:$0xff] }
  0x2c   : > { %2655 = vmatprep.subr.mxu1 %v2296_v33 }
  0x2d   : > { %2656 = vmatpush3.msra.mxu1 %v2296_v33  ;;  %1300 = vrot.lane.b32.xlu1 %v3126_v35, %s2937_s22  ;;  %v2335_v33 = vld [vmem:[%s3609_s3 + $0x58] sm:$0xff] }
  0x2e   : > { %2657 = vmatprep.subr.mxu1 %v2295_v36  ;;  %1298 = vrot.lane.b32.xlu0 %v3131_v37, %s2937_s22 }
  0x2f   : > { %2658 = vmatpush3.msra.mxu1 %v2295_v36  ;;  %v2334_v36 = vld [vmem:[%s3609_s3 + $0x50] sm:$0xff] }
  0x30   : > { %2659 = vmatprep.subr.mxu1 %v2294_v41 }
  0x31   : > { %2660 = vmatpush3.msra.mxu1 %v2294_v41  ;;  %1304 = vrot.lane.b32.xlu1 %v3141_v42, %s2937_s22 }
  0x32   : > { %1302 = vrot.lane.b32.xlu0 %v3143_v44, %s2937_s22  ;;  %2701 = vmatprep.subr.mxu1 %v2339_v24 }
  0x35   : > { %1308 = vrot.lane.b32.xlu1 %v3151_v48, %s2937_s22 }
  0x36   : > { %1306 = vrot.lane.b32.xlu0 %v3153_v49, %s2937_s22 }
  0x39   : > { %1312 = vrot.lane.b32.xlu1 %v3161_v52, %s2937_s22 }
  0x3a   : > { %1310 = vrot.lane.b32.xlu0 %v3163_v53, %s2937_s22  ;;  %s275_s22 = scalar_lea.vmem %s3612_s6, %s3000_s12 }
  0x8f   : > { %v3169_v55 = vpop.permute.xlu0 %573  ;;  %v3171_v56 = vpop.permute.xlu1 %577 }
  0x90   : > { %v598_v57 = vsel %vm597_vm0, %v3131_v37, %v3169_v55  ;;  %v3185_v59 = vsel %vm597_vm0, %v3143_v44, %v3171_v56 }
  0x91   : > { %2578 = vmatmul.mubr.msk.f32.vlgmr.msra.gmra.mxu0 %vm623_vm1, %v598_v57  ;;  %2608 = vmatprep.mubr.msk.f32.mxu1 %vm623_vm1, %v598_v57 }
  0x92   : > { %2618 = vmatpush3.msra.mxu0 %v3077_v62 }
  0x93   : > { %v3187_v60 = vpop.permute.xlu0 %575  ;;  %2619 = vmatprep.subr.mxu0 %v2284_v58  ;;  %v3192_v63 = vpop.permute.xlu1 %579 }
  0x94   : > { %v599_v0 = vsel %vm597_vm0, %v3126_v35, %v3187_v60  ;;  %2620 = vmatpush3.msra.mxu0 %v2284_v58  ;;  %v3202_v62 = vsel %vm597_vm0, %v3141_v42, %v3192_v63 }
  0x95   : > { %2580 = vmatprep.mubr.msk.f32.mxu0 %vm623_vm1, %v599_v0  ;;  %2609 = vmatmul.mubr.msk.f32.gmra.mxu1 %vm623_vm1, %v599_v0 }
  0x96   : > { %2621 = vmatprep.subr.mxu0 %v2283_v61  ;;  %2581 = vmatmul.mubr.msk.f32.gmra.mxu0 %vm623_vm1, %v3185_v59 }
  0x97   : > { %2611 = vmatprep.mubr.msk.f32.mxu1 %vm623_vm1, %v3185_v59  ;;  %2622 = vmatpush3.msra.mxu0 %v2283_v61  ;;  %v3211_v2 = vpop.permute.xlu0 %581  ;;  %v3216_v4 = vpop.permute.xlu1 %583 }
  0x98   : > { %2623 = vmatprep.subr.mxu0 %v2282_v1  ;;  %v3221_v5 = vsel %vm597_vm0, %v3153_v49, %v3211_v2  ;;  %2583 = vmatprep.mubr.msk.f32.mxu0 %vm623_vm1, %v3202_v62  ;;  %v3230_v6 = vsel %vm597_vm0, %v3151_v48, %v3216_v4 }
  0x99   : > { %2624 = vmatpush3.msra.mxu0 %v2282_v1  ;;  %2612 = vmatmul.mubr.msk.f32.gmra.mxu1 %vm623_vm1, %v3202_v62 }
  0x9a   : > { %2625 = vmatprep.subr.mxu0 %v2281_v3  ;;  %2584 = vmatmul.mubr.msk.f32.gmra.mxu0 %vm623_vm1, %v3221_v5 }
  0x9b   : > { %2614 = vmatprep.mubr.msk.f32.mxu1 %vm623_vm1, %v3221_v5  ;;  %2626 = vmatpush3.msra.mxu0 %v2281_v3  ;;  %v3239_v8 = vpop.permute.xlu0 %585  ;;  %v3280_v16 = vpop.permute.xlu1 %587 }
  0x9c   : > { %2627 = vmatprep.subr.mxu0 %v2280_v7  ;;  %v604_v10 = vsel %vm597_vm0, %v3163_v53, %v3239_v8  ;;  %2586 = vmatprep.mubr.msk.f32.mxu0 %vm623_vm1, %v3230_v6  ;;  %v605_v20 = vsel %vm597_vm0, %v3161_v52, %v3280_v16 }
  0x9d   : > { %2628 = vmatpush3.msra.mxu0 %v2280_v7  ;;  %2615 = vmatmul.mubr.msk.f32.gmra.mxu1 %vm623_vm1, %v3230_v6 }
  0x9e   : > { %2629 = vmatprep.subr.mxu0 %v2279_v9  ;;  %2587 = vmatmul.mubr.msk.f32.gmra.mxu0 %vm623_vm1, %v604_v10 }
  0x9f   : > { %2630 = vmatpush3.msra.mxu0 %v2279_v9  ;;  %2661 = vmatprep.mubr.msk.f32.mxu1 %vm623_vm1, %v599_v0 }
  0xa0   : > { %2631 = vmatprep.subr.mxu0 %v2278_v11  ;;  %2633 = vmatprep.mubr.msk.f32.mxu0 %vm623_vm1, %v598_v57 }
  0xa1   : > { %2632 = vmatpush3.msra.mxu0 %v2278_v11  ;;  %2662 = vmatmul.mubr.msk.f32.vlgmr.msra.gmra.mxu1 %vm623_vm1, %v3185_v59 }
  0xa2   : > { %2673 = vmatprep.subr.mxu0 %v2316_v12  ;;  %2634 = vmatmul.mubr.msk.f32.vlgmr.msra.gmra.mxu0 %vm623_vm1, %v599_v0 }
  0xa3   : > { %2664 = vmatprep.mubr.msk.f32.mxu1 %vm623_vm1, %v3202_v62  ;;  %2674 = vmatpush3.msra.mxu0 %v2316_v12 }
  0xa4   : > { %2636 = vmatprep.mubr.msk.f32.mxu0 %vm623_vm1, %v3185_v59  ;;  %2675 = vmatprep.subr.mxu0 %v2315_v13 }
  0xa5   : > { %2676 = vmatpush3.msra.mxu0 %v2315_v13  ;;  %2665 = vmatmul.mubr.msk.f32.gmra.mxu1 %vm623_vm1, %v3221_v5 }
  0xa6   : > { %2677 = vmatprep.subr.mxu0 %v2314_v14  ;;  %2637 = vmatmul.mubr.msk.f32.gmra.mxu0 %vm623_vm1, %v3202_v62 }
  0xa7   : > { %2667 = vmatprep.mubr.msk.f32.mxu1 %vm623_vm1, %v3230_v6  ;;  %2678 = vmatpush3.msra.mxu0 %v2314_v14 }
  0xa8   : > { %2639 = vmatprep.mubr.msk.f32.mxu0 %vm623_vm1, %v3221_v5  ;;  %2679 = vmatprep.subr.mxu0 %v2313_v15 }
  0xa9   : > { %2680 = vmatpush3.msra.mxu0 %v2313_v15  ;;  %2668 = vmatmul.mubr.msk.f32.gmra.mxu1 %vm623_vm1, %v604_v10 }
  0xaa   : > { %2681 = vmatprep.subr.mxu0 %v2312_v18  ;;  %2640 = vmatmul.mubr.msk.f32.gmra.mxu0 %vm623_vm1, %v3230_v6 }
  0xab   : > { %2682 = vmatpush3.msra.mxu0 %v2312_v18  ;;  %2642 = vmatprep.mubr.msk.f32.mxu0 %vm623_vm1, %v604_v10 }
  0xac   : > { %2683 = vmatprep.subr.mxu0 %v2311_v19  ;;  %2670 = vmatprep.mubr.msk.f32.mxu1 %vm623_vm1, %v605_v20 }
  0xad   : > { %2684 = vmatpush3.msra.mxu0 %v2311_v19  ;;  %2671 = vmatmul.mubr.f32.gmra.mxu1 %v2936_v54 }
  0xae   : > { %2685 = vmatprep.subr.mxu0 %v2310_v21  ;;  %2643 = vmatmul.mubr.msk.f32.gmra.mxu0 %vm623_vm1, %v605_v20 }
  0xaf   : > { %2686 = vmatpush3.msra.mxu0 %v2310_v21  ;;  %2689 = vmatprep.mubr.msk.f32.mxu0 %vm623_vm1, %v3185_v59 }
  0xb0   : > { %2687 = vmatprep.subr.mxu0 %v2309_v22  ;;  %2717 = vmatprep.mubr.f32.mxu1 %v2936_v54 }
  0xb1   : > { %2688 = vmatpush3.msra.mxu0 %v2309_v22  ;;  %2702 = vmatpush3.msra.mxu1 %v2339_v24 }
  0xb2   : > { %2690 = vmatmul.mubr.msk.f32.vlgmr.msra.gmra.mxu0 %vm623_vm1, %v3202_v62  ;;  %2729 = vmatprep.subr.mxu0 %v1377_v23 }
  0xb3   : > { %2692 = vmatprep.mubr.msk.f32.mxu0 %vm623_vm1, %v3221_v5  ;;  %2730 = vmatpush3.msra.mxu0 %v1377_v23 }
  0xb4   : > { %2731 = vmatprep.subr.mxu0 %v1376_v25  ;;  %2703 = vmatprep.subr.mxu1 %v2338_v26 }
  0xb5   : > { %2732 = vmatpush3.msra.mxu0 %v1376_v25  ;;  %2704 = vmatpush3.msra.mxu1 %v2338_v26 }
  0xb6   : > { %2693 = vmatmul.mubr.msk.f32.gmra.mxu0 %vm623_vm1, %v3230_v6  ;;  %2733 = vmatprep.subr.mxu0 %v1375_v28 }
  0xb7   : > { %2695 = vmatprep.mubr.msk.f32.mxu0 %vm623_vm1, %v604_v10  ;;  %2705 = vmatprep.subr.mxu1 %v2337_v29 }
  0xb8   : > { %2734 = vmatpush3.msra.mxu0 %v1375_v28  ;;  %2706 = vmatpush3.msra.mxu1 %v2337_v29 }
  0xb9   : > { %2735 = vmatprep.subr.mxu0 %v1374_v30  ;;  %2707 = vmatprep.subr.mxu1 %v2336_v31 }
  0xba   : > { %2696 = vmatmul.mubr.msk.f32.gmra.mxu0 %vm623_vm1, %v605_v20  ;;  %2708 = vmatpush3.msra.mxu1 %v2336_v31 }
  0xbb   : > { %2698 = vmatprep.mubr.f32.mxu0 %v2936_v54  ;;  %2736 = vmatpush3.msra.mxu0 %v1374_v30 }
  0xbc   : > { %2737 = vmatprep.subr.mxu0 %v1373_v32  ;;  %2709 = vmatprep.subr.mxu1 %v2335_v33 }
  0xbd   : > { %2738 = vmatpush3.msra.mxu0 %v1373_v32  ;;  %2710 = vmatpush3.msra.mxu1 %v2335_v33  ;;  %v2323_v33 = vld [vmem:[%s3610_s4] ss:$0 sm:$0xff] }
  0xbe   : > { %2699 = vmatmul.mubr.f32.gmra.mxu0 %v2936_v54  ;;  %2739 = vmatprep.subr.mxu0 %v1372_v34 }
  0xbf   : > { %2745 = vmatprep.mubr.f32.mxu0 %v2936_v54  ;;  %2711 = vmatprep.subr.mxu1 %v2334_v36 }
  0xc0   : > { %2740 = vmatpush3.msra.mxu0 %v1372_v34  ;;  %2712 = vmatpush3.msra.mxu1 %v2334_v36 }
  0xc1   : > { %2741 = vmatprep.subr.mxu0 %v1371_v38  ;;  %2713 = vmatprep.subr.mxu1 %v2333_v39 }
  0xc2   : > { %2742 = vmatpush3.msra.mxu0 %v1371_v38  ;;  %2714 = vmatpush3.msra.mxu1 %v2333_v39 }
  0xc3   : > { %2743 = vmatprep.subr.mxu0 %v1370_v40 }
  0xc4   : > { %2744 = vmatpush3.msra.mxu0 %v1370_v40 }
  0xc5   : > { %2746 = vmatmul.mubr.f32.vlgmr.msra.gmra.mxu0 %v2936_v54 }
  0xde   : > { %v2607_v41 = vpop.f32.mrf.mxu1 }
  0xe0   : > { %v819_v45 = vpop.f32.mrf.mxu1 }
 0x151   : > { %v2579_v43 = vpop.f32.mrf.mxu0 }
 0x152   : > { %v825_v15 = vadd.f32 %v2607_v41, %v2579_v43 }
 0x153   : > { %v714_v46 = vpop.f32.mrf.mxu0 }
 0x154   : > { %v820_v19 = vadd.f32 %v819_v45, %v714_v46 }
 0x155   : > { %v2610_v47 = vpop.f32.mrf.mxu1 }
 0x156   : > { %v2582_v50 = vpop.f32.mrf.mxu0 }
 0x157   : > { %v829_v51 = vpop.f32.mrf.mxu1  ;;  %v835_v23 = vadd.f32 %v2610_v47, %v2582_v50 }
 0x158   : > { %v724_v57 = vpop.f32.mrf.mxu0 }
 0x159   : > { %v2613_v58 = vpop.f32.mrf.mxu1  ;;  %v830_v26 = vadd.f32 %v829_v51, %v724_v57 }
 0x15a   : > { %v2585_v59 = vpop.f32.mrf.mxu0 }
 0x15b   : > { %v839_v61 = vpop.f32.mrf.mxu1  ;;  %v845_v31 = vadd.f32 %v2613_v58, %v2585_v59 }
 0x15c   : > { %v734_v0 = vpop.f32.mrf.mxu0 }
 0x15d   : > { %v2616_v62 = vpop.f32.mrf.mxu1  ;;  %v840_v39 = vadd.f32 %v839_v61, %v734_v0 }
 0x15e   : > { %v2588_v1 = vpop.f32.mrf.mxu0 }
 0x15f   : > { %v849_v3 = vpop.f32.mrf.mxu1  ;;  %v855_v50 = vadd.f32 %v2616_v62, %v2588_v1 }
 0x160   : > { %v744_v5 = vpop.f32.mrf.mxu0 }
 0x161   : > { %v2663_v6 = vpop.f32.mrf.mxu1 }
 0x162   : > { %v2635_v7 = vpop.f32.mrf.mxu0 }
 0x163   : > { %v1058_v10 = vpop.f32.mrf.mxu1  ;;  %v976_v20 = vadd.f32 %v2635_v7, %v825_v15 }
 0x164   : > { %v936_v9 = vpop.f32.mrf.mxu0 }
 0x165   : > { %v2666_v13 = vpop.f32.mrf.mxu1  ;;  %v975_v24 = vadd.f32 %v936_v9, %v820_v19  ;;  %v1098_v30 = vadd.f32 %v2663_v6, %v976_v20 }
 0x166   : > { %v2638_v11 = vpop.f32.mrf.mxu0 }
 0x167   : > { %v1068_v21 = vpop.f32.mrf.mxu1  ;;  %v978_v28 = vadd.f32 %v2638_v11, %v835_v23  ;;  %v1097_v38 = vadd.f32 %v1058_v10, %v975_v24  ;;  %v850_v11 = vadd.f32 %v849_v3, %v744_v5 }
 0x168   : > { %v946_v12 = vpop.f32.mrf.mxu0 }
 0x169   : > { %v2669_v29 = vpop.f32.mrf.mxu1  ;;  %v977_v34 = vadd.f32 %v946_v12, %v830_v26  ;;  %v1100_v47 = vadd.f32 %v2666_v13, %v978_v28 }
 0x16a   : > { %v2641_v14 = vpop.f32.mrf.mxu0 }
 0x16b   : > { %v980_v40 = vadd.f32 %v2641_v14, %v845_v31  ;;  %v1078_v43 = vpop.f32.mrf.mxu1  ;;  %v1099_v9 = vadd.f32 %v1068_v21, %v977_v34 }
 0x16c   : > { %v956_v18 = vpop.f32.mrf.mxu0 }
 0x16d   : > { %v979_v51 = vadd.f32 %v956_v18, %v840_v39  ;;  %v2672_v6 = vpop.f32.mrf.mxu1  ;;  %v1102_v19 = vadd.f32 %v2669_v29, %v980_v40 }
 0x16e   : > { %v2644_v22 = vpop.f32.mrf.mxu0 }
 0x16f   : > { %v982_v15 = vadd.f32 %v2644_v22, %v855_v50  ;;  %v1101_v23 = vadd.f32 %v1078_v43, %v979_v51  ;;  %v1088_v13 = vpop.f32.mrf.mxu1 }
 0x170   : > { %v966_v25 = vpop.f32.mrf.mxu0 }
 0x171   : > { %v981_v14 = vadd.f32 %v966_v25, %v850_v11  ;;  %v1104_v24 = vadd.f32 %v2672_v6, %v982_v15 }
 0x172   : > { %v2691_v32 = vpop.f32.mrf.mxu0 }
 0x173   : > { %v1220_v36 = vadd.f32 %v2691_v32, %v1098_v30  ;;  %v1103_v22 = vadd.f32 %v1088_v13, %v981_v14  ;;  %v2372_v13 = vld [vmem:[%s3609_s3 + $0xd8] sm:$0xff] }
 0x174   : > { %v1180_v41 = vpop.f32.mrf.mxu0 }
 0x175   : > { %v1235_v45 = vadd.f32 %v2323_v33, %v1220_v36  ;;  %v1219_v46 = vadd.f32 %v1180_v41, %v1097_v38 }
 0x176   : > { %v2694_v57 = vpop.f32.mrf.mxu0 }
 0x177   : > { %v2325_v58 = vmul.f32 -1.442695, %v1235_v45  ;;  %v1234_v59 = vadd.f32 %v2323_v33, %v1219_v46  ;;  %v1222_v7 = vadd.f32 %v2694_v57, %v1100_v47  ;;  %v2332_v57 = vld [vmem:[%s3609_s3 + $0x40] sm:$0xff] }
 0x178   : > { %v1190_v12 = vpop.f32.mrf.mxu0  ;;  %2715 = vmatprep.subr.mxu1 %v2332_v57 }
 0x179   : > { %2878 = vpow2.f32 %v2325_v58  ;;  %v2324_v61 = vmul.f32 -1.442695, %v1234_v59  ;;  %v1237_v0 = vadd.f32 %v2323_v33, %v1222_v7  ;;  %v1221_v10 = vadd.f32 %v1190_v12, %v1099_v9  ;;  %v1301_v59 = vpop.permute.xlu1 %1300  ;;  %2716 = vmatpush3.msra.mxu1 %v2332_v57  ;;  %v3380_v7 = vld [vmem:[%s3609_s3 + $0xb8] sm:$0xff]  ;;  %v2375_v9 = vld [vmem:[%s3609_s3 + $0xf0] sm:$0xff]  ;;  %v1299_v12 = vpop.permute.xlu0 %1298 }
 0x17a   : > { %v2697_v20 = vpop.f32.mrf.mxu0  ;;  %2757 = vmatprep.subr.mxu1 %v3380_v7 }
 0x17b   : > { %2880 = vpow2.f32 %v2324_v61  ;;  %v2327_v62 = vmul.f32 -1.442695, %v1237_v0  ;;  %v1236_v1 = vadd.f32 %v2323_v33, %v1221_v10  ;;  %v1224_v18 = vadd.f32 %v2697_v20, %v1102_v19  ;;  %v2374_v19 = vld [vmem:[%s3609_s3 + $0xe8] sm:$0xff]  ;;  %v2373_v10 = vld [vmem:[%s3609_s3 + $0xe0] sm:$0xff] }
 0x17c   : > { %v1200_v26 = vpop.f32.mrf.mxu0 }
 0x17d   : > { %2882 = vpow2.f32 %v2327_v62  ;;  %v2326_v21 = vmul.f32 -1.442695, %v1236_v1  ;;  %v1239_v3 = vadd.f32 %v2323_v33, %v1224_v18  ;;  %v1223_v5 = vadd.f32 %v1200_v26, %v1101_v23  ;;  %v1305_v23 = vpop.permute.xlu1 %1304  ;;  %v1303_v18 = vpop.permute.xlu0 %1302 }
 0x17e   : > { %v2700_v28 = vpop.f32.mrf.mxu0 }
 0x17f   : > { %2884 = vpow2.f32 %v2326_v21  ;;  %v2329_v29 = vmul.f32 -1.442695, %v1239_v3  ;;  %v1238_v30 = vadd.f32 %v2323_v33, %v1223_v5  ;;  %v1226_v31 = vadd.f32 %v2700_v28, %v1104_v24  ;;  %v2371_v24 = vld [vmem:[%s3609_s3 + $0xd0] sm:$0xff]  ;;  %v2370_v5 = vld [vmem:[%s3609_s3 + $0xc8] sm:$0xff] }
 0x180   : > { %v1210_v25 = vpop.f32.mrf.mxu0 }
 0x181   : > { %2886 = vpow2.f32 %v2329_v29  ;;  %v2328_v32 = vmul.f32 -1.442695, %v1238_v30  ;;  %v1241_v34 = vadd.f32 %v2323_v33, %v1226_v31  ;;  %v1225_v36 = vadd.f32 %v1210_v25, %v1103_v22  ;;  %v1309_v28 = vpop.permute.xlu1 %1308  ;;  %v2369_v30 = vld [vmem:[%s3609_s3 + $0xc0] sm:$0xff]  ;;  %v1307_v25 = vpop.permute.xlu0 %1306 }
 0x183   : > { %2888 = vpow2.f32 %v2328_v32  ;;  %v2331_v38 = vmul.f32 -1.442695, %v1241_v34  ;;  %v1240_v39 = vadd.f32 %v2323_v33, %v1225_v36  ;;  %v2376_v33 = vld [vmem:[%s3609_s3 + $0xf8] sm:$0xff] }
 0x184   : > { %2785 = vmatprep.subr.mxu0 %v2376_v33 }
 0x185   : > { %2890 = vpow2.f32 %v2331_v38  ;;  %v2330_v40 = vmul.f32 -1.442695, %v1240_v39  ;;  %2786 = vmatpush3.msra.mxu0 %v2376_v33  ;;  %v1313_v39 = vpop.permute.xlu1 %1312  ;;  %v2359_v33 = vld [vmem:[%s3609_s3 + $0xb0] sm:$0xff] }
 0x186   : > { %v2879_v41 = vpop.eup %2878  ;;  %2787 = vmatprep.subr.mxu0 %v2375_v9 }
 0x187   : > { %v1267_v43 = vadd.f32 1.0, %v2879_v41  ;;  %2892 = vpow2.f32 %v2330_v40  ;;  %2788 = vmatpush3.msra.mxu0 %v2375_v9 }
 0x188   : > { %v2881_v45 = vpop.eup %2880  ;;  %2789 = vmatprep.subr.mxu0 %v2374_v19 }
 0x189   : > { %2894 = vrcp.f32 %v1267_v43  ;;  %v1266_v46 = vadd.f32 1.0, %v2881_v45  ;;  %2790 = vmatpush3.msra.mxu0 %v2374_v19  ;;  %v1311_v43 = vpop.permute.xlu0 %1310 }
 0x18a   : > { %v2883_v47 = vpop.eup %2882  ;;  %2791 = vmatprep.subr.mxu0 %v2373_v10 }
 0x18b   : > { %2896 = vrcp.f32 %v1266_v46  ;;  %v1269_v50 = vadd.f32 1.0, %v2883_v47  ;;  %2792 = vmatpush3.msra.mxu0 %v2373_v10  ;;  %v2391_v10 = vld [vmem:[%s3609_s3 + $0x138] sm:$0xff] }
 0x18c   : > { %v2885_v51 = vpop.eup %2884  ;;  %2793 = vmatprep.subr.mxu0 %v2372_v13 }
 0x18d   : > { %2898 = vrcp.f32 %v1269_v50  ;;  %v1268_v6 = vadd.f32 1.0, %v2885_v51  ;;  %2794 = vmatpush3.msra.mxu0 %v2372_v13  ;;  %v2387_v13 = vld [vmem:[%s3609_s3 + $0x118] sm:$0xff] }
 0x18e   : > { %v2887_v58 = vpop.eup %2886  ;;  %2795 = vmatprep.subr.mxu0 %v2371_v24 }
 0x18f   : > { %2900 = vrcp.f32 %v1268_v6  ;;  %v1271_v11 = vadd.f32 1.0, %v2887_v58  ;;  %2796 = vmatpush3.msra.mxu0 %v2371_v24  ;;  %v2384_v24 = vld [vmem:[%s3609_s3 + $0x100] sm:$0xff] }
 0x190   : > { %v2889_v15 = vpop.eup %2888  ;;  %2797 = vmatprep.subr.mxu0 %v2370_v5 }
 0x191   : > { %2902 = vrcp.f32 %v1271_v11  ;;  %v1270_v61 = vadd.f32 1.0, %v2889_v15  ;;  %2798 = vmatpush3.msra.mxu0 %v2370_v5  ;;  %v2356_v15 = vld [vmem:[%s3609_s3 + $0x98] sm:$0xff] }
 0x192   : > { %v2891_v0 = vpop.eup %2890  ;;  %2799 = vmatprep.subr.mxu0 %v2369_v30 }
 0x193   : > { %2904 = vrcp.f32 %v1270_v61  ;;  %v1273_v14 = vadd.f32 1.0, %v2891_v0  ;;  %2800 = vmatpush3.msra.mxu0 %v2369_v30  ;;  %v2354_v61 = vld [vmem:[%s3609_s3 + $0x88] sm:$0xff] }
 0x194   : > { %v2893_v20 = vpop.eup %2892 }
 0x195   : > { %2906 = vrcp.f32 %v1273_v14  ;;  %v1272_v62 = vadd.f32 1.0, %v2893_v20  ;;  %v2389_v14 = vld [vmem:[%s3609_s3 + $0x128] sm:$0xff] }
 0x196   : > { %v3395_v1 = vpop.eup %2894 }
 0x197   : > { %2908 = vrcp.f32 %v1272_v62  ;;  %v1323_v26 = vmul.f32 %v3395_v1, %v1301_v59 }
 0x198   : > { %v3401_v21 = vpop.eup %2896 }
 0x199   : > { %v1322_v3 = vmul.f32 %v3401_v21, %v1299_v12  ;;  %1340 = vrot.lane.b32.xlu1 %v1323_v26, %s2938_s27  ;;  %v2355_v12 = vld [vmem:[%s3609_s3 + $0x90] sm:$0xff]  ;;  %v2747_v26 = vpop.f32.mrf.mxu0 }
 0x19a   : > { %v3407_v22 = vpop.eup %2898 }
 0x19b   : > { %v1325_v29 = vmul.f32 %v3407_v22, %v1305_v23  ;;  %1338 = vrot.lane.b32.xlu0 %v1322_v3, %s2938_s27  ;;  %v2388_v23 = vld [vmem:[%s3609_s3 + $0x120] sm:$0xff]  ;;  %v1579_v3 = vpop.f32.mrf.mxu0 }
 0x19c   : > { %v3413_v31 = vpop.eup %2900 }
 0x19d   : > { %v1324_v32 = vmul.f32 %v3413_v31, %v1303_v18  ;;  %1344 = vrot.lane.b32.xlu1 %v1325_v29, %s2938_s27  ;;  %v2386_v18 = vld [vmem:[%s3609_s3 + $0x110] sm:$0xff] }
 0x19e   : > { %v3416_v34 = vpop.eup %2902 }
 0x19f   : > { %v1327_v36 = vmul.f32 %v3416_v34, %v1309_v28  ;;  %1342 = vrot.lane.b32.xlu0 %v1324_v32, %s2938_s27 }
 0x1a0   : > { %v3419_v38 = vpop.eup %2904 }
 0x1a1   : > { %v1326_v40 = vmul.f32 %v3419_v38, %v1307_v25  ;;  %1348 = vrot.lane.b32.xlu1 %v1327_v36, %s2938_s27 }
 0x1a2   : > { %v3422_v41 = vpop.eup %2906 }
 0x1a3   : > { %v1329_v45 = vmul.f32 %v3422_v41, %v1313_v39  ;;  %1346 = vrot.lane.b32.xlu0 %v1326_v40, %s2938_s27 }
 0x1a4   : > { %v3425_v46 = vpop.eup %2908 }
 0x1a5   : > { %v1328_v47 = vmul.f32 %v3425_v46, %v1311_v43  ;;  %1352 = vrot.lane.b32.xlu1 %v1329_v45, %s2938_s27 }
 0x1a7   : > { %1350 = vrot.lane.b32.xlu0 %v1328_v47, %s2938_s27 }
 0x20b   : > { %v1341_v50 = vpop.permute.xlu1 %1340 }
 0x20c   : > { %v1363_v6 = vsel %vm597_vm0, %v1341_v50, %v3187_v60 }
 0x20d   : > { %v1339_v51 = vpop.permute.xlu0 %1338 }
 0x20e   : > { %v1362_v57 = vsel %vm597_vm0, %v1339_v51, %v3169_v55  ;;  %v2358_v55 = vld [vmem:[%s3609_s3 + $0xa8] sm:$0xff] }
 0x20f   : > { %2718 = vmatmul.mubr.msk.f32.vlgmr.msra.gmra.mxu1 %vm623_vm1, %v1362_v57  ;;  %2748 = vmatprep.mubr.msk.f32.mxu0 %vm623_vm1, %v1362_v57  ;;  %v1345_v58 = vpop.permute.xlu1 %1344 }
 0x210   : > { %2758 = vmatpush3.msra.mxu1 %v3380_v7  ;;  %2720 = vmatprep.mubr.msk.f32.mxu1 %vm623_vm1, %v1363_v6  ;;  %v2357_v7 = vld [vmem:[%s3609_s3 + $0xa0] sm:$0xff]  ;;  %v3454_v9 = vsel %vm597_vm0, %v1345_v58, %v3192_v63 }
 0x211   : > { %2749 = vmatmul.mubr.msk.f32.gmra.mxu0 %vm623_vm1, %v1363_v6  ;;  %2759 = vmatprep.subr.mxu1 %v2359_v33  ;;  %v1343_v59 = vpop.permute.xlu0 %1342 }
 0x212   : > { %2760 = vmatpush3.msra.mxu1 %v2359_v33  ;;  %v3445_v60 = vsel %vm597_vm0, %v1343_v59, %v3171_v56 }
 0x213   : > { %2761 = vmatprep.subr.mxu1 %v2358_v55  ;;  %2721 = vmatmul.mubr.msk.f32.gmra.mxu1 %vm623_vm1, %v3445_v60  ;;  %v1349_v11 = vpop.permute.xlu1 %1348 }
 0x214   : > { %2751 = vmatprep.mubr.msk.f32.mxu0 %vm623_vm1, %v3445_v60  ;;  %2762 = vmatpush3.msra.mxu1 %v2358_v55  ;;  %v1367_v19 = vsel %vm597_vm0, %v1349_v11, %v3216_v4  ;;  %v2353_v4 = vld [vmem:[%s3609_s3 + $0x80] sm:$0xff] }
 0x215   : > { %2723 = vmatprep.mubr.msk.f32.mxu1 %vm623_vm1, %v3454_v9  ;;  %2752 = vmatmul.mubr.msk.f32.gmra.mxu0 %vm623_vm1, %v3454_v9  ;;  %v1347_v56 = vpop.permute.xlu0 %1346 }
 0x216   : > { %2763 = vmatprep.subr.mxu1 %v2357_v7  ;;  %v3467_v63 = vsel %vm597_vm0, %v1347_v56, %v3211_v2 }
 0x217   : > { %2764 = vmatpush3.msra.mxu1 %v2357_v7  ;;  %2754 = vmatprep.mubr.msk.f32.mxu0 %vm623_vm1, %v3467_v63  ;;  %v1353_v20 = vpop.permute.xlu1 %1352 }
 0x218   : > { %2765 = vmatprep.subr.mxu1 %v2356_v15  ;;  %2724 = vmatmul.mubr.msk.f32.gmra.mxu1 %vm623_vm1, %v3467_v63  ;;  %v1369_v62 = vsel %vm597_vm0, %v1353_v20, %v3280_v16  ;;  %v2385_v16 = vld [vmem:[%s3609_s3 + $0x108] sm:$0xff] }
 0x219   : > { %2766 = vmatpush3.msra.mxu1 %v2356_v15  ;;  %2726 = vmatprep.mubr.msk.f32.mxu1 %vm623_vm1, %v1367_v19  ;;  %v1351_v2 = vpop.permute.xlu0 %1350 }
 0x21a   : > { %2755 = vmatmul.mubr.msk.f32.gmra.mxu0 %vm623_vm1, %v1367_v19  ;;  %2767 = vmatprep.subr.mxu1 %v2355_v12  ;;  %v1368_v0 = vsel %vm597_vm0, %v1351_v2, %v3239_v8  ;;  %v2390_v8 = vld [vmem:[%s3609_s3 + $0x130] sm:$0xff] }
 0x21b   : > { %2768 = vmatpush3.msra.mxu1 %v2355_v12  ;;  %2801 = vmatprep.mubr.msk.f32.mxu0 %vm623_vm1, %v1363_v6 }
 0x21c   : > { %2769 = vmatprep.subr.mxu1 %v2354_v61  ;;  %2727 = vmatmul.mubr.msk.f32.gmra.mxu1 %vm623_vm1, %v1368_v0 }
 0x21d   : > { %2770 = vmatpush3.msra.mxu1 %v2354_v61  ;;  %2773 = vmatprep.mubr.msk.f32.mxu1 %vm623_vm1, %v1362_v57 }
 0x21e   : > { %2771 = vmatprep.subr.mxu1 %v2353_v4  ;;  %2802 = vmatmul.mubr.msk.f32.vlgmr.msra.gmra.mxu0 %vm623_vm1, %v3445_v60 }
 0x21f   : > { %2772 = vmatpush3.msra.mxu1 %v2353_v4  ;;  %2804 = vmatprep.mubr.msk.f32.mxu0 %vm623_vm1, %v3454_v9 }
 0x220   : > { %2813 = vmatprep.subr.mxu1 %v2391_v10  ;;  %2774 = vmatmul.mubr.msk.f32.vlgmr.msra.gmra.mxu1 %vm623_vm1, %v1363_v6 }
 0x221   : > { %2814 = vmatpush3.msra.mxu1 %v2391_v10  ;;  %2776 = vmatprep.mubr.msk.f32.mxu1 %vm623_vm1, %v3445_v60 }
 0x222   : > { %2805 = vmatmul.mubr.msk.f32.gmra.mxu0 %vm623_vm1, %v3467_v63  ;;  %2815 = vmatprep.subr.mxu1 %v2390_v8 }
 0x223   : > { %2807 = vmatprep.mubr.msk.f32.mxu0 %vm623_vm1, %v1367_v19  ;;  %2816 = vmatpush3.msra.mxu1 %v2390_v8 }
 0x224   : > { %2817 = vmatprep.subr.mxu1 %v2389_v14  ;;  %2777 = vmatmul.mubr.msk.f32.gmra.mxu1 %vm623_vm1, %v3454_v9 }
 0x225   : > { %2818 = vmatpush3.msra.mxu1 %v2389_v14  ;;  %2779 = vmatprep.mubr.msk.f32.mxu1 %vm623_vm1, %v3467_v63 }
 0x226   : > { %2808 = vmatmul.mubr.msk.f32.gmra.mxu0 %vm623_vm1, %v1368_v0  ;;  %2819 = vmatprep.subr.mxu1 %v2388_v23 }
 0x227   : > { %2810 = vmatprep.mubr.msk.f32.mxu0 %vm623_vm1, %v1369_v62  ;;  %2820 = vmatpush3.msra.mxu1 %v2388_v23 }
 0x228   : > { %2821 = vmatprep.subr.mxu1 %v2387_v13  ;;  %2780 = vmatmul.mubr.msk.f32.gmra.mxu1 %vm623_vm1, %v1367_v19 }
 0x229   : > { %2822 = vmatpush3.msra.mxu1 %v2387_v13  ;;  %2782 = vmatprep.mubr.msk.f32.mxu1 %vm623_vm1, %v1368_v0  ;;  %v2398_v13 = vld [vmem:[%s3611_s5] ss:$0 sm:$0xff] }
 0x22a   : > { %2823 = vmatprep.subr.mxu1 %v2386_v18  ;;  %2811 = vmatmul.mubr.f32.gmra.mxu0 %v2936_v54 }
 0x22b   : > { %2824 = vmatpush3.msra.mxu1 %v2386_v18 }
 0x22c   : > { %2825 = vmatprep.subr.mxu1 %v2385_v16  ;;  %2783 = vmatmul.mubr.msk.f32.gmra.mxu1 %vm623_vm1, %v1369_v62 }
 0x22d   : > { %2826 = vmatpush3.msra.mxu1 %v2385_v16  ;;  %2829 = vmatprep.mubr.msk.f32.mxu1 %vm623_vm1, %v3445_v60 }
 0x22e   : > { %2827 = vmatprep.subr.mxu1 %v2384_v24 }
 0x22f   : > { %2828 = vmatpush3.msra.mxu1 %v2384_v24 }
 0x230   : > { %2830 = vmatmul.mubr.msk.f32.vlgmr.msra.gmra.mxu1 %vm623_vm1, %v3454_v9 }
 0x231   : > { %2832 = vmatprep.mubr.msk.f32.mxu1 %vm623_vm1, %v3467_v63 }
 0x234   : > { %2833 = vmatmul.mubr.msk.f32.gmra.mxu1 %vm623_vm1, %v1367_v19 }
 0x235   : > { %2835 = vmatprep.mubr.msk.f32.mxu1 %vm623_vm1, %v1368_v0 }
 0x238   : > { %2836 = vmatmul.mubr.msk.f32.gmra.mxu1 %vm623_vm1, %v1369_v62 }
 0x239   : > { %2838 = vmatprep.mubr.f32.mxu1 %v2936_v54 }
 0x23c   : > { %2839 = vmatmul.mubr.f32.gmra.mxu1 %v2936_v54 }
 0x2cf   : > { %v2719_v5 = vpop.f32.mrf.mxu1 }
 0x2d0   : > { %v1585_v7 = vadd.f32 %v2747_v26, %v2719_v5 }
 0x2d1   : > { %v2750_v28 = vpop.f32.mrf.mxu0  ;;  %v1474_v29 = vpop.f32.mrf.mxu1 }
 0x2d2   : > { %v1580_v11 = vadd.f32 %v1579_v3, %v1474_v29 }
 0x2d3   : > { %v1589_v30 = vpop.f32.mrf.mxu0  ;;  %v2722_v25 = vpop.f32.mrf.mxu1 }
 0x2d4   : > { %v1595_v12 = vadd.f32 %v2750_v28, %v2722_v25 }
 0x2d5   : > { %v2753_v32 = vpop.f32.mrf.mxu0  ;;  %v1484_v36 = vpop.f32.mrf.mxu1 }
 0x2d6   : > { %v1590_v61 = vadd.f32 %v1589_v30, %v1484_v36 }
 0x2d7   : > { %v1599_v39 = vpop.f32.mrf.mxu0 }
 0x2d8   : > { %v2725_v40 = vpop.f32.mrf.mxu1 }
 0x2d9   : > { %v1605_v10 = vadd.f32 %v2753_v32, %v2725_v40 }
 0x2da   : > { %v2756_v43 = vpop.f32.mrf.mxu0  ;;  %v1494_v45 = vpop.f32.mrf.mxu1 }
 0x2db   : > { %v1600_v18 = vadd.f32 %v1599_v39, %v1494_v45 }
 0x2dc   : > { %v1609_v47 = vpop.f32.mrf.mxu0  ;;  %v2728_v50 = vpop.f32.mrf.mxu1 }
 0x2dd   : > { %v1615_v25 = vadd.f32 %v2756_v43, %v2728_v50 }
 0x2de   : > { %v1504_v51 = vpop.f32.mrf.mxu1  ;;  %v2803_v57 = vpop.f32.mrf.mxu0 }
 0x2e0   : > { %v2775_v33 = vpop.f32.mrf.mxu1  ;;  %v1818_v54 = vpop.f32.mrf.mxu0 }
 0x2e1   : > { %v1736_v56 = vadd.f32 %v2775_v33, %v1585_v7 }
 0x2e2   : > { %v1696_v6 = vpop.f32.mrf.mxu1  ;;  %v2806_v59 = vpop.f32.mrf.mxu0 }
 0x2e3   : > { %v1735_v19 = vadd.f32 %v1696_v6, %v1580_v11  ;;  %v1858_v4 = vadd.f32 %v2803_v57, %v1736_v56  ;;  %v1610_v57 = vadd.f32 %v1609_v47, %v1504_v51 }
 0x2e4   : > { %v2778_v58 = vpop.f32.mrf.mxu1  ;;  %v1828_v15 = vpop.f32.mrf.mxu0 }
 0x2e5   : > { %v1738_v0 = vadd.f32 %v2778_v58, %v1595_v12  ;;  %v1857_v62 = vadd.f32 %v1818_v54, %v1735_v19 }
 0x2e6   : > { %v1706_v55 = vpop.f32.mrf.mxu1  ;;  %v2809_v8 = vpop.f32.mrf.mxu0 }
 0x2e7   : > { %v1737_v20 = vadd.f32 %v1706_v55, %v1590_v61  ;;  %v1860_v3 = vadd.f32 %v2806_v59, %v1738_v0 }
 0x2e8   : > { %v2781_v60 = vpop.f32.mrf.mxu1  ;;  %v1838_v5 = vpop.f32.mrf.mxu0 }
 0x2e9   : > { %v1740_v16 = vadd.f32 %v2781_v60, %v1605_v10  ;;  %v1859_v40 = vadd.f32 %v1828_v15, %v1737_v20 }
 0x2ea   : > { %v1716_v9 = vpop.f32.mrf.mxu1  ;;  %v2812_v33 = vpop.f32.mrf.mxu0 }
 0x2eb   : > { %v1739_v28 = vadd.f32 %v1716_v9, %v1600_v18  ;;  %v1862_v58 = vadd.f32 %v2809_v8, %v1740_v16 }
 0x2ec   : > { %v2784_v63 = vpop.f32.mrf.mxu1  ;;  %v1848_v11 = vpop.f32.mrf.mxu0 }
 0x2ed   : > { %v1742_v55 = vadd.f32 %v2784_v63, %v1615_v25  ;;  %v1861_v60 = vadd.f32 %v1838_v5, %v1739_v28 }
 0x2ee   : > { %v1726_v2 = vpop.f32.mrf.mxu1 }
 0x2ef   : > { %v1741_v59 = vadd.f32 %v1726_v2, %v1610_v57  ;;  %v1864_v50 = vadd.f32 %v2812_v33, %v1742_v55 }
 0x2f0   : > { %v2831_v14 = vpop.f32.mrf.mxu1 }
 0x2f1   : > { %v1980_v23 = vadd.f32 %v2831_v14, %v1858_v4  ;;  %v1863_v15 = vadd.f32 %v1848_v11, %v1741_v59 }
 0x2f2   : > { %v1940_v24 = vpop.f32.mrf.mxu1 }
 0x2f3   : > { %v1979_v26 = vadd.f32 %v1940_v24, %v1857_v62  ;;  %v1995_v29 = vadd.f32 %v2398_v13, %v1980_v23 }
 0x2f4   : > { %v2834_v30 = vpop.f32.mrf.mxu1 }
 0x2f5   : > { %v1994_v32 = vadd.f32 %v2398_v13, %v1979_v26  ;;  %v1982_v36 = vadd.f32 %v2834_v30, %v1860_v3 }
 0x2f6   : > { %v1950_v6 = vpop.f32.mrf.mxu1 }
 0x2f7   : > { %2910 = vtanh.f32 %v1994_v32  ;;  %v1997_v54 = vadd.f32 %v2398_v13, %v1982_v36  ;;  %v1981_v39 = vadd.f32 %v1950_v6, %v1859_v40 }
 0x2f8   : > { %2912 = vtanh.f32 %v1995_v29  ;;  %v2837_v45 = vpop.f32.mrf.mxu1 }
 0x2f9   : > { %2914 = vtanh.f32 %v1997_v54  ;;  %v1996_v7 = vadd.f32 %v2398_v13, %v1981_v39  ;;  %v1984_v9 = vadd.f32 %v2837_v45, %v1862_v58 }
 0x2fa   : > { %v1960_v43 = vpop.f32.mrf.mxu1 }
 0x2fb   : > { %2916 = vtanh.f32 %v1996_v7  ;;  %v1999_v56 = vadd.f32 %v2398_v13, %v1984_v9  ;;  %v1983_v47 = vadd.f32 %v1960_v43, %v1861_v60 }
 0x2fc   : > { %v2840_v51 = vpop.f32.mrf.mxu1 }
 0x2fd   : > { %2918 = vtanh.f32 %v1999_v56  ;;  %v1998_v63 = vadd.f32 %v2398_v13, %v1983_v47  ;;  %v1986_v12 = vadd.f32 %v2840_v51, %v1864_v50 }
 0x2fe   : > { %v1970_v19 = vpop.f32.mrf.mxu1 }
 0x2ff   : > { %2920 = vtanh.f32 %v1998_v63  ;;  %v2001_v61 = vadd.f32 %v2398_v13, %v1986_v12  ;;  %v1985_v0 = vadd.f32 %v1970_v19, %v1863_v15 }
 0x301   : > { %2922 = vtanh.f32 %v2001_v61  ;;  %v2000_v2 = vadd.f32 %v2398_v13, %v1985_v0 }
 0x303   : > { %2924 = vtanh.f32 %v2000_v2 }
 0x304   : > { %v2911_v4 = vpop.eup %2910 }
 0x305   : > { %v2913_v10 = vpop.eup %2912  ;;  %v2010_v14 = vsub.f32 %v2911_v4, %v3131_v37 }
 0x306   : > { %v2915_v8 = vpop.eup %2914  ;;  %v2011_v62 = vsub.f32 %v2913_v10, %v3126_v35 }
 0x307   : > { %v2013_v20 = vsub.f32 %v2915_v8, %v3141_v42  ;;  %v2018_v24 = vmul.f32 %v3401_v21, %v2010_v14 }
 0x308   : > { %v2917_v23 = vpop.eup %2916  ;;  %v2019_v28 = vmul.f32 %v3395_v1, %v2011_v62 }
 0x309   : > { %v2012_v18 = vsub.f32 %v2917_v23, %v3143_v44  ;;  %v2021_v26 = vmul.f32 %v3407_v22, %v2013_v20  ;;  %v2026_v32 = vadd.f32 %v2018_v24, %v3131_v37 }
 0x30a   : > { %v2919_v16 = vpop.eup %2918 }
 0x30b   : > { %v2020_v13 = vmul.f32 %v3413_v31, %v2012_v18  ;;  %v2015_v5 = vsub.f32 %v2919_v16, %v3151_v48  ;;  %v2029_v36 = vadd.f32 %v2021_v26, %v3141_v42  ;;  %v2027_v31 = vadd.f32 %v2019_v28, %v3126_v35 }
 0x30c   : > { %v2921_v3 = vpop.eup %2920 }
 0x30d   : > { %v2028_v29 = vadd.f32 %v2020_v13, %v3143_v44  ;;  %v2014_v25 = vsub.f32 %v2921_v3, %v3153_v49  ;;  %v2023_v21 = vmul.f32 %v3416_v34, %v2015_v5  ;;  %v2050_v6 = vcombine.low %v2027_v31, %v2029_v36 }
 0x30e   : > { %v2923_v30 = vpop.eup %2922  ;;  %v2051_v34 = vcombine.high %v2027_v31, %v2029_v36 }
 0x30f   : > { %v2017_v22 = vsub.f32 %v2923_v30, %v3161_v52  ;;  %v2034_v57 = vcombine.low %v2026_v32, %v2028_v29  ;;  %v2022_v1 = vmul.f32 %v3419_v38, %v2014_v25  ;;  %v2035_v58 = vcombine.high %v2026_v32, %v2028_v29 }
 0x310   : > { %v2925_v40 = vpop.eup %2924  ;;  %v2031_v37 = vadd.f32 %v2023_v21, %v3151_v48  ;;  %v2058_v38 = vrot.slane %v2050_v6, %v3020_v17  ;;  %v2065_v48 = vrot.slane %v2051_v34, %v3020_v17 }
 0x311   : > { %v2016_v33 = vsub.f32 %v2925_v40, %v3163_v53  ;;  %v2025_v44 = vmul.f32 %v3422_v41, %v2017_v22  ;;  %v2042_v54 = vrot.slane %v2034_v57, %v3020_v17  ;;  %v2030_v35 = vadd.f32 %v2022_v1, %v3153_v49 }
 0x312   : > { %v2049_v41 = vrot.slane %v2035_v58, %v3020_v17 }
 0x313   : > { %v2033_v42 = vadd.f32 %v2025_v44, %v3161_v52  ;;  %v2024_v55 = vmul.f32 %v3425_v46, %v2016_v33  ;;  %v2098_v52 = vcombine.low %v2042_v54, %v2058_v38  ;;  %v2099_v9 = vcombine.high %v2042_v54, %v2058_v38 }
 0x314   : > { %v2115_v50 = vcombine.high %v2049_v41, %v2065_v48 }
 0x315   : > { %v2082_v39 = vcombine.low %v2031_v37, %v2033_v42  ;;  %v2083_v45 = vcombine.high %v2031_v37, %v2033_v42  ;;  %v2032_v60 = vadd.f32 %v2024_v55, %v3163_v53  ;;  %v2114_v53 = vcombine.low %v2049_v41, %v2065_v48 }
 0x316   : > { %v2106_v63 = vrot.slane %v2098_v52, %v3038_v27  ;;  %v2113_v12 = vrot.slane %v2099_v9, %v3038_v27  ;;  %v2129_v4 = vrot.slane %v2115_v50, %v3038_v27 }
 0x317   : > { %v2066_v59 = vcombine.low %v2030_v35, %v2032_v60  ;;  %v2067_v7 = vcombine.high %v2030_v35, %v2032_v60  ;;  %v2090_v46 = vrot.slane %v2082_v39, %v3020_v17  ;;  %v2097_v11 = vrot.slane %v2083_v45, %v3020_v17 }
 0x319   : > { %v2074_v49 = vrot.slane %v2066_v59, %v3020_v17  ;;  %v2081_v43 = vrot.slane %v2067_v7, %v3020_v17  ;;  %v2122_v17 = vrot.slane %v2114_v53, %v3038_v27 }
 0x31b   : > { %v2130_v56 = vcombine.low %v2074_v49, %v2090_v46  ;;  %v2131_v47 = vcombine.high %v2074_v49, %v2090_v46  ;;  %v2146_v51 = vcombine.low %v2081_v43, %v2097_v11  ;;  %v2147_v15 = vcombine.high %v2081_v43, %v2097_v11 }
 0x31d   : > { %v2138_v19 = vrot.slane %v2130_v56, %v3038_v27  ;;  %v2145_v61 = vrot.slane %v2131_v47, %v3038_v27  ;;  %v2154_v0 = vrot.slane %v2146_v51, %v3038_v27  ;;  %v2161_v2 = vrot.slane %v2147_v15, %v3038_v27 }
 0x31f   : > { %v2162_v10 = vcombine.low %v2106_v63, %v2138_v19  ;;  %v2163_v8 = vcombine.high %v2106_v63, %v2138_v19  ;;  %v2164_v14 = vcombine.low %v2113_v12, %v2145_v61  ;;  %v2165_v20 = vcombine.high %v2113_v12, %v2145_v61 }
 0x320   : > { %v2166_v23 = vcombine.low %v2122_v17, %v2154_v0  ;;  %v2167_v62 = vcombine.high %v2122_v17, %v2154_v0  ;;  %v2168_v18 = vcombine.low %v2129_v4, %v2161_v2  ;;  %v2169_v16 = vcombine.high %v2129_v4, %v2161_v2 }
 0x321   : > { %2170 = vst.msk [vmem:[%s275_s22] sm:$0xff] %vm597_vm0, %v2162_v10  ;;  %2171 = vst.msk [vmem:[%s275_s22 + $0x8] sm:$0xff] %vm597_vm0, %v2163_v8 }
 0x322   : > { %2172 = vst.msk [vmem:[%s275_s22 + $0x10] sm:$0xff] %vm597_vm0, %v2164_v14  ;;  %2173 = vst.msk [vmem:[%s275_s22 + $0x18] sm:$0xff] %vm597_vm0, %v2165_v20 }
 0x323   : > { %2174 = vst.msk [vmem:[%s275_s22 + $0x20] sm:$0xff] %vm597_vm0, %v2166_v23  ;;  %2175 = vst.msk [vmem:[%s275_s22 + $0x28] sm:$0xff] %vm597_vm0, %v2167_v62 }
 0x324   : > { %2176 = vst.msk [vmem:[%s275_s22 + $0x30] sm:$0xff] %vm597_vm0, %v2168_v18  ;;  %2177 = vst.msk [vmem:[%s275_s22 + $0x38] sm:$0xff] %vm597_vm0, %v2169_v16 }
 0x325 PF: > { %s16_s21 = sadd.s32 1, %s2932_s21  }
 0x326   : > { %p13_p4 = scmp.ge.s32.totalorder %s16_s21, 4  }
 0x328   :  { %15 = sbr.rel (!%p13_p4) target bundleno = 1 (0x1), region = 85 }

// kernel: _forward_jit.3
= control target key start
LH: loop header
LB: loop body
LE: loop exit
PB: predicated region body
PF: predicated region fallthrough
CT: control target
= control target key end

     0   :  { %11 = vsyncpa [#allocation3], 0  ;;  %s3399_s0 = inlined_call_operand.vmem [shape: f32[2,8,8,32], index: 0, kind: input, shape index: {}]   ;;  %s3400_s1 = inlined_call_operand.vmem [shape: f32[2,8,8,32], index: 1, kind: input, shape index: {}]   ;;  %s3401_s2 = inlined_call_operand.vmem [shape: f32[5,64,64], index: 2, kind: input, shape index: {}]   ;;  %s3402_s3 = inlined_call_operand.vmem [shape: f32[5,64,32], index: 3, kind: input, shape index: {}]   ;;  %s3403_s4 = inlined_call_operand.vmem [shape: f32[1,64], index: 4, kind: input, shape index: {}]   ;;  %s3404_s5 = inlined_call_operand.vmem [shape: f32[1,32], index: 5, kind: input, shape index: {}]   ;;  %s3405_s6 = inlined_call_operand.hbm [shape: f32[2,8,8,32], index: 6, kind: output, shape index: {}]  }
   0x1   :  { %13 = vsyncpa [#allocation3 + $0x1], 0  ;;  %s2745_s21 = smov 0   ;;  %s2747_s22 = smov 0  }
   0x2   :  { %s2749_s23 = smov 0   ;;  %s2751_s24 = smov 0  }
   0x3   :  { %s2753_s25 = smov 0   ;;  %s2755_s26 = smov 0  }
   0x4 LB: > { %s1910_s27 = sadd.s32 4294967295, %s2702_s26   ;;  %s1911_s28 = sadd.s32 4294967294, %s2702_s26   ;;  %s2702_s26 = sphi %s2755_s26, %s19_s26   ;;  %s2698_s25 = sphi %s2753_s25, %s3412_s25   ;;  %s2694_s24 = sphi %s2751_s24, %s3411_s24   ;;  %s2690_s23 = sphi %s2749_s23, %s3410_s23   ;;  %s2686_s22 = sphi %s2747_s22, %s3409_s22   ;;  %s2682_s21 = sphi %s2745_s21, %s3408_s21  }
   0x5   : > { %s31_s29 = sadd.s32 1, %s2698_s25  ;;  %s180_s30 = sadd.s32 1, %s2690_s23 }
   0x6   : > { %p33_p0 = scmp.ge.s32.totalorder %s31_s29, 2  ;;  %p190_p1 = scmp.ne.s32.totalorder %s2690_s23, %s2686_s22 }
   0x7   : > { %p191_p2 = scmp.eq.s32.totalorder %s1910_s27, 1  ;;  %p196_p3 = scmp.ne.s32.totalorder %s2686_s22, %s2682_s21 }
   0x8   : > { %s3414_s29 = smov (%p33_p0, %s31_s29), 0  ;;  %p197_p5 = scmp.eq.s32.totalorder %s1911_s28, 1 }
   0x9   : > { %p2785_p4 = por %p191_p2, %p190_p1  ;;  %s175_s8 = ssub.s32 %s2698_s25, %s3414_s29 }
   0xa   : > { %p1914_p6 = scmp.ge.s32.totalorder %s2702_s26, 1  ;;  %p178_p7 = scmp.eq.s32.totalorder %s175_s8, 0 }
   0xb   : > { %p2792_p8 = por %p197_p5, %p196_p3  ;;  %p249_p9 = scmp.lt.s32.totalorder %s2702_s26, 3 }
   0xc   : > { %s2798_s10 = scalar_select %p178_p7, %s2690_s23, %s180_s30  }
   0xd   : > { %p250_p10 = pnand %p1914_p6, %p249_p9 }
   0xe   : > { %p290_p11 = scmp.lt.s32.totalorder (!%p250_p10), %s2694_s24, 1  ;;  %s2704_s18 = smov (!%p250_p10), 32  }
   0xf   : > { %253 = sbr.rel (%p250_p10) target bundleno = 803 (0x323), region = 44  ;;  %s2706_s28 = smov (!%p250_p10), 96  }
  0x10   : > { %s2069_s30 = sshll.u32 (!%p250_p10), %s2694_s24, 10  ;;  %s2707_s15 = smov (!%p250_p10), [#allocation2]  }
  0x11   : > { %s3344_s14 = scalar_lea.hbm (!%p250_p10), %s3405_s6, %s2069_s30  ;;  %s2630_s16 = sshll.u32 (!%p250_p10), %s2707_s15, 4  ;;  %s2631_s16 = int_to_ptr.vmem [resolvable:$false] %s2630_s16 }
  0x12   : > { %s2632_s17 = scalar_lea.vmem (!%p250_p10), %s2631_s16, 2048 }
  0x14   : > { %v370_v0 = vld [vmem:[%s3401_s2 + $0x38] sm:$0xff]  ;;  %v369_v2 = vld [vmem:[%s3401_s2 + $0x30] sm:$0xff]  ;;  %s2814_s19 = scalar_select %p290_p11, %s2694_s24, 1  ;;  %v368_v4 = vld [vmem:[%s3401_s2 + $0x28] sm:$0xff]  ;;  %v2705_v25 = vmov 0.0   ;;  %vm354_vm0 = vcmask 261120  }
  0x15   : > { %v1927_v1 = vld [vmem:[%s3401_s2 + $0x78] sm:$0xff]  ;;  %2258 = vmatprep.subr.mxu1 %v370_v0  ;;  %v1926_v3 = vld [vmem:[%s3401_s2 + $0x70] sm:$0xff]  ;;  %v1925_v5 = vld [vmem:[%s3401_s2 + $0x68] sm:$0xff]  ;;  %2274 = vmatprep.mubr.f32.mxu1 %v2705_v25  ;;  %vm380_vm1 = vcmask 523264  }
  0x16   : > { %2230 = vmatprep.subr.mxu0 %v1927_v1  ;;  %2259 = vmatpush3.msra.mxu1 %v370_v0  ;;  %s2067_s8 = sshll.u32 %s2814_s19, 6  ;;  %v367_v6 = vld [vmem:[%s3401_s2 + $0x20] sm:$0xff]  ;;  %v366_v10 = vld [vmem:[%s3401_s2 + $0x18] sm:$0xff]  ;;  %v365_v14 = vld [vmem:[%s3401_s2 + $0x10] sm:$0xff]  ;;  %s287_s19 = sand.u32 1, %s2686_s22  }
  0x17   : > { %2231 = vmatpush3.msra.mxu0 %v1927_v1  ;;  %2260 = vmatprep.subr.mxu1 %v369_v2  ;;  %s2828_s13 = scalar_lea.vmem %s3400_s1, %s2067_s8  ;;  %v1924_v7 = vld [vmem:[%s3401_s2 + $0x60] sm:$0xff]  ;;  %v1923_v11 = vld [vmem:[%s3401_s2 + $0x58] sm:$0xff]  ;;  %v1922_v15 = vld [vmem:[%s3401_s2 + $0x50] sm:$0xff]  ;;  %s2884_s20 = scalar_lea.vmem %s3399_s0, %s2067_s8 }
  0x18   : > { %2232 = vmatprep.subr.mxu0 %v1926_v3  ;;  %2261 = vmatpush3.msra.mxu1 %v369_v2  ;;  %v314_v8 = vld [vmem:[%s2828_s13] sm:$0xff]  ;;  %v316_v9 = vld [vmem:[%s2828_s13 + $0x10] sm:$0xff]  ;;  %v315_v12 = vld [vmem:[%s2828_s13 + $0x8] sm:$0xff]  ;;  %s1915_s8 = sshll.u32 %s287_s19, 6  ;;  %s3354_s24 = scalar_lea.sflag [#allocation3], %s287_s19 }
  0x19   : > { %2233 = vmatpush3.msra.mxu0 %v1926_v3  ;;  %2262 = vmatprep.subr.mxu1 %v368_v4  ;;  %v317_v13 = vld [vmem:[%s2828_s13 + $0x18] sm:$0xff]  ;;  %v318_v16 = vld [vmem:[%s2828_s13 + $0x20] sm:$0xff]  ;;  %v319_v17 = vld [vmem:[%s2828_s13 + $0x28] sm:$0xff] }
  0x1a   : > { %2234 = vmatprep.subr.mxu0 %v1925_v5  ;;  %2263 = vmatpush3.msra.mxu1 %v368_v4  ;;  %v364_v18 = vld [vmem:[%s3401_s2 + $0x8] sm:$0xff]  ;;  %v363_v20 = vld [vmem:[%s3401_s2] sm:$0xff]  ;;  %v320_v22 = vld [vmem:[%s2828_s13 + $0x30] sm:$0xff] }
  0x1b   : > { %2235 = vmatpush3.msra.mxu0 %v1925_v5  ;;  %330 = vrot.lane.b32.xlu0 %v314_v8, %s2704_s18  ;;  %v1921_v19 = vld [vmem:[%s3401_s2 + $0x48] sm:$0xff]  ;;  %v1920_v21 = vld [vmem:[%s3401_s2 + $0x40] sm:$0xff]  ;;  %v321_v23 = vld [vmem:[%s2828_s13 + $0x38] sm:$0xff] }
  0x1c   : > { %334 = vrot.lane.b32.xlu1 %v316_v9, %s2704_s18  ;;  %2264 = vmatprep.subr.mxu1 %v367_v6  ;;  %v1948_v24 = vld [vmem:[%s3401_s2 + $0xb8] sm:$0xff]  ;;  %v1963_v27 = vld [vmem:[%s3401_s2 + $0xf0] sm:$0xff]  ;;  %v307_v28 = vld [vmem:[%s2884_s20 + $0x8] sm:$0xff] }
  0x1d   : > { %2236 = vmatprep.subr.mxu0 %v1924_v7  ;;  %2265 = vmatpush3.msra.mxu1 %v367_v6  ;;  %v1964_v26 = vld [vmem:[%s3401_s2 + $0xf8] sm:$0xff]  ;;  %v306_v29 = vld [vmem:[%s2884_s20] sm:$0xff]  ;;  %v1962_v30 = vld [vmem:[%s3401_s2 + $0xe8] sm:$0xff] }
  0x1e   : > { %2237 = vmatpush3.msra.mxu0 %v1924_v7  ;;  %2266 = vmatprep.subr.mxu1 %v366_v10  ;;  %v1961_v31 = vld [vmem:[%s3401_s2 + $0xe0] sm:$0xff]  ;;  %v309_v32 = vld [vmem:[%s2884_s20 + $0x18] sm:$0xff]  ;;  %v308_v33 = vld [vmem:[%s2884_s20 + $0x10] sm:$0xff] }
  0x1f   : > { %2238 = vmatprep.subr.mxu0 %v1923_v11  ;;  %332 = vrot.lane.b32.xlu0 %v315_v12, %s2704_s18  ;;  %v1960_v34 = vld [vmem:[%s3401_s2 + $0xd8] sm:$0xff]  ;;  %v1959_v35 = vld [vmem:[%s3401_s2 + $0xd0] sm:$0xff]  ;;  %v311_v36 = vld [vmem:[%s2884_s20 + $0x28] sm:$0xff] }
  0x20   : > { %336 = vrot.lane.b32.xlu1 %v317_v13, %s2704_s18  ;;  %2267 = vmatpush3.msra.mxu1 %v366_v10  ;;  %v310_v37 = vld [vmem:[%s2884_s20 + $0x20] sm:$0xff]  ;;  %v1958_v38 = vld [vmem:[%s3401_s2 + $0xc8] sm:$0xff]  ;;  %v2926_v40 = vld [vmem:[%s2884_s20 + $0x38] sm:$0xff] }
  0x21   : > { %2239 = vmatpush3.msra.mxu0 %v1923_v11  ;;  %2268 = vmatprep.subr.mxu1 %v365_v14  ;;  %v1957_v39 = vld [vmem:[%s3401_s2 + $0xc0] sm:$0xff]  ;;  %v312_v41 = vld [vmem:[%s2884_s20 + $0x30] sm:$0xff]  ;;  %v1946_v48 = vld [vmem:[%s3401_s2 + $0xa8] sm:$0xff] }
  0x22   : > { %2240 = vmatprep.subr.mxu0 %v1922_v15  ;;  %2269 = vmatpush3.msra.mxu1 %v365_v14  ;;  %v1947_v45 = vld [vmem:[%s3401_s2 + $0xb0] sm:$0xff]  ;;  %v1945_v52 = vld [vmem:[%s3401_s2 + $0xa0] sm:$0xff]  ;;  %v1944_v54 = vld [vmem:[%s3401_s2 + $0x98] sm:$0xff] }
  0x23   : > { %2241 = vmatpush3.msra.mxu0 %v1922_v15  ;;  %338 = vrot.lane.b32.xlu0 %v318_v16, %s2704_s18  ;;  %v1943_v58 = vld [vmem:[%s3401_s2 + $0x90] sm:$0xff]  ;;  %v1942_v60 = vld [vmem:[%s3401_s2 + $0x88] sm:$0xff]  ;;  %v1941_v62 = vld [vmem:[%s3401_s2 + $0x80] sm:$0xff] }
  0x24   : > { %340 = vrot.lane.b32.xlu1 %v319_v17, %s2704_s18  ;;  %2270 = vmatprep.subr.mxu1 %v364_v18  ;;  %v1979_v63 = vld [vmem:[%s3401_s2 + $0x138] sm:$0xff]  ;;  %v1978_v0 = vld [vmem:[%s3401_s2 + $0x130] sm:$0xff]  ;;  %v1977_v1 = vld [vmem:[%s3401_s2 + $0x128] sm:$0xff] }
  0x25   : > { %2242 = vmatprep.subr.mxu0 %v1921_v19  ;;  %2271 = vmatpush3.msra.mxu1 %v364_v18  ;;  %v1976_v2 = vld [vmem:[%s3401_s2 + $0x120] sm:$0xff]  ;;  %v1975_v4 = vld [vmem:[%s3401_s2 + $0x118] sm:$0xff]  ;;  %v1974_v5 = vld [vmem:[%s3401_s2 + $0x110] sm:$0xff] }
  0x26   : > { %2243 = vmatpush3.msra.mxu0 %v1921_v19  ;;  %2272 = vmatprep.subr.mxu1 %v363_v20  ;;  %v1973_v7 = vld [vmem:[%s3401_s2 + $0x108] sm:$0xff]  ;;  %v1972_v8 = vld [vmem:[%s3401_s2 + $0x100] sm:$0xff]  ;;  %v1134_v9 = vld [vmem:[%s3402_s3 + $0x38] sm:$0xff] }
  0x27   : > { %2244 = vmatprep.subr.mxu0 %v1920_v21  ;;  %342 = vrot.lane.b32.xlu0 %v320_v22, %s2704_s18  ;;  %v2002_v10 = vld [vmem:[%s3402_s3 + $0x78] sm:$0xff]  ;;  %v1133_v11 = vld [vmem:[%s3402_s3 + $0x30] sm:$0xff]  ;;  %v1132_v13 = vld [vmem:[%s3402_s3 + $0x28] sm:$0xff] }
  0x28   : > { %344 = vrot.lane.b32.xlu1 %v321_v23, %s2704_s18  ;;  %2273 = vmatpush3.msra.mxu1 %v363_v20  ;;  %v2001_v12 = vld [vmem:[%s3402_s3 + $0x70] sm:$0xff]  ;;  %v2000_v14 = vld [vmem:[%s3402_s3 + $0x68] sm:$0xff]  ;;  %v1131_v15 = vld [vmem:[%s3402_s3 + $0x20] sm:$0xff] }
  0x29   : > { %2245 = vmatpush3.msra.mxu0 %v1920_v21  ;;  %2246 = vmatprep.mubr.f32.mxu0 %v2705_v25  ;;  %v1999_v16 = vld [vmem:[%s3402_s3 + $0x60] sm:$0xff]  ;;  %v1130_v17 = vld [vmem:[%s3402_s3 + $0x18] sm:$0xff]  ;;  %v1129_v19 = vld [vmem:[%s3402_s3 + $0x10] sm:$0xff] }
  0x2a   : > { %2275 = vmatmul.mubr.f32.vlgmr.msra.gmra.mxu1 %v2705_v25  ;;  %2286 = vmatprep.subr.mxu0 %v1948_v24  ;;  %v1998_v18 = vld [vmem:[%s3402_s3 + $0x58] sm:$0xff]  ;;  %v1997_v20 = vld [vmem:[%s3402_s3 + $0x50] sm:$0xff]  ;;  %v1128_v21 = vld [vmem:[%s3402_s3 + $0x8] sm:$0xff] }
  0x2b   : > { %2314 = vmatprep.subr.mxu1 %v1964_v26  ;;  %1055 = vrot.lane.b32.xlu0 %v306_v29, %s2704_s18  ;;  %v1996_v22 = vld [vmem:[%s3402_s3 + $0x48] sm:$0xff]  ;;  %v1127_v23 = vld [vmem:[%s3402_s3] sm:$0xff] }
  0x2c   : > { %1057 = vrot.lane.b32.xlu1 %v307_v28, %s2704_s18  ;;  %2315 = vmatpush3.msra.mxu1 %v1964_v26 }
  0x2d   : > { %2316 = vmatprep.subr.mxu1 %v1963_v27 }
  0x2e   : > { %2317 = vmatpush3.msra.mxu1 %v1963_v27 }
  0x2f   : > { %2318 = vmatprep.subr.mxu1 %v1962_v30  ;;  %1059 = vrot.lane.b32.xlu0 %v308_v33, %s2704_s18 }
  0x30   : > { %1061 = vrot.lane.b32.xlu1 %v309_v32, %s2704_s18  ;;  %2319 = vmatpush3.msra.mxu1 %v1962_v30 }
  0x31   : > { %2320 = vmatprep.subr.mxu1 %v1961_v31 }
  0x32   : > { %2321 = vmatpush3.msra.mxu1 %v1961_v31 }
  0x33   : > { %2322 = vmatprep.subr.mxu1 %v1960_v34  ;;  %1063 = vrot.lane.b32.xlu0 %v310_v37, %s2704_s18 }
  0x34   : > { %1065 = vrot.lane.b32.xlu1 %v311_v36, %s2704_s18  ;;  %2323 = vmatpush3.msra.mxu1 %v1960_v34 }
  0x35   : > { %2324 = vmatprep.subr.mxu1 %v1959_v35 }
  0x36   : > { %2325 = vmatpush3.msra.mxu1 %v1959_v35 }
  0x37   : > { %2326 = vmatprep.subr.mxu1 %v1958_v38  ;;  %1067 = vrot.lane.b32.xlu0 %v312_v41, %s2704_s18 }
  0x38   : > { %1069 = vrot.lane.b32.xlu1 %v2926_v40, %s2704_s18  ;;  %2327 = vmatpush3.msra.mxu1 %v1958_v38 }
  0x39   : > { %2328 = vmatprep.subr.mxu1 %v1957_v39 }
  0x3a   : > { %2329 = vmatpush3.msra.mxu1 %v1957_v39 }
  0x3b   : > { %2370 = vmatprep.subr.mxu1 %v2002_v10 }
  0x8d   : > { %v2932_v42 = vpop.permute.xlu0 %330 }
  0x8e   : > { %v2934_v43 = vpop.permute.xlu1 %334  ;;  %v355_v44 = vsel %vm354_vm0, %v306_v29, %v2932_v42 }
  0x8f   : > { %2247 = vmatmul.mubr.msk.f32.vlgmr.msra.gmra.mxu0 %vm380_vm1, %v355_v44  ;;  %2277 = vmatprep.mubr.msk.f32.mxu1 %vm380_vm1, %v355_v44  ;;  %v2945_v46 = vsel %vm354_vm0, %v308_v33, %v2934_v43 }
  0x90   : > { %2287 = vmatpush3.msra.mxu0 %v1948_v24 }
  0x91   : > { %v2947_v47 = vpop.permute.xlu0 %332  ;;  %2288 = vmatprep.subr.mxu0 %v1947_v45 }
  0x92   : > { %v2952_v49 = vpop.permute.xlu1 %336  ;;  %v356_v50 = vsel %vm354_vm0, %v307_v28, %v2947_v47  ;;  %2289 = vmatpush3.msra.mxu0 %v1947_v45 }
  0x93   : > { %2249 = vmatprep.mubr.msk.f32.mxu0 %vm380_vm1, %v356_v50  ;;  %2278 = vmatmul.mubr.msk.f32.gmra.mxu1 %vm380_vm1, %v356_v50  ;;  %v2960_v51 = vsel %vm354_vm0, %v309_v32, %v2952_v49 }
  0x94   : > { %2290 = vmatprep.subr.mxu0 %v1946_v48  ;;  %2250 = vmatmul.mubr.msk.f32.gmra.mxu0 %vm380_vm1, %v2945_v46 }
  0x95   : > { %2280 = vmatprep.mubr.msk.f32.mxu1 %vm380_vm1, %v2945_v46  ;;  %2291 = vmatpush3.msra.mxu0 %v1946_v48  ;;  %v2969_v53 = vpop.permute.xlu0 %338 }
  0x96   : > { %v2974_v55 = vpop.permute.xlu1 %340  ;;  %2292 = vmatprep.subr.mxu0 %v1945_v52  ;;  %v2978_v56 = vsel %vm354_vm0, %v310_v37, %v2969_v53  ;;  %2252 = vmatprep.mubr.msk.f32.mxu0 %vm380_vm1, %v2960_v51 }
  0x97   : > { %2293 = vmatpush3.msra.mxu0 %v1945_v52  ;;  %2281 = vmatmul.mubr.msk.f32.gmra.mxu1 %vm380_vm1, %v2960_v51  ;;  %v2986_v57 = vsel %vm354_vm0, %v311_v36, %v2974_v55 }
  0x98   : > { %2294 = vmatprep.subr.mxu0 %v1944_v54  ;;  %2253 = vmatmul.mubr.msk.f32.gmra.mxu0 %vm380_vm1, %v2978_v56 }
  0x99   : > { %2283 = vmatprep.mubr.msk.f32.mxu1 %vm380_vm1, %v2978_v56  ;;  %2295 = vmatpush3.msra.mxu0 %v1944_v54  ;;  %v2995_v59 = vpop.permute.xlu0 %342 }
  0x9a   : > { %2296 = vmatprep.subr.mxu0 %v1943_v58  ;;  %v361_v61 = vsel %vm354_vm0, %v312_v41, %v2995_v59  ;;  %2255 = vmatprep.mubr.msk.f32.mxu0 %vm380_vm1, %v2986_v57  ;;  %v3035_v3 = vpop.permute.xlu1 %344 }
  0x9b   : > { %2297 = vmatpush3.msra.mxu0 %v1943_v58  ;;  %2284 = vmatmul.mubr.msk.f32.gmra.mxu1 %vm380_vm1, %v2986_v57  ;;  %v362_v6 = vsel %vm354_vm0, %v2926_v40, %v3035_v3 }
  0x9c   : > { %2298 = vmatprep.subr.mxu0 %v1942_v60  ;;  %2256 = vmatmul.mubr.msk.f32.gmra.mxu0 %vm380_vm1, %v361_v61 }
  0x9d   : > { %2299 = vmatpush3.msra.mxu0 %v1942_v60  ;;  %2330 = vmatprep.mubr.msk.f32.mxu1 %vm380_vm1, %v356_v50 }
  0x9e   : > { %2300 = vmatprep.subr.mxu0 %v1941_v62  ;;  %2302 = vmatprep.mubr.msk.f32.mxu0 %vm380_vm1, %v355_v44 }
  0x9f   : > { %2301 = vmatpush3.msra.mxu0 %v1941_v62  ;;  %2331 = vmatmul.mubr.msk.f32.vlgmr.msra.gmra.mxu1 %vm380_vm1, %v2945_v46 }
  0xa0   : > { %2342 = vmatprep.subr.mxu0 %v1979_v63  ;;  %2303 = vmatmul.mubr.msk.f32.vlgmr.msra.gmra.mxu0 %vm380_vm1, %v356_v50 }
  0xa1   : > { %2333 = vmatprep.mubr.msk.f32.mxu1 %vm380_vm1, %v2960_v51  ;;  %2343 = vmatpush3.msra.mxu0 %v1979_v63 }
  0xa2   : > { %2305 = vmatprep.mubr.msk.f32.mxu0 %vm380_vm1, %v2945_v46  ;;  %2344 = vmatprep.subr.mxu0 %v1978_v0 }
  0xa3   : > { %2345 = vmatpush3.msra.mxu0 %v1978_v0  ;;  %2334 = vmatmul.mubr.msk.f32.gmra.mxu1 %vm380_vm1, %v2978_v56 }
  0xa4   : > { %2346 = vmatprep.subr.mxu0 %v1977_v1  ;;  %2306 = vmatmul.mubr.msk.f32.gmra.mxu0 %vm380_vm1, %v2960_v51 }
  0xa5   : > { %2336 = vmatprep.mubr.msk.f32.mxu1 %vm380_vm1, %v2986_v57  ;;  %2347 = vmatpush3.msra.mxu0 %v1977_v1 }
  0xa6   : > { %2308 = vmatprep.mubr.msk.f32.mxu0 %vm380_vm1, %v2978_v56  ;;  %2348 = vmatprep.subr.mxu0 %v1976_v2 }
  0xa7   : > { %2349 = vmatpush3.msra.mxu0 %v1976_v2  ;;  %2337 = vmatmul.mubr.msk.f32.gmra.mxu1 %vm380_vm1, %v361_v61 }
  0xa8   : > { %2350 = vmatprep.subr.mxu0 %v1975_v4  ;;  %2309 = vmatmul.mubr.msk.f32.gmra.mxu0 %vm380_vm1, %v2986_v57 }
  0xa9   : > { %2351 = vmatpush3.msra.mxu0 %v1975_v4  ;;  %2311 = vmatprep.mubr.msk.f32.mxu0 %vm380_vm1, %v361_v61 }
  0xaa   : > { %2352 = vmatprep.subr.mxu0 %v1974_v5  ;;  %2339 = vmatprep.mubr.msk.f32.mxu1 %vm380_vm1, %v362_v6 }
  0xab   : > { %2353 = vmatpush3.msra.mxu0 %v1974_v5  ;;  %2340 = vmatmul.mubr.f32.gmra.mxu1 %v2705_v25 }
  0xac   : > { %2354 = vmatprep.subr.mxu0 %v1973_v7  ;;  %2312 = vmatmul.mubr.msk.f32.gmra.mxu0 %vm380_vm1, %v362_v6 }
  0xad   : > { %2355 = vmatpush3.msra.mxu0 %v1973_v7  ;;  %2358 = vmatprep.mubr.msk.f32.mxu0 %vm380_vm1, %v2945_v46 }
  0xae   : > { %2356 = vmatprep.subr.mxu0 %v1972_v8  ;;  %2386 = vmatprep.mubr.f32.mxu1 %v2705_v25 }
  0xaf   : > { %2357 = vmatpush3.msra.mxu0 %v1972_v8  ;;  %2371 = vmatpush3.msra.mxu1 %v2002_v10  ;;  %v1986_v8 = vld [vmem:[%s3403_s4] ss:$0 sm:$0xff] }
  0xb0   : > { %2359 = vmatmul.mubr.msk.f32.vlgmr.msra.gmra.mxu0 %vm380_vm1, %v2960_v51  ;;  %2398 = vmatprep.subr.mxu0 %v1134_v9 }
  0xb1   : > { %2361 = vmatprep.mubr.msk.f32.mxu0 %vm380_vm1, %v2978_v56  ;;  %2399 = vmatpush3.msra.mxu0 %v1134_v9 }
  0xb2   : > { %2400 = vmatprep.subr.mxu0 %v1133_v11  ;;  %2372 = vmatprep.subr.mxu1 %v2001_v12 }
  0xb3   : > { %2401 = vmatpush3.msra.mxu0 %v1133_v11  ;;  %2373 = vmatpush3.msra.mxu1 %v2001_v12 }
  0xb4   : > { %2362 = vmatmul.mubr.msk.f32.gmra.mxu0 %vm380_vm1, %v2986_v57  ;;  %2402 = vmatprep.subr.mxu0 %v1132_v13 }
  0xb5   : > { %2364 = vmatprep.mubr.msk.f32.mxu0 %vm380_vm1, %v361_v61  ;;  %2374 = vmatprep.subr.mxu1 %v2000_v14 }
  0xb6   : > { %2403 = vmatpush3.msra.mxu0 %v1132_v13  ;;  %2375 = vmatpush3.msra.mxu1 %v2000_v14 }
  0xb7   : > { %2404 = vmatprep.subr.mxu0 %v1131_v15  ;;  %2376 = vmatprep.subr.mxu1 %v1999_v16 }
  0xb8   : > { %2365 = vmatmul.mubr.msk.f32.gmra.mxu0 %vm380_vm1, %v362_v6  ;;  %2377 = vmatpush3.msra.mxu1 %v1999_v16 }
  0xb9   : > { %2367 = vmatprep.mubr.f32.mxu0 %v2705_v25  ;;  %2405 = vmatpush3.msra.mxu0 %v1131_v15 }
  0xba   : > { %2406 = vmatprep.subr.mxu0 %v1130_v17  ;;  %2378 = vmatprep.subr.mxu1 %v1998_v18 }
  0xbb   : > { %2407 = vmatpush3.msra.mxu0 %v1130_v17  ;;  %2379 = vmatpush3.msra.mxu1 %v1998_v18 }
  0xbc   : > { %2368 = vmatmul.mubr.f32.gmra.mxu0 %v2705_v25  ;;  %2408 = vmatprep.subr.mxu0 %v1129_v19 }
  0xbd   : > { %2414 = vmatprep.mubr.f32.mxu0 %v2705_v25  ;;  %2380 = vmatprep.subr.mxu1 %v1997_v20 }
  0xbe   : > { %2409 = vmatpush3.msra.mxu0 %v1129_v19  ;;  %2381 = vmatpush3.msra.mxu1 %v1997_v20 }
  0xbf   : > { %2410 = vmatprep.subr.mxu0 %v1128_v21  ;;  %2382 = vmatprep.subr.mxu1 %v1996_v22 }
  0xc0   : > { %2411 = vmatpush3.msra.mxu0 %v1128_v21  ;;  %2383 = vmatpush3.msra.mxu1 %v1996_v22 }
  0xc1   : > { %2412 = vmatprep.subr.mxu0 %v1127_v23 }
  0xc2   : > { %2413 = vmatpush3.msra.mxu0 %v1127_v23 }
  0xc3   : > { %2415 = vmatmul.mubr.f32.vlgmr.msra.gmra.mxu0 %v2705_v25 }
  0xea   : > { %v2276_v24 = vpop.f32.mrf.mxu1 }
  0xec   : > { %v576_v27 = vpop.f32.mrf.mxu1 }
 0x14f   : > { %v2248_v26 = vpop.f32.mrf.mxu0 }
 0x150   : > { %v582_v54 = vadd.f32 %v2276_v24, %v2248_v26 }
 0x151   : > { %v471_v28 = vpop.f32.mrf.mxu0 }
 0x152   : > { %v577_v57 = vadd.f32 %v576_v27, %v471_v28 }
 0x153   : > { %v2279_v29 = vpop.f32.mrf.mxu1 }
 0x154   : > { %v2251_v30 = vpop.f32.mrf.mxu0 }
 0x155   : > { %v586_v31 = vpop.f32.mrf.mxu1  ;;  %v592_v62 = vadd.f32 %v2279_v29, %v2251_v30 }
 0x156   : > { %v481_v32 = vpop.f32.mrf.mxu0 }
 0x157   : > { %v2282_v33 = vpop.f32.mrf.mxu1  ;;  %v587_v1 = vadd.f32 %v586_v31, %v481_v32 }
 0x158   : > { %v2254_v34 = vpop.f32.mrf.mxu0 }
 0x159   : > { %v596_v35 = vpop.f32.mrf.mxu1  ;;  %v602_v6 = vadd.f32 %v2282_v33, %v2254_v34 }
 0x15a   : > { %v491_v36 = vpop.f32.mrf.mxu0 }
 0x15b   : > { %v2285_v37 = vpop.f32.mrf.mxu1  ;;  %v597_v12 = vadd.f32 %v596_v35, %v491_v36 }
 0x15c   : > { %v2257_v38 = vpop.f32.mrf.mxu0 }
 0x15d   : > { %v606_v39 = vpop.f32.mrf.mxu1  ;;  %v612_v19 = vadd.f32 %v2285_v37, %v2257_v38 }
 0x15e   : > { %v501_v40 = vpop.f32.mrf.mxu0 }
 0x15f   : > { %v2332_v41 = vpop.f32.mrf.mxu1  ;;  %v607_v28 = vadd.f32 %v606_v39, %v501_v40 }
 0x160   : > { %v2304_v44 = vpop.f32.mrf.mxu0 }
 0x161   : > { %v815_v46 = vpop.f32.mrf.mxu1  ;;  %v733_v58 = vadd.f32 %v2304_v44, %v582_v54 }
 0x162   : > { %v693_v45 = vpop.f32.mrf.mxu0 }
 0x163   : > { %v2335_v51 = vpop.f32.mrf.mxu1  ;;  %v732_v63 = vadd.f32 %v693_v45, %v577_v57  ;;  %v855_v5 = vadd.f32 %v2332_v41, %v733_v58 }
 0x164   : > { %v2307_v48 = vpop.f32.mrf.mxu0 }
 0x165   : > { %v825_v60 = vpop.f32.mrf.mxu1  ;;  %v735_v2 = vadd.f32 %v2307_v48, %v592_v62  ;;  %v854_v11 = vadd.f32 %v815_v46, %v732_v63 }
 0x166   : > { %v703_v50 = vpop.f32.mrf.mxu0 }
 0x167   : > { %v2338_v4 = vpop.f32.mrf.mxu1  ;;  %v734_v9 = vadd.f32 %v703_v50, %v587_v1  ;;  %v857_v18 = vadd.f32 %v2335_v51, %v735_v2 }
 0x168   : > { %v2310_v52 = vpop.f32.mrf.mxu0 }
 0x169   : > { %v737_v13 = vadd.f32 %v2310_v52, %v602_v6  ;;  %v835_v15 = vpop.f32.mrf.mxu1  ;;  %v856_v27 = vadd.f32 %v825_v60, %v734_v9 }
 0x16a   : > { %v713_v56 = vpop.f32.mrf.mxu0 }
 0x16b   : > { %v736_v20 = vadd.f32 %v713_v56, %v597_v12  ;;  %v2341_v22 = vpop.f32.mrf.mxu1  ;;  %v859_v31 = vadd.f32 %v2338_v4, %v737_v13 }
 0x16c   : > { %v2313_v61 = vpop.f32.mrf.mxu0 }
 0x16d   : > { %v739_v29 = vadd.f32 %v2313_v61, %v612_v19  ;;  %v858_v41 = vadd.f32 %v835_v15, %v736_v20  ;;  %v845_v44 = vpop.f32.mrf.mxu1  ;;  %v3135_v15 = vld [vmem:[%s3402_s3 + $0xb8] sm:$0xff]  ;;  %v1056_v19 = vpop.permute.xlu0 %1055  ;;  %v2037_v20 = vld [vmem:[%s3402_s3 + $0xe8] sm:$0xff] }
 0x16e   : > { %v723_v0 = vpop.f32.mrf.mxu0 }
 0x16f   : > { %v738_v35 = vadd.f32 %v723_v0, %v607_v28  ;;  %v861_v46 = vadd.f32 %v2341_v22, %v739_v29  ;;  %v2035_v28 = vld [vmem:[%s3402_s3 + $0xd8] sm:$0xff] }
 0x170   : > { %v2360_v7 = vpop.f32.mrf.mxu0 }
 0x171   : > { %v977_v10 = vadd.f32 %v2360_v7, %v855_v5  ;;  %v860_v51 = vadd.f32 %v845_v44, %v738_v35 }
 0x172   : > { %v937_v14 = vpop.f32.mrf.mxu0 }
 0x173   : > { %v992_v16 = vadd.f32 %v1986_v8, %v977_v10  ;;  %v976_v17 = vadd.f32 %v937_v14, %v854_v11  ;;  %v1995_v11 = vld [vmem:[%s3402_s3 + $0x40] sm:$0xff]  ;;  %v1058_v14 = vpop.permute.xlu1 %1057 }
 0x174   : > { %v2363_v21 = vpop.f32.mrf.mxu0  ;;  %2384 = vmatprep.subr.mxu1 %v1995_v11 }
 0x175   : > { %v1988_v23 = vmul.f32 -1.442695, %v992_v16  ;;  %v991_v24 = vadd.f32 %v1986_v8, %v976_v17  ;;  %v979_v26 = vadd.f32 %v2363_v21, %v857_v18  ;;  %2385 = vmatpush3.msra.mxu1 %v1995_v11  ;;  %v2038_v16 = vld [vmem:[%s3402_s3 + $0xf0] sm:$0xff] }
 0x176   : > { %v947_v30 = vpop.f32.mrf.mxu0  ;;  %2426 = vmatprep.subr.mxu1 %v3135_v15 }
 0x177   : > { %2570 = vpow2.f32 %v1988_v23  ;;  %v1987_v32 = vmul.f32 -1.442695, %v991_v24  ;;  %v994_v33 = vadd.f32 %v1986_v8, %v979_v26  ;;  %v978_v34 = vadd.f32 %v947_v30, %v856_v27  ;;  %v2036_v23 = vld [vmem:[%s3402_s3 + $0xe0] sm:$0xff]  ;;  %v1062_v27 = vpop.permute.xlu1 %1061 }
 0x178   : > { %v2366_v36 = vpop.f32.mrf.mxu0 }
 0x179   : > { %2572 = vpow2.f32 %v1987_v32  ;;  %v1990_v37 = vmul.f32 -1.442695, %v994_v33  ;;  %v993_v38 = vadd.f32 %v1986_v8, %v978_v34  ;;  %v981_v45 = vadd.f32 %v2366_v36, %v859_v31  ;;  %v1060_v31 = vpop.permute.xlu0 %1059  ;;  %v2034_v32 = vld [vmem:[%s3402_s3 + $0xd0] sm:$0xff]  ;;  %v2033_v36 = vld [vmem:[%s3402_s3 + $0xc8] sm:$0xff] }
 0x17a   : > { %v957_v48 = vpop.f32.mrf.mxu0 }
 0x17b   : > { %2574 = vpow2.f32 %v1990_v37  ;;  %v1989_v50 = vmul.f32 -1.442695, %v993_v38  ;;  %v996_v39 = vadd.f32 %v1986_v8, %v981_v45  ;;  %v980_v40 = vadd.f32 %v957_v48, %v858_v41  ;;  %v1066_v44 = vpop.permute.xlu1 %1065  ;;  %v2032_v38 = vld [vmem:[%s3402_s3 + $0xc0] sm:$0xff] }
 0x17c   : > { %v2369_v52 = vpop.f32.mrf.mxu0 }
 0x17d   : > { %2576 = vpow2.f32 %v1989_v50  ;;  %v1992_v54 = vmul.f32 -1.442695, %v996_v39  ;;  %v995_v56 = vadd.f32 %v1986_v8, %v980_v40  ;;  %v983_v57 = vadd.f32 %v2369_v52, %v861_v46  ;;  %v1064_v46 = vpop.permute.xlu0 %1063 }
 0x17e   : > { %v967_v58 = vpop.f32.mrf.mxu0 }
 0x17f   : > { %2578 = vpow2.f32 %v1992_v54  ;;  %v1991_v60 = vmul.f32 -1.442695, %v995_v56  ;;  %v998_v61 = vadd.f32 %v1986_v8, %v983_v57  ;;  %v982_v62 = vadd.f32 %v967_v58, %v860_v51  ;;  %v1070_v51 = vpop.permute.xlu1 %1069 }
 0x181   : > { %2580 = vpow2.f32 %v1991_v60  ;;  %v1994_v63 = vmul.f32 -1.442695, %v998_v61  ;;  %v997_v0 = vadd.f32 %v1986_v8, %v982_v62  ;;  %v2039_v8 = vld [vmem:[%s3402_s3 + $0xf8] sm:$0xff]  ;;  %v1068_v56 = vpop.permute.xlu0 %1067 }
 0x182   : > { %2454 = vmatprep.subr.mxu0 %v2039_v8 }
 0x183   : > { %2582 = vpow2.f32 %v1994_v63  ;;  %v1993_v1 = vmul.f32 -1.442695, %v997_v0  ;;  %2455 = vmatpush3.msra.mxu0 %v2039_v8  ;;  %v2022_v0 = vld [vmem:[%s3402_s3 + $0xb0] sm:$0xff]  ;;  %v2017_v8 = vld [vmem:[%s3402_s3 + $0x88] sm:$0xff] }
 0x184   : > { %v2571_v2 = vpop.eup %2570  ;;  %2456 = vmatprep.subr.mxu0 %v2038_v16 }
 0x185   : > { %v1024_v4 = vadd.f32 1.0, %v2571_v2  ;;  %2584 = vpow2.f32 %v1993_v1  ;;  %2457 = vmatpush3.msra.mxu0 %v2038_v16  ;;  %v2051_v16 = vld [vmem:[%s3402_s3 + $0x120] sm:$0xff] }
 0x186   : > { %v2573_v5 = vpop.eup %2572  ;;  %2458 = vmatprep.subr.mxu0 %v2037_v20 }
 0x187   : > { %2586 = vrcp.f32 %v1024_v4  ;;  %v1023_v6 = vadd.f32 1.0, %v2573_v5  ;;  %2459 = vmatpush3.msra.mxu0 %v2037_v20  ;;  %v2020_v5 = vld [vmem:[%s3402_s3 + $0xa0] sm:$0xff] }
 0x188   : > { %v2575_v7 = vpop.eup %2574  ;;  %2460 = vmatprep.subr.mxu0 %v2036_v23  ;;  %v2047_v20 = vld [vmem:[%s3402_s3 + $0x100] sm:$0xff] }
 0x189   : > { %2588 = vrcp.f32 %v1023_v6  ;;  %v1026_v9 = vadd.f32 1.0, %v2575_v7  ;;  %2461 = vmatpush3.msra.mxu0 %v2036_v23 }
 0x18a   : > { %v2577_v10 = vpop.eup %2576  ;;  %2462 = vmatprep.subr.mxu0 %v2035_v28 }
 0x18b   : > { %2590 = vrcp.f32 %v1026_v9  ;;  %v1025_v12 = vadd.f32 1.0, %v2577_v10  ;;  %2463 = vmatpush3.msra.mxu0 %v2035_v28  ;;  %v2019_v9 = vld [vmem:[%s3402_s3 + $0x98] sm:$0xff]  ;;  %v2018_v10 = vld [vmem:[%s3402_s3 + $0x90] sm:$0xff] }
 0x18c   : > { %v2579_v13 = vpop.eup %2578  ;;  %2464 = vmatprep.subr.mxu0 %v2034_v32 }
 0x18d   : > { %2592 = vrcp.f32 %v1025_v12  ;;  %v1028_v17 = vadd.f32 1.0, %v2579_v13  ;;  %2465 = vmatpush3.msra.mxu0 %v2034_v32  ;;  %v2054_v13 = vld [vmem:[%s3402_s3 + $0x138] sm:$0xff] }
 0x18e   : > { %v2581_v18 = vpop.eup %2580  ;;  %2466 = vmatprep.subr.mxu0 %v2033_v36 }
 0x18f   : > { %2594 = vrcp.f32 %v1028_v17  ;;  %v1027_v21 = vadd.f32 1.0, %v2581_v18  ;;  %2467 = vmatpush3.msra.mxu0 %v2033_v36  ;;  %v2050_v17 = vld [vmem:[%s3402_s3 + $0x118] sm:$0xff] }
 0x190   : > { %v2583_v22 = vpop.eup %2582  ;;  %2468 = vmatprep.subr.mxu0 %v2032_v38 }
 0x191   : > { %2596 = vrcp.f32 %v1027_v21  ;;  %v1030_v24 = vadd.f32 1.0, %v2583_v22  ;;  %2469 = vmatpush3.msra.mxu0 %v2032_v38  ;;  %v2416_v21 = vpop.f32.mrf.mxu0 }
 0x192   : > { %v2585_v26 = vpop.eup %2584 }
 0x193   : > { %2598 = vrcp.f32 %v1030_v24  ;;  %v1029_v29 = vadd.f32 1.0, %v2585_v26  ;;  %v1336_v22 = vpop.f32.mrf.mxu0 }
 0x194   : > { %v3150_v30 = vpop.eup %2586 }
 0x195   : > { %2600 = vrcp.f32 %v1029_v29  ;;  %v1080_v33 = vmul.f32 %v3150_v30, %v1058_v14  ;;  %v2052_v14 = vld [vmem:[%s3402_s3 + $0x128] sm:$0xff] }
 0x196   : > { %v3156_v34 = vpop.eup %2588 }
 0x197   : > { %v1079_v35 = vmul.f32 %v3156_v34, %v1056_v19  ;;  %1097 = vrot.lane.b32.xlu1 %v1080_v33, %s2706_s28  ;;  %v2049_v19 = vld [vmem:[%s3402_s3 + $0x110] sm:$0xff] }
 0x198   : > { %v3162_v41 = vpop.eup %2590 }
 0x199   : > { %v1082_v37 = vmul.f32 %v3162_v41, %v1062_v27  ;;  %1095 = vrot.lane.b32.xlu0 %v1079_v35, %s2706_s28 }
 0x19a   : > { %v3168_v45 = vpop.eup %2592 }
 0x19b   : > { %v1081_v48 = vmul.f32 %v3168_v45, %v1060_v31  ;;  %1101 = vrot.lane.b32.xlu1 %v1082_v37, %s2706_s28 }
 0x19c   : > { %v3171_v50 = vpop.eup %2594 }
 0x19d   : > { %v1084_v39 = vmul.f32 %v3171_v50, %v1066_v44  ;;  %1099 = vrot.lane.b32.xlu0 %v1081_v48, %s2706_s28 }
 0x19e   : > { %v3174_v40 = vpop.eup %2596 }
 0x19f   : > { %v1083_v52 = vmul.f32 %v3174_v40, %v1064_v46  ;;  %1105 = vrot.lane.b32.xlu1 %v1084_v39, %s2706_s28 }
 0x1a0   : > { %v3177_v54 = vpop.eup %2598 }
 0x1a1   : > { %v1086_v57 = vmul.f32 %v3177_v54, %v1070_v51  ;;  %1103 = vrot.lane.b32.xlu0 %v1083_v52, %s2706_s28 }
 0x1a2   : > { %v3180_v58 = vpop.eup %2600 }
 0x1a3   : > { %v1085_v60 = vmul.f32 %v3180_v58, %v1068_v56  ;;  %1109 = vrot.lane.b32.xlu1 %v1086_v57, %s2706_s28 }
 0x1a5   : > { %1107 = vrot.lane.b32.xlu0 %v1085_v60, %s2706_s28  ;;  %s3314_s28 = scalar_lea.vmem [#allocation2], %s1915_s8 }
 0x1a6   : > { %s1814_s18 = sshll.u32 %s3314_s28, 4  ;;  %s3346_s18 = int_to_ptr.vmem [resolvable:$true] %s1814_s18 }
 0x1a7   : > { %p2633_p1 = scmp.lt.s32.totalorder %s3346_s18, %s2631_s16 }
 0x209   : > { %v1098_v61 = vpop.permute.xlu1 %1097 }
 0x20a   : > { %v1120_v1 = vsel %vm354_vm0, %v1098_v61, %v2947_v47 }
 0x20b   : > { %v1096_v62 = vpop.permute.xlu0 %1095 }
 0x20c   : > { %v1119_v63 = vsel %vm354_vm0, %v1096_v62, %v2932_v42  ;;  %v2021_v42 = vld [vmem:[%s3402_s3 + $0xa8] sm:$0xff] }
 0x20d   : > { %2387 = vmatmul.mubr.msk.f32.vlgmr.msra.gmra.mxu1 %vm380_vm1, %v1119_v63  ;;  %2417 = vmatprep.mubr.msk.f32.mxu0 %vm380_vm1, %v1119_v63  ;;  %v1102_v2 = vpop.permute.xlu1 %1101 }
 0x20e   : > { %2427 = vmatpush3.msra.mxu1 %v3135_v15  ;;  %2389 = vmatprep.mubr.msk.f32.mxu1 %vm380_vm1, %v1120_v1  ;;  %v3209_v6 = vsel %vm354_vm0, %v1102_v2, %v2952_v49 }
 0x20f   : > { %2418 = vmatmul.mubr.msk.f32.gmra.mxu0 %vm380_vm1, %v1120_v1  ;;  %2428 = vmatprep.subr.mxu1 %v2022_v0  ;;  %v1100_v4 = vpop.permute.xlu0 %1099 }
 0x210   : > { %2429 = vmatpush3.msra.mxu1 %v2022_v0  ;;  %v3200_v47 = vsel %vm354_vm0, %v1100_v4, %v2934_v43 }
 0x211   : > { %2430 = vmatprep.subr.mxu1 %v2021_v42  ;;  %2390 = vmatmul.mubr.msk.f32.gmra.mxu1 %vm380_vm1, %v3200_v47  ;;  %v1106_v7 = vpop.permute.xlu1 %1105 }
 0x212   : > { %2420 = vmatprep.mubr.msk.f32.mxu0 %vm380_vm1, %v3200_v47  ;;  %2431 = vmatpush3.msra.mxu1 %v2021_v42  ;;  %v1124_v11 = vsel %vm354_vm0, %v1106_v7, %v2974_v55  ;;  %v2016_v55 = vld [vmem:[%s3402_s3 + $0x80] sm:$0xff] }
 0x213   : > { %2392 = vmatprep.mubr.msk.f32.mxu1 %vm380_vm1, %v3209_v6  ;;  %2421 = vmatmul.mubr.msk.f32.gmra.mxu0 %vm380_vm1, %v3209_v6  ;;  %v1104_v43 = vpop.permute.xlu0 %1103 }
 0x214   : > { %2432 = vmatprep.subr.mxu1 %v2020_v5  ;;  %v3222_v49 = vsel %vm354_vm0, %v1104_v43, %v2969_v53 }
 0x215   : > { %2433 = vmatpush3.msra.mxu1 %v2020_v5  ;;  %2423 = vmatprep.mubr.msk.f32.mxu0 %vm380_vm1, %v3222_v49  ;;  %v1110_v15 = vpop.permute.xlu1 %1109 }
 0x216   : > { %2434 = vmatprep.subr.mxu1 %v2019_v9  ;;  %2393 = vmatmul.mubr.msk.f32.gmra.mxu1 %vm380_vm1, %v3222_v49  ;;  %v1126_v18 = vsel %vm354_vm0, %v1110_v15, %v3035_v3  ;;  %v2048_v3 = vld [vmem:[%s3402_s3 + $0x108] sm:$0xff] }
 0x217   : > { %2435 = vmatpush3.msra.mxu1 %v2019_v9  ;;  %2395 = vmatprep.mubr.msk.f32.mxu1 %vm380_vm1, %v1124_v11  ;;  %v1108_v53 = vpop.permute.xlu0 %1107 }
 0x218   : > { %2424 = vmatmul.mubr.msk.f32.gmra.mxu0 %vm380_vm1, %v1124_v11  ;;  %2436 = vmatprep.subr.mxu1 %v2018_v10  ;;  %v1125_v12 = vsel %vm354_vm0, %v1108_v53, %v2995_v59  ;;  %v2053_v59 = vld [vmem:[%s3402_s3 + $0x130] sm:$0xff] }
 0x219   : > { %2437 = vmatpush3.msra.mxu1 %v2018_v10  ;;  %2470 = vmatprep.mubr.msk.f32.mxu0 %vm380_vm1, %v1120_v1 }
 0x21a   : > { %2438 = vmatprep.subr.mxu1 %v2017_v8  ;;  %2396 = vmatmul.mubr.msk.f32.gmra.mxu1 %vm380_vm1, %v1125_v12 }
 0x21b   : > { %2439 = vmatpush3.msra.mxu1 %v2017_v8  ;;  %2442 = vmatprep.mubr.msk.f32.mxu1 %vm380_vm1, %v1119_v63 }
 0x21c   : > { %2440 = vmatprep.subr.mxu1 %v2016_v55  ;;  %2471 = vmatmul.mubr.msk.f32.vlgmr.msra.gmra.mxu0 %vm380_vm1, %v3200_v47 }
 0x21d   : > { %2441 = vmatpush3.msra.mxu1 %v2016_v55  ;;  %2473 = vmatprep.mubr.msk.f32.mxu0 %vm380_vm1, %v3209_v6 }
 0x21e   : > { %2482 = vmatprep.subr.mxu1 %v2054_v13  ;;  %2443 = vmatmul.mubr.msk.f32.vlgmr.msra.gmra.mxu1 %vm380_vm1, %v1120_v1 }
 0x21f   : > { %2483 = vmatpush3.msra.mxu1 %v2054_v13  ;;  %2445 = vmatprep.mubr.msk.f32.mxu1 %vm380_vm1, %v3200_v47 }
 0x220   : > { %2474 = vmatmul.mubr.msk.f32.gmra.mxu0 %vm380_vm1, %v3222_v49  ;;  %2484 = vmatprep.subr.mxu1 %v2053_v59 }
 0x221   : > { %2476 = vmatprep.mubr.msk.f32.mxu0 %vm380_vm1, %v1124_v11  ;;  %2485 = vmatpush3.msra.mxu1 %v2053_v59 }
 0x222   : > { %2486 = vmatprep.subr.mxu1 %v2052_v14  ;;  %2446 = vmatmul.mubr.msk.f32.gmra.mxu1 %vm380_vm1, %v3209_v6 }
 0x223   : > { %2487 = vmatpush3.msra.mxu1 %v2052_v14  ;;  %2448 = vmatprep.mubr.msk.f32.mxu1 %vm380_vm1, %v3222_v49 }
 0x224   : > { %2477 = vmatmul.mubr.msk.f32.gmra.mxu0 %vm380_vm1, %v1125_v12  ;;  %2488 = vmatprep.subr.mxu1 %v2051_v16 }
 0x225   : > { %2479 = vmatprep.mubr.msk.f32.mxu0 %vm380_vm1, %v1126_v18  ;;  %2489 = vmatpush3.msra.mxu1 %v2051_v16 }
 0x226   : > { %2490 = vmatprep.subr.mxu1 %v2050_v17  ;;  %2449 = vmatmul.mubr.msk.f32.gmra.mxu1 %vm380_vm1, %v1124_v11 }
 0x227   : > { %2491 = vmatpush3.msra.mxu1 %v2050_v17  ;;  %2451 = vmatprep.mubr.msk.f32.mxu1 %vm380_vm1, %v1125_v12 }
 0x228   : > { %2492 = vmatprep.subr.mxu1 %v2049_v19  ;;  %2480 = vmatmul.mubr.f32.gmra.mxu0 %v2705_v25 }
 0x229   : > { %2493 = vmatpush3.msra.mxu1 %v2049_v19 }
 0x22a   : > { %2494 = vmatprep.subr.mxu1 %v2048_v3  ;;  %2452 = vmatmul.mubr.msk.f32.gmra.mxu1 %vm380_vm1, %v1126_v18 }
 0x22b   : > { %2495 = vmatpush3.msra.mxu1 %v2048_v3  ;;  %2498 = vmatprep.mubr.msk.f32.mxu1 %vm380_vm1, %v3200_v47 }
 0x22c   : > { %2496 = vmatprep.subr.mxu1 %v2047_v20 }
 0x22d   : > { %2497 = vmatpush3.msra.mxu1 %v2047_v20 }
 0x22e   : > { %2499 = vmatmul.mubr.msk.f32.vlgmr.msra.gmra.mxu1 %vm380_vm1, %v3209_v6 }
 0x22f   : > { %2501 = vmatprep.mubr.msk.f32.mxu1 %vm380_vm1, %v3222_v49  ;;  %v2061_v49 = vld [vmem:[%s3404_s5] ss:$0 sm:$0xff] }
 0x232   : > { %2502 = vmatmul.mubr.msk.f32.gmra.mxu1 %vm380_vm1, %v1124_v11 }
 0x233   : > { %2504 = vmatprep.mubr.msk.f32.mxu1 %vm380_vm1, %v1125_v12 }
 0x236   : > { %2505 = vmatmul.mubr.msk.f32.gmra.mxu1 %vm380_vm1, %v1126_v18 }
 0x237   : > { %2507 = vmatprep.mubr.f32.mxu1 %v2705_v25 }
 0x23a   : > { %2508 = vmatmul.mubr.f32.gmra.mxu1 %v2705_v25 }
 0x2cd   : > { %v2388_v23 = vpop.f32.mrf.mxu1 }
 0x2ce   : > { %v1342_v60 = vadd.f32 %v2416_v21, %v2388_v23 }
 0x2cf   : > { %v2419_v24 = vpop.f32.mrf.mxu0  ;;  %v1231_v26 = vpop.f32.mrf.mxu1 }
 0x2d0   : > { %v1337_v62 = vadd.f32 %v1336_v22, %v1231_v26 }
 0x2d1   : > { %v1346_v27 = vpop.f32.mrf.mxu0  ;;  %v2391_v28 = vpop.f32.mrf.mxu1 }
 0x2d2   : > { %v1352_v2 = vadd.f32 %v2419_v24, %v2391_v28 }
 0x2d3   : > { %v2422_v29 = vpop.f32.mrf.mxu0  ;;  %v1241_v31 = vpop.f32.mrf.mxu1 }
 0x2d4   : > { %v1347_v47 = vadd.f32 %v1346_v27, %v1241_v31 }
 0x2d5   : > { %v1356_v32 = vpop.f32.mrf.mxu0 }
 0x2d6   : > { %v2394_v33 = vpop.f32.mrf.mxu1 }
 0x2d7   : > { %v1362_v7 = vadd.f32 %v2422_v29, %v2394_v33 }
 0x2d8   : > { %v2425_v35 = vpop.f32.mrf.mxu0  ;;  %v1251_v36 = vpop.f32.mrf.mxu1 }
 0x2d9   : > { %v1357_v8 = vadd.f32 %v1356_v32, %v1251_v36 }
 0x2da   : > { %v1366_v44 = vpop.f32.mrf.mxu0  ;;  %v2397_v37 = vpop.f32.mrf.mxu1 }
 0x2db   : > { %v1372_v15 = vadd.f32 %v2425_v35, %v2397_v37 }
 0x2dc   : > { %v1261_v38 = vpop.f32.mrf.mxu1  ;;  %v2472_v46 = vpop.f32.mrf.mxu0 }
 0x2dd   : > { %v1367_v21 = vadd.f32 %v1366_v44, %v1261_v38 }
 0x2de   : > { %v2444_v48 = vpop.f32.mrf.mxu1  ;;  %v1575_v25 = vpop.f32.mrf.mxu0 }
 0x2df   : > { %v1493_v63 = vadd.f32 %v2444_v48, %v1342_v60 }
 0x2e0   : > { %v1453_v39 = vpop.f32.mrf.mxu1  ;;  %v2475_v56 = vpop.f32.mrf.mxu0 }
 0x2e1   : > { %v1492_v42 = vadd.f32 %v1453_v39, %v1337_v62  ;;  %v1615_v6 = vadd.f32 %v2472_v46, %v1493_v63  ;;  %v2618_v62 = vld [vmem:[%s2884_s20 + $0x8] sm:$0xff] }
 0x2e2   : > { %v2447_v51 = vpop.f32.mrf.mxu1  ;;  %v1585_v0 = vpop.f32.mrf.mxu0 }
 0x2e3   : > { %v1495_v5 = vadd.f32 %v2447_v51, %v1352_v2  ;;  %v1614_v53 = vadd.f32 %v1575_v25, %v1492_v42  ;;  %v2619_v2 = vld [vmem:[%s2884_s20] sm:$0xff] }
 0x2e4   : > { %v1463_v52 = vpop.f32.mrf.mxu1  ;;  %v2478_v43 = vpop.f32.mrf.mxu0 }
 0x2e5   : > { %v1494_v10 = vadd.f32 %v1463_v52, %v1347_v47  ;;  %v1617_v14 = vadd.f32 %v2475_v56, %v1495_v5 }
 0x2e6   : > { %v2450_v57 = vpop.f32.mrf.mxu1  ;;  %v1595_v16 = vpop.f32.mrf.mxu0 }
 0x2e7   : > { %v1497_v12 = vadd.f32 %v2450_v57, %v1362_v7  ;;  %v1616_v20 = vadd.f32 %v1585_v0, %v1494_v10 }
 0x2e8   : > { %v1473_v61 = vpop.f32.mrf.mxu1  ;;  %v2481_v22 = vpop.f32.mrf.mxu0 }
 0x2e9   : > { %v1496_v17 = vadd.f32 %v1473_v61, %v1357_v8  ;;  %v1619_v24 = vadd.f32 %v2478_v43, %v1497_v12  ;;  %v2622_v8 = vld [vmem:[%s2884_s20 + $0x28] sm:$0xff] }
 0x2ea   : > { %v2453_v1 = vpop.f32.mrf.mxu1  ;;  %v1605_v36 = vpop.f32.mrf.mxu0 }
 0x2eb   : > { %v1499_v26 = vadd.f32 %v2453_v1, %v1372_v15  ;;  %v1618_v31 = vadd.f32 %v1595_v16, %v1496_v17  ;;  %v2624_v17 = vld [vmem:[%s2884_s20 + $0x38] sm:$0xff] }
 0x2ec   : > { %v1483_v4 = vpop.f32.mrf.mxu1 }
 0x2ed   : > { %v1498_v32 = vadd.f32 %v1483_v4, %v1367_v21  ;;  %v1621_v46 = vadd.f32 %v2481_v22, %v1499_v26 }
 0x2ee   : > { %v2500_v9 = vpop.f32.mrf.mxu1 }
 0x2ef   : > { %v1737_v11 = vadd.f32 %v2500_v9, %v1615_v6  ;;  %v1620_v39 = vadd.f32 %v1605_v36, %v1498_v32  ;;  %v2620_v6 = vld [vmem:[%s2884_s20 + $0x18] sm:$0xff] }
 0x2f0   : > { %v1697_v55 = vpop.f32.mrf.mxu1 }
 0x2f1   : > { %v1752_v13 = vadd.f32 %v2061_v49, %v1737_v11  ;;  %v1736_v59 = vadd.f32 %v1697_v55, %v1614_v53 }
 0x2f2   : > { %v2503_v18 = vpop.f32.mrf.mxu1 }
 0x2f3   : > { %2602 = vtanh.f32 %v1752_v13  ;;  %v1751_v19 = vadd.f32 %v2061_v49, %v1736_v59  ;;  %v1739_v3 = vadd.f32 %v2503_v18, %v1617_v14  ;;  %v2623_v59 = vld [vmem:[%s2884_s20 + $0x20] sm:$0xff] }
 0x2f4   : > { %v1707_v23 = vpop.f32.mrf.mxu1 }
 0x2f5   : > { %2604 = vtanh.f32 %v1751_v19  ;;  %v1754_v27 = vadd.f32 %v2061_v49, %v1739_v3  ;;  %v1738_v28 = vadd.f32 %v1707_v23, %v1616_v20  ;;  %v2625_v20 = vld [vmem:[%s2884_s20 + $0x30] sm:$0xff] }
 0x2f6   : > { %v2506_v29 = vpop.f32.mrf.mxu1 }
 0x2f7   : > { %2606 = vtanh.f32 %v1754_v27  ;;  %v1753_v33 = vadd.f32 %v2061_v49, %v1738_v28  ;;  %v1741_v35 = vadd.f32 %v2506_v29, %v1619_v24 }
 0x2f8   : > { %v1717_v37 = vpop.f32.mrf.mxu1 }
 0x2f9   : > { %2608 = vtanh.f32 %v1753_v33  ;;  %v1756_v44 = vadd.f32 %v2061_v49, %v1741_v35  ;;  %v1740_v38 = vadd.f32 %v1717_v37, %v1618_v31 }
 0x2fa   : > { %v2509_v48 = vpop.f32.mrf.mxu1 }
 0x2fb   : > { %2610 = vtanh.f32 %v1756_v44  ;;  %v1755_v25 = vadd.f32 %v2061_v49, %v1740_v38  ;;  %v1743_v51 = vadd.f32 %v2509_v48, %v1621_v46 }
 0x2fc   : > { %v1727_v52 = vpop.f32.mrf.mxu1 }
 0x2fd   : > { %2612 = vtanh.f32 %v1755_v25  ;;  %v1758_v56 = vadd.f32 %v2061_v49, %v1743_v51  ;;  %v1742_v57 = vadd.f32 %v1727_v52, %v1620_v39 }
 0x2ff   : > { %2614 = vtanh.f32 %v1758_v56  ;;  %v1757_v60 = vadd.f32 %v2061_v49, %v1742_v57  ;;  %v2621_v49 = vld [vmem:[%s2884_s20 + $0x10] sm:$0xff]  ;;  %s2626_s20 = scalar_lea.vmem %s3346_s18, 1024 }
 0x300   : > { %v2603_v61 = vpop.eup %2602  ;;  %p2627_p12 = scmp.ne.s32.totalorder %s3346_s18, %s2626_s20  ;;  %p2634_p2 = scmp.lt.s32.totalorder %s2632_s17, %s2626_s20 }
 0x301   : > { %v1768_v63 = vsub.f32 %v2603_v61, %v2618_v62  ;;  %2616 = vtanh.f32 %v1757_v60 }
 0x302   : > { %v2605_v0 = vpop.eup %2604  ;;  %p2628_p13 = pnand %p2627_p12, %p2785_p4  ;;  %p2635_p3 = por %p2634_p2, %p2633_p1 }
 0x303   : > { %v1776_v1 = vmul.f32 %v3150_v30, %v1768_v63  ;;  %v1767_v42 = vsub.f32 %v2605_v0, %v2619_v2 }
 0x304   : > { %v2607_v4 = vpop.eup %2606  ;;  %p2629_p0 = pneg %p2628_p13 }
 0x305   : > { %v1784_v47 = vadd.f32 %v2618_v62, %v1776_v1  ;;  %v1775_v5 = vmul.f32 %v3156_v34, %v1767_v42  ;;  %v1770_v7 = vsub.f32 %v2607_v4, %v2620_v6 }
 0x306   : > { %v2609_v43 = vpop.eup %2608  ;;  %p2636_p5 = pnand %p2635_p3, %p2629_p0 }
 0x307   : > { %1792 = vst.msk [vmem:[%s3314_s28 + $0x8] sm:$0xff] %vm354_vm0, %v1784_v47  ;;  %v1783_v9 = vadd.f32 %v2619_v2, %v1775_v5  ;;  %v1778_v30 = vmul.f32 %v3162_v41, %v1770_v7  ;;  %v1769_v10 = vsub.f32 %v2609_v43, %v2621_v49 }
 0x308   : > { %v2611_v11 = vpop.eup %2610 }
 0x309   : > { %1791 = vst.msk [vmem:[%s3314_s28] sm:$0xff] %vm354_vm0, %v1783_v9  ;;  %v1786_v34 = vadd.f32 %v2620_v6, %v1778_v30  ;;  %v1777_v53 = vmul.f32 %v3168_v45, %v1769_v10  ;;  %v1772_v12 = vsub.f32 %v2611_v11, %v2622_v8 }
 0x30a   : > { %v2613_v55 = vpop.eup %2612 }
 0x30b   : > { %1794 = vst.msk [vmem:[%s3314_s28 + $0x18] sm:$0xff] %vm354_vm0, %v1786_v34  ;;  %v1785_v13 = vadd.f32 %v2621_v49, %v1777_v53  ;;  %v1780_v41 = vmul.f32 %v3171_v50, %v1772_v12  ;;  %v1771_v14 = vsub.f32 %v2613_v55, %v2623_v59 }
 0x30c   : > { %v2615_v15 = vpop.eup %2614 }
 0x30d   : > { %1793 = vst.msk [vmem:[%s3314_s28 + $0x10] sm:$0xff] %vm354_vm0, %v1785_v13  ;;  %v1788_v16 = vadd.f32 %v2622_v8, %v1780_v41  ;;  %v1779_v45 = vmul.f32 %v3174_v40, %v1771_v14  ;;  %v1774_v18 = vsub.f32 %v2615_v15, %v2624_v17 }
 0x30e   : > { %v2617_v19 = vpop.eup %2616 }
 0x30f   : > { %1796 = vst.msk [vmem:[%s3314_s28 + $0x28] sm:$0xff] %vm354_vm0, %v1788_v16  ;;  %v1787_v3 = vadd.f32 %v2623_v59, %v1779_v45  ;;  %v1782_v50 = vmul.f32 %v3177_v54, %v1774_v18  ;;  %v1773_v21 = vsub.f32 %v2617_v19, %v2625_v20 }
 0x311   : > { %1795 = vst.msk [vmem:[%s3314_s28 + $0x20] sm:$0xff] %vm354_vm0, %v1787_v3  ;;  %v1790_v22 = vadd.f32 %v2624_v17, %v1782_v50  ;;  %v1781_v40 = vmul.f32 %v3180_v58, %v1773_v21 }
 0x313   : > { %1798 = vst.msk [vmem:[%s3314_s28 + $0x38] sm:$0xff] %vm354_vm0, %v1790_v22  ;;  %v1789_v54 = vadd.f32 %v2625_v20, %v1781_v40 }
 0x315   : > { %1797 = vst.msk [vmem:[%s3314_s28 + $0x30] sm:$0xff] %vm354_vm0, %v1789_v54 }
 0x316   : > { %2639 = shalt.err (!%p2636_p5)
}
 0x317   : > { %s2640_s13 = scalar_lea.hbm %s3344_s14, 1024  ;;  %s2644_s8 = scalar_lea.hbm %s3405_s6, 2048 }
 0x318   : > { %p2641_p6 = scmp.ne.s32.totalorder %s3344_s14, %s2640_s13  ;;  %p2645_p10 = scmp.lt.s32.totalorder %s3344_s14, %s3405_s6 }
 0x319   : > { %p2646_p11 = scmp.lt.s32.totalorder %s2644_s8, %s2640_s13 }
 0x31a   : > { %p2642_p7 = pnand %p2641_p6, %p2785_p4 }
 0x31b   : > { %p2647_p12 = por %p2646_p11, %p2645_p10 }
 0x31c   : > { %p2643_p9 = pneg %p2642_p7 }
 0x31e   : > { %p2648_p13 = pnand %p2647_p12, %p2643_p9 }
 0x320   : > { %2651 = shalt.err (!%p2648_p13)
}
 0x321   : > { %s2708_s11 = smov 128   ;;  %s2709_s12 = smov 8  }
 0x322   : > { %2510 = dma.vmem_to_hbm [thread:$0]  (%p2785_p4), %s3346_s18, 1024, %s3344_s14, %s3354_s24, %s2708_s11, %s2708_s11, %s2709_s12  }
 0x323 PF: > { %p2516_p0 = scmp.ge.s32.totalorder %s2702_s26, 2  ;;  %s1829_s20 = sand.u32 1, %s2682_s21  }
 0x324   : > { %s1830_s15 = scalar_lea.sflag [#allocation3], %s1829_s20 }
 0x325   : > { %p2513_p1 = pnand %p2516_p0, %p2792_p8 }
 0x327   : > { %p2514_p2 = pneg %p2513_p1 }
 0x329   : > { %2677 = dma.done.wait (%p2514_p2), %s1830_s15, 1024  }
 0x32a   : > { %2679 = vsyncadd (%p2514_p2), %s1830_s15, 4294966272  ;;  %s19_s26 = sadd.s32 1, %s2702_s26   ;;  %s3408_s21 = smov %s2686_s22 }
 0x32b   : > { %p16_p3 = scmp.ge.s32.totalorder %s19_s26, 4   ;;  %s3409_s22 = smov %s2690_s23 }
 0x32c   : > { %s3410_s23 = smov %s2798_s10  ;;  %s3411_s24 = smov %s2698_s25 }
 0x32d   : > { %s3412_s25 = smov %s3414_s29  ;;  %18 = sbr.rel (!%p16_p3) target bundleno = 4 (0x4), region = 90 }
 0x332   :  { %1835 = vsyncpa [#allocation3], 1 }
 0x333   :  { %1837 = vsyncpa [#allocation3 + $0x1], 1 }

// kernel: _forward_jit.3
= control target key start
LH: loop header
LB: loop body
LE: loop exit
PB: predicated region body
PF: predicated region fallthrough
CT: control target
= control target key end

     0   :  { %11 = vsyncpa [#allocation3], 0  ;;  %s3399_s0 = inlined_call_operand.vmem [shape: f32[2,8,8,32], index: 0, kind: input, shape index: {}]   ;;  %s3400_s1 = inlined_call_operand.vmem [shape: f32[2,8,8,32], index: 1, kind: input, shape index: {}]   ;;  %s3401_s2 = inlined_call_operand.vmem [shape: f32[5,64,64], index: 2, kind: input, shape index: {}]   ;;  %s3402_s3 = inlined_call_operand.vmem [shape: f32[5,64,32], index: 3, kind: input, shape index: {}]   ;;  %s3403_s4 = inlined_call_operand.vmem [shape: f32[1,64], index: 4, kind: input, shape index: {}]   ;;  %s3404_s5 = inlined_call_operand.vmem [shape: f32[1,32], index: 5, kind: input, shape index: {}]   ;;  %s3405_s6 = inlined_call_operand.hbm [shape: f32[2,8,8,32], index: 6, kind: output, shape index: {}]  }
   0x1   :  { %13 = vsyncpa [#allocation3 + $0x1], 0  ;;  %s2745_s21 = smov 0   ;;  %s2747_s22 = smov 0  }
   0x2   :  { %s2749_s23 = smov 0   ;;  %s2751_s24 = smov 0  }
   0x3   :  { %s2753_s25 = smov 0   ;;  %s2755_s26 = smov 0  }
   0x4 LB: > { %s1910_s27 = sadd.s32 4294967295, %s2702_s26   ;;  %s1911_s28 = sadd.s32 4294967294, %s2702_s26   ;;  %s2702_s26 = sphi %s2755_s26, %s19_s26   ;;  %s2698_s25 = sphi %s2753_s25, %s3412_s25   ;;  %s2694_s24 = sphi %s2751_s24, %s3411_s24   ;;  %s2690_s23 = sphi %s2749_s23, %s3410_s23   ;;  %s2686_s22 = sphi %s2747_s22, %s3409_s22   ;;  %s2682_s21 = sphi %s2745_s21, %s3408_s21  }
   0x5   : > { %s31_s29 = sadd.s32 1, %s2698_s25  ;;  %s180_s30 = sadd.s32 1, %s2690_s23 }
   0x6   : > { %p33_p0 = scmp.ge.s32.totalorder %s31_s29, 2  ;;  %p190_p1 = scmp.ne.s32.totalorder %s2690_s23, %s2686_s22 }
   0x7   : > { %p191_p2 = scmp.eq.s32.totalorder %s1910_s27, 1  ;;  %p196_p3 = scmp.ne.s32.totalorder %s2686_s22, %s2682_s21 }
   0x8   : > { %s3414_s29 = smov (%p33_p0, %s31_s29), 0  ;;  %p197_p5 = scmp.eq.s32.totalorder %s1911_s28, 1 }
   0x9   : > { %p2785_p4 = por %p191_p2, %p190_p1  ;;  %s175_s8 = ssub.s32 %s2698_s25, %s3414_s29 }
   0xa   : > { %p1914_p6 = scmp.ge.s32.totalorder %s2702_s26, 1  ;;  %p178_p7 = scmp.eq.s32.totalorder %s175_s8, 0 }
   0xb   : > { %p2792_p8 = por %p197_p5, %p196_p3  ;;  %p249_p9 = scmp.lt.s32.totalorder %s2702_s26, 3 }
   0xc   : > { %s2798_s10 = scalar_select %p178_p7, %s2690_s23, %s180_s30  }
   0xd   : > { %p250_p10 = pnand %p1914_p6, %p249_p9 }
   0xe   : > { %p290_p11 = scmp.lt.s32.totalorder (!%p250_p10), %s2694_s24, 1  ;;  %s2704_s18 = smov (!%p250_p10), 32  }
   0xf   : > { %253 = sbr.rel (%p250_p10) target bundleno = 803 (0x323), region = 44  ;;  %s2706_s28 = smov (!%p250_p10), 96  }
  0x10   : > { %s2069_s30 = sshll.u32 (!%p250_p10), %s2694_s24, 10  ;;  %s2707_s15 = smov (!%p250_p10), [#allocation2]  }
  0x11   : > { %s3344_s14 = scalar_lea.hbm (!%p250_p10), %s3405_s6, %s2069_s30  ;;  %s2630_s16 = sshll.u32 (!%p250_p10), %s2707_s15, 4  ;;  %s2631_s16 = int_to_ptr.vmem [resolvable:$false] %s2630_s16 }
  0x12   : > { %s2632_s17 = scalar_lea.vmem (!%p250_p10), %s2631_s16, 2048 }
  0x14   : > { %v370_v0 = vld [vmem:[%s3401_s2 + $0x38] sm:$0xff]  ;;  %v369_v2 = vld [vmem:[%s3401_s2 + $0x30] sm:$0xff]  ;;  %s2814_s19 = scalar_select %p290_p11, %s2694_s24, 1  ;;  %v368_v4 = vld [vmem:[%s3401_s2 + $0x28] sm:$0xff]  ;;  %v2705_v25 = vmov 0.0   ;;  %vm354_vm0 = vcmask 261120  }
  0x15   : > { %v1927_v1 = vld [vmem:[%s3401_s2 + $0x78] sm:$0xff]  ;;  %2258 = vmatprep.subr.mxu1 %v370_v0  ;;  %v1926_v3 = vld [vmem:[%s3401_s2 + $0x70] sm:$0xff]  ;;  %v1925_v5 = vld [vmem:[%s3401_s2 + $0x68] sm:$0xff]  ;;  %2274 = vmatprep.mubr.f32.mxu1 %v2705_v25  ;;  %vm380_vm1 = vcmask 523264  }
  0x16   : > { %2230 = vmatprep.subr.mxu0 %v1927_v1  ;;  %2259 = vmatpush3.msra.mxu1 %v370_v0  ;;  %s2067_s8 = sshll.u32 %s2814_s19, 6  ;;  %v367_v6 = vld [vmem:[%s3401_s2 + $0x20] sm:$0xff]  ;;  %v366_v10 = vld [vmem:[%s3401_s2 + $0x18] sm:$0xff]  ;;  %v365_v14 = vld [vmem:[%s3401_s2 + $0x10] sm:$0xff]  ;;  %s287_s19 = sand.u32 1, %s2686_s22  }
  0x17   : > { %2231 = vmatpush3.msra.mxu0 %v1927_v1  ;;  %2260 = vmatprep.subr.mxu1 %v369_v2  ;;  %s2828_s13 = scalar_lea.vmem %s3400_s1, %s2067_s8  ;;  %v1924_v7 = vld [vmem:[%s3401_s2 + $0x60] sm:$0xff]  ;;  %v1923_v11 = vld [vmem:[%s3401_s2 + $0x58] sm:$0xff]  ;;  %v1922_v15 = vld [vmem:[%s3401_s2 + $0x50] sm:$0xff]  ;;  %s2884_s20 = scalar_lea.vmem %s3399_s0, %s2067_s8 }
  0x18   : > { %2232 = vmatprep.subr.mxu0 %v1926_v3  ;;  %2261 = vmatpush3.msra.mxu1 %v369_v2  ;;  %v314_v8 = vld [vmem:[%s2828_s13] sm:$0xff]  ;;  %v316_v9 = vld [vmem:[%s2828_s13 + $0x10] sm:$0xff]  ;;  %v315_v12 = vld [vmem:[%s2828_s13 + $0x8] sm:$0xff]  ;;  %s1915_s8 = sshll.u32 %s287_s19, 6  ;;  %s3354_s24 = scalar_lea.sflag [#allocation3], %s287_s19 }
  0x19   : > { %2233 = vmatpush3.msra.mxu0 %v1926_v3  ;;  %2262 = vmatprep.subr.mxu1 %v368_v4  ;;  %v317_v13 = vld [vmem:[%s2828_s13 + $0x18] sm:$0xff]  ;;  %v318_v16 = vld [vmem:[%s2828_s13 + $0x20] sm:$0xff]  ;;  %v319_v17 = vld [vmem:[%s2828_s13 + $0x28] sm:$0xff] }
  0x1a   : > { %2234 = vmatprep.subr.mxu0 %v1925_v5  ;;  %2263 = vmatpush3.msra.mxu1 %v368_v4  ;;  %v364_v18 = vld [vmem:[%s3401_s2 + $0x8] sm:$0xff]  ;;  %v363_v20 = vld [vmem:[%s3401_s2] sm:$0xff]  ;;  %v320_v22 = vld [vmem:[%s2828_s13 + $0x30] sm:$0xff] }
  0x1b   : > { %2235 = vmatpush3.msra.mxu0 %v1925_v5  ;;  %330 = vrot.lane.b32.xlu0 %v314_v8, %s2704_s18  ;;  %v1921_v19 = vld [vmem:[%s3401_s2 + $0x48] sm:$0xff]  ;;  %v1920_v21 = vld [vmem:[%s3401_s2 + $0x40] sm:$0xff]  ;;  %v321_v23 = vld [vmem:[%s2828_s13 + $0x38] sm:$0xff] }
  0x1c   : > { %334 = vrot.lane.b32.xlu1 %v316_v9, %s2704_s18  ;;  %2264 = vmatprep.subr.mxu1 %v367_v6  ;;  %v1948_v24 = vld [vmem:[%s3401_s2 + $0xb8] sm:$0xff]  ;;  %v1963_v27 = vld [vmem:[%s3401_s2 + $0xf0] sm:$0xff]  ;;  %v307_v28 = vld [vmem:[%s2884_s20 + $0x8] sm:$0xff] }
  0x1d   : > { %2236 = vmatprep.subr.mxu0 %v1924_v7  ;;  %2265 = vmatpush3.msra.mxu1 %v367_v6  ;;  %v1964_v26 = vld [vmem:[%s3401_s2 + $0xf8] sm:$0xff]  ;;  %v306_v29 = vld [vmem:[%s2884_s20] sm:$0xff]  ;;  %v1962_v30 = vld [vmem:[%s3401_s2 + $0xe8] sm:$0xff] }
  0x1e   : > { %2237 = vmatpush3.msra.mxu0 %v1924_v7  ;;  %2266 = vmatprep.subr.mxu1 %v366_v10  ;;  %v1961_v31 = vld [vmem:[%s3401_s2 + $0xe0] sm:$0xff]  ;;  %v309_v32 = vld [vmem:[%s2884_s20 + $0x18] sm:$0xff]  ;;  %v308_v33 = vld [vmem:[%s2884_s20 + $0x10] sm:$0xff] }
  0x1f   : > { %2238 = vmatprep.subr.mxu0 %v1923_v11  ;;  %332 = vrot.lane.b32.xlu0 %v315_v12, %s2704_s18  ;;  %v1960_v34 = vld [vmem:[%s3401_s2 + $0xd8] sm:$0xff]  ;;  %v1959_v35 = vld [vmem:[%s3401_s2 + $0xd0] sm:$0xff]  ;;  %v311_v36 = vld [vmem:[%s2884_s20 + $0x28] sm:$0xff] }
  0x20   : > { %336 = vrot.lane.b32.xlu1 %v317_v13, %s2704_s18  ;;  %2267 = vmatpush3.msra.mxu1 %v366_v10  ;;  %v310_v37 = vld [vmem:[%s2884_s20 + $0x20] sm:$0xff]  ;;  %v1958_v38 = vld [vmem:[%s3401_s2 + $0xc8] sm:$0xff]  ;;  %v2926_v40 = vld [vmem:[%s2884_s20 + $0x38] sm:$0xff] }
  0x21   : > { %2239 = vmatpush3.msra.mxu0 %v1923_v11  ;;  %2268 = vmatprep.subr.mxu1 %v365_v14  ;;  %v1957_v39 = vld [vmem:[%s3401_s2 + $0xc0] sm:$0xff]  ;;  %v312_v41 = vld [vmem:[%s2884_s20 + $0x30] sm:$0xff]  ;;  %v1946_v48 = vld [vmem:[%s3401_s2 + $0xa8] sm:$0xff] }
  0x22   : > { %2240 = vmatprep.subr.mxu0 %v1922_v15  ;;  %2269 = vmatpush3.msra.mxu1 %v365_v14  ;;  %v1947_v45 = vld [vmem:[%s3401_s2 + $0xb0] sm:$0xff]  ;;  %v1945_v52 = vld [vmem:[%s3401_s2 + $0xa0] sm:$0xff]  ;;  %v1944_v54 = vld [vmem:[%s3401_s2 + $0x98] sm:$0xff] }
  0x23   : > { %2241 = vmatpush3.msra.mxu0 %v1922_v15  ;;  %338 = vrot.lane.b32.xlu0 %v318_v16, %s2704_s18  ;;  %v1943_v58 = vld [vmem:[%s3401_s2 + $0x90] sm:$0xff]  ;;  %v1942_v60 = vld [vmem:[%s3401_s2 + $0x88] sm:$0xff]  ;;  %v1941_v62 = vld [vmem:[%s3401_s2 + $0x80] sm:$0xff] }
  0x24   : > { %340 = vrot.lane.b32.xlu1 %v319_v17, %s2704_s18  ;;  %2270 = vmatprep.subr.mxu1 %v364_v18  ;;  %v1979_v63 = vld [vmem:[%s3401_s2 + $0x138] sm:$0xff]  ;;  %v1978_v0 = vld [vmem:[%s3401_s2 + $0x130] sm:$0xff]  ;;  %v1977_v1 = vld [vmem:[%s3401_s2 + $0x128] sm:$0xff] }
  0x25   : > { %2242 = vmatprep.subr.mxu0 %v1921_v19  ;;  %2271 = vmatpush3.msra.mxu1 %v364_v18  ;;  %v1976_v2 = vld [vmem:[%s3401_s2 + $0x120] sm:$0xff]  ;;  %v1975_v4 = vld [vmem:[%s3401_s2 + $0x118] sm:$0xff]  ;;  %v1974_v5 = vld [vmem:[%s3401_s2 + $0x110] sm:$0xff] }
  0x26   : > { %2243 = vmatpush3.msra.mxu0 %v1921_v19  ;;  %2272 = vmatprep.subr.mxu1 %v363_v20  ;;  %v1973_v7 = vld [vmem:[%s3401_s2 + $0x108] sm:$0xff]  ;;  %v1972_v8 = vld [vmem:[%s3401_s2 + $0x100] sm:$0xff]  ;;  %v1134_v9 = vld [vmem:[%s3402_s3 + $0x38] sm:$0xff] }
  0x27   : > { %2244 = vmatprep.subr.mxu0 %v1920_v21  ;;  %342 = vrot.lane.b32.xlu0 %v320_v22, %s2704_s18  ;;  %v2002_v10 = vld [vmem:[%s3402_s3 + $0x78] sm:$0xff]  ;;  %v1133_v11 = vld [vmem:[%s3402_s3 + $0x30] sm:$0xff]  ;;  %v1132_v13 = vld [vmem:[%s3402_s3 + $0x28] sm:$0xff] }
  0x28   : > { %344 = vrot.lane.b32.xlu1 %v321_v23, %s2704_s18  ;;  %2273 = vmatpush3.msra.mxu1 %v363_v20  ;;  %v2001_v12 = vld [vmem:[%s3402_s3 + $0x70] sm:$0xff]  ;;  %v2000_v14 = vld [vmem:[%s3402_s3 + $0x68] sm:$0xff]  ;;  %v1131_v15 = vld [vmem:[%s3402_s3 + $0x20] sm:$0xff] }
  0x29   : > { %2245 = vmatpush3.msra.mxu0 %v1920_v21  ;;  %2246 = vmatprep.mubr.f32.mxu0 %v2705_v25  ;;  %v1999_v16 = vld [vmem:[%s3402_s3 + $0x60] sm:$0xff]  ;;  %v1130_v17 = vld [vmem:[%s3402_s3 + $0x18] sm:$0xff]  ;;  %v1129_v19 = vld [vmem:[%s3402_s3 + $0x10] sm:$0xff] }
  0x2a   : > { %2275 = vmatmul.mubr.f32.vlgmr.msra.gmra.mxu1 %v2705_v25  ;;  %2286 = vmatprep.subr.mxu0 %v1948_v24  ;;  %v1998_v18 = vld [vmem:[%s3402_s3 + $0x58] sm:$0xff]  ;;  %v1997_v20 = vld [vmem:[%s3402_s3 + $0x50] sm:$0xff]  ;;  %v1128_v21 = vld [vmem:[%s3402_s3 + $0x8] sm:$0xff] }
  0x2b   : > { %2314 = vmatprep.subr.mxu1 %v1964_v26  ;;  %1055 = vrot.lane.b32.xlu0 %v306_v29, %s2704_s18  ;;  %v1996_v22 = vld [vmem:[%s3402_s3 + $0x48] sm:$0xff]  ;;  %v1127_v23 = vld [vmem:[%s3402_s3] sm:$0xff] }
  0x2c   : > { %1057 = vrot.lane.b32.xlu1 %v307_v28, %s2704_s18  ;;  %2315 = vmatpush3.msra.mxu1 %v1964_v26 }
  0x2d   : > { %2316 = vmatprep.subr.mxu1 %v1963_v27 }
  0x2e   : > { %2317 = vmatpush3.msra.mxu1 %v1963_v27 }
  0x2f   : > { %2318 = vmatprep.subr.mxu1 %v1962_v30  ;;  %1059 = vrot.lane.b32.xlu0 %v308_v33, %s2704_s18 }
  0x30   : > { %1061 = vrot.lane.b32.xlu1 %v309_v32, %s2704_s18  ;;  %2319 = vmatpush3.msra.mxu1 %v1962_v30 }
  0x31   : > { %2320 = vmatprep.subr.mxu1 %v1961_v31 }
  0x32   : > { %2321 = vmatpush3.msra.mxu1 %v1961_v31 }
  0x33   : > { %2322 = vmatprep.subr.mxu1 %v1960_v34  ;;  %1063 = vrot.lane.b32.xlu0 %v310_v37, %s2704_s18 }
  0x34   : > { %1065 = vrot.lane.b32.xlu1 %v311_v36, %s2704_s18  ;;  %2323 = vmatpush3.msra.mxu1 %v1960_v34 }
  0x35   : > { %2324 = vmatprep.subr.mxu1 %v1959_v35 }
  0x36   : > { %2325 = vmatpush3.msra.mxu1 %v1959_v35 }
  0x37   : > { %2326 = vmatprep.subr.mxu1 %v1958_v38  ;;  %1067 = vrot.lane.b32.xlu0 %v312_v41, %s2704_s18 }
  0x38   : > { %1069 = vrot.lane.b32.xlu1 %v2926_v40, %s2704_s18  ;;  %2327 = vmatpush3.msra.mxu1 %v1958_v38 }
  0x39   : > { %2328 = vmatprep.subr.mxu1 %v1957_v39 }
  0x3a   : > { %2329 = vmatpush3.msra.mxu1 %v1957_v39 }
  0x3b   : > { %2370 = vmatprep.subr.mxu1 %v2002_v10 }
  0x8d   : > { %v2932_v42 = vpop.permute.xlu0 %330 }
  0x8e   : > { %v2934_v43 = vpop.permute.xlu1 %334  ;;  %v355_v44 = vsel %vm354_vm0, %v306_v29, %v2932_v42 }
  0x8f   : > { %2247 = vmatmul.mubr.msk.f32.vlgmr.msra.gmra.mxu0 %vm380_vm1, %v355_v44  ;;  %2277 = vmatprep.mubr.msk.f32.mxu1 %vm380_vm1, %v355_v44  ;;  %v2945_v46 = vsel %vm354_vm0, %v308_v33, %v2934_v43 }
  0x90   : > { %2287 = vmatpush3.msra.mxu0 %v1948_v24 }
  0x91   : > { %v2947_v47 = vpop.permute.xlu0 %332  ;;  %2288 = vmatprep.subr.mxu0 %v1947_v45 }
  0x92   : > { %v2952_v49 = vpop.permute.xlu1 %336  ;;  %v356_v50 = vsel %vm354_vm0, %v307_v28, %v2947_v47  ;;  %2289 = vmatpush3.msra.mxu0 %v1947_v45 }
  0x93   : > { %2249 = vmatprep.mubr.msk.f32.mxu0 %vm380_vm1, %v356_v50  ;;  %2278 = vmatmul.mubr.msk.f32.gmra.mxu1 %vm380_vm1, %v356_v50  ;;  %v2960_v51 = vsel %vm354_vm0, %v309_v32, %v2952_v49 }
  0x94   : > { %2290 = vmatprep.subr.mxu0 %v1946_v48  ;;  %2250 = vmatmul.mubr.msk.f32.gmra.mxu0 %vm380_vm1, %v2945_v46 }
  0x95   : > { %2280 = vmatprep.mubr.msk.f32.mxu1 %vm380_vm1, %v2945_v46  ;;  %2291 = vmatpush3.msra.mxu0 %v1946_v48  ;;  %v2969_v53 = vpop.permute.xlu0 %338 }
  0x96   : > { %v2974_v55 = vpop.permute.xlu1 %340  ;;  %2292 = vmatprep.subr.mxu0 %v1945_v52  ;;  %v2978_v56 = vsel %vm354_vm0, %v310_v37, %v2969_v53  ;;  %2252 = vmatprep.mubr.msk.f32.mxu0 %vm380_vm1, %v2960_v51 }
  0x97   : > { %2293 = vmatpush3.msra.mxu0 %v1945_v52  ;;  %2281 = vmatmul.mubr.msk.f32.gmra.mxu1 %vm380_vm1, %v2960_v51  ;;  %v2986_v57 = vsel %vm354_vm0, %v311_v36, %v2974_v55 }
  0x98   : > { %2294 = vmatprep.subr.mxu0 %v1944_v54  ;;  %2253 = vmatmul.mubr.msk.f32.gmra.mxu0 %vm380_vm1, %v2978_v56 }
  0x99   : > { %2283 = vmatprep.mubr.msk.f32.mxu1 %vm380_vm1, %v2978_v56  ;;  %2295 = vmatpush3.msra.mxu0 %v1944_v54  ;;  %v2995_v59 = vpop.permute.xlu0 %342 }
  0x9a   : > { %2296 = vmatprep.subr.mxu0 %v1943_v58  ;;  %v361_v61 = vsel %vm354_vm0, %v312_v41, %v2995_v59  ;;  %2255 = vmatprep.mubr.msk.f32.mxu0 %vm380_vm1, %v2986_v57  ;;  %v3035_v3 = vpop.permute.xlu1 %344 }
  0x9b   : > { %2297 = vmatpush3.msra.mxu0 %v1943_v58  ;;  %2284 = vmatmul.mubr.msk.f32.gmra.mxu1 %vm380_vm1, %v2986_v57  ;;  %v362_v6 = vsel %vm354_vm0, %v2926_v40, %v3035_v3 }
  0x9c   : > { %2298 = vmatprep.subr.mxu0 %v1942_v60  ;;  %2256 = vmatmul.mubr.msk.f32.gmra.mxu0 %vm380_vm1, %v361_v61 }
  0x9d   : > { %2299 = vmatpush3.msra.mxu0 %v1942_v60  ;;  %2330 = vmatprep.mubr.msk.f32.mxu1 %vm380_vm1, %v356_v50 }
  0x9e   : > { %2300 = vmatprep.subr.mxu0 %v1941_v62  ;;  %2302 = vmatprep.mubr.msk.f32.mxu0 %vm380_vm1, %v355_v44 }
  0x9f   : > { %2301 = vmatpush3.msra.mxu0 %v1941_v62  ;;  %2331 = vmatmul.mubr.msk.f32.vlgmr.msra.gmra.mxu1 %vm380_vm1, %v2945_v46 }
  0xa0   : > { %2342 = vmatprep.subr.mxu0 %v1979_v63  ;;  %2303 = vmatmul.mubr.msk.f32.vlgmr.msra.gmra.mxu0 %vm380_vm1, %v356_v50 }
  0xa1   : > { %2333 = vmatprep.mubr.msk.f32.mxu1 %vm380_vm1, %v2960_v51  ;;  %2343 = vmatpush3.msra.mxu0 %v1979_v63 }
  0xa2   : > { %2305 = vmatprep.mubr.msk.f32.mxu0 %vm380_vm1, %v2945_v46  ;;  %2344 = vmatprep.subr.mxu0 %v1978_v0 }
  0xa3   : > { %2345 = vmatpush3.msra.mxu0 %v1978_v0  ;;  %2334 = vmatmul.mubr.msk.f32.gmra.mxu1 %vm380_vm1, %v2978_v56 }
  0xa4   : > { %2346 = vmatprep.subr.mxu0 %v1977_v1  ;;  %2306 = vmatmul.mubr.msk.f32.gmra.mxu0 %vm380_vm1, %v2960_v51 }
  0xa5   : > { %2336 = vmatprep.mubr.msk.f32.mxu1 %vm380_vm1, %v2986_v57  ;;  %2347 = vmatpush3.msra.mxu0 %v1977_v1 }
  0xa6   : > { %2308 = vmatprep.mubr.msk.f32.mxu0 %vm380_vm1, %v2978_v56  ;;  %2348 = vmatprep.subr.mxu0 %v1976_v2 }
  0xa7   : > { %2349 = vmatpush3.msra.mxu0 %v1976_v2  ;;  %2337 = vmatmul.mubr.msk.f32.gmra.mxu1 %vm380_vm1, %v361_v61 }
  0xa8   : > { %2350 = vmatprep.subr.mxu0 %v1975_v4  ;;  %2309 = vmatmul.mubr.msk.f32.gmra.mxu0 %vm380_vm1, %v2986_v57 }
  0xa9   : > { %2351 = vmatpush3.msra.mxu0 %v1975_v4  ;;  %2311 = vmatprep.mubr.msk.f32.mxu0 %vm380_vm1, %v361_v61 }
  0xaa   : > { %2352 = vmatprep.subr.mxu0 %v1974_v5  ;;  %2339 = vmatprep.mubr.msk.f32.mxu1 %vm380_vm1, %v362_v6 }
  0xab   : > { %2353 = vmatpush3.msra.mxu0 %v1974_v5  ;;  %2340 = vmatmul.mubr.f32.gmra.mxu1 %v2705_v25 }
  0xac   : > { %2354 = vmatprep.subr.mxu0 %v1973_v7  ;;  %2312 = vmatmul.mubr.msk.f32.gmra.mxu0 %vm380_vm1, %v362_v6 }
  0xad   : > { %2355 = vmatpush3.msra.mxu0 %v1973_v7  ;;  %2358 = vmatprep.mubr.msk.f32.mxu0 %vm380_vm1, %v2945_v46 }
  0xae   : > { %2356 = vmatprep.subr.mxu0 %v1972_v8  ;;  %2386 = vmatprep.mubr.f32.mxu1 %v2705_v25 }
  0xaf   : > { %2357 = vmatpush3.msra.mxu0 %v1972_v8  ;;  %2371 = vmatpush3.msra.mxu1 %v2002_v10  ;;  %v1986_v8 = vld [vmem:[%s3403_s4] ss:$0 sm:$0xff] }
  0xb0   : > { %2359 = vmatmul.mubr.msk.f32.vlgmr.msra.gmra.mxu0 %vm380_vm1, %v2960_v51  ;;  %2398 = vmatprep.subr.mxu0 %v1134_v9 }
  0xb1   : > { %2361 = vmatprep.mubr.msk.f32.mxu0 %vm380_vm1, %v2978_v56  ;;  %2399 = vmatpush3.msra.mxu0 %v1134_v9 }
  0xb2   : > { %2400 = vmatprep.subr.mxu0 %v1133_v11  ;;  %2372 = vmatprep.subr.mxu1 %v2001_v12 }
  0xb3   : > { %2401 = vmatpush3.msra.mxu0 %v1133_v11  ;;  %2373 = vmatpush3.msra.mxu1 %v2001_v12 }
  0xb4   : > { %2362 = vmatmul.mubr.msk.f32.gmra.mxu0 %vm380_vm1, %v2986_v57  ;;  %2402 = vmatprep.subr.mxu0 %v1132_v13 }
  0xb5   : > { %2364 = vmatprep.mubr.msk.f32.mxu0 %vm380_vm1, %v361_v61  ;;  %2374 = vmatprep.subr.mxu1 %v2000_v14 }
  0xb6   : > { %2403 = vmatpush3.msra.mxu0 %v1132_v13  ;;  %2375 = vmatpush3.msra.mxu1 %v2000_v14 }
  0xb7   : > { %2404 = vmatprep.subr.mxu0 %v1131_v15  ;;  %2376 = vmatprep.subr.mxu1 %v1999_v16 }
  0xb8   : > { %2365 = vmatmul.mubr.msk.f32.gmra.mxu0 %vm380_vm1, %v362_v6  ;;  %2377 = vmatpush3.msra.mxu1 %v1999_v16 }
  0xb9   : > { %2367 = vmatprep.mubr.f32.mxu0 %v2705_v25  ;;  %2405 = vmatpush3.msra.mxu0 %v1131_v15 }
  0xba   : > { %2406 = vmatprep.subr.mxu0 %v1130_v17  ;;  %2378 = vmatprep.subr.mxu1 %v1998_v18 }
  0xbb   : > { %2407 = vmatpush3.msra.mxu0 %v1130_v17  ;;  %2379 = vmatpush3.msra.mxu1 %v1998_v18 }
  0xbc   : > { %2368 = vmatmul.mubr.f32.gmra.mxu0 %v2705_v25  ;;  %2408 = vmatprep.subr.mxu0 %v1129_v19 }
  0xbd   : > { %2414 = vmatprep.mubr.f32.mxu0 %v2705_v25  ;;  %2380 = vmatprep.subr.mxu1 %v1997_v20 }
  0xbe   : > { %2409 = vmatpush3.msra.mxu0 %v1129_v19  ;;  %2381 = vmatpush3.msra.mxu1 %v1997_v20 }
  0xbf   : > { %2410 = vmatprep.subr.mxu0 %v1128_v21  ;;  %2382 = vmatprep.subr.mxu1 %v1996_v22 }
  0xc0   : > { %2411 = vmatpush3.msra.mxu0 %v1128_v21  ;;  %2383 = vmatpush3.msra.mxu1 %v1996_v22 }
  0xc1   : > { %2412 = vmatprep.subr.mxu0 %v1127_v23 }
  0xc2   : > { %2413 = vmatpush3.msra.mxu0 %v1127_v23 }
  0xc3   : > { %2415 = vmatmul.mubr.f32.vlgmr.msra.gmra.mxu0 %v2705_v25 }
  0xea   : > { %v2276_v24 = vpop.f32.mrf.mxu1 }
  0xec   : > { %v576_v27 = vpop.f32.mrf.mxu1 }
 0x14f   : > { %v2248_v26 = vpop.f32.mrf.mxu0 }
 0x150   : > { %v582_v54 = vadd.f32 %v2276_v24, %v2248_v26 }
 0x151   : > { %v471_v28 = vpop.f32.mrf.mxu0 }
 0x152   : > { %v577_v57 = vadd.f32 %v576_v27, %v471_v28 }
 0x153   : > { %v2279_v29 = vpop.f32.mrf.mxu1 }
 0x154   : > { %v2251_v30 = vpop.f32.mrf.mxu0 }
 0x155   : > { %v586_v31 = vpop.f32.mrf.mxu1  ;;  %v592_v62 = vadd.f32 %v2279_v29, %v2251_v30 }
 0x156   : > { %v481_v32 = vpop.f32.mrf.mxu0 }
 0x157   : > { %v2282_v33 = vpop.f32.mrf.mxu1  ;;  %v587_v1 = vadd.f32 %v586_v31, %v481_v32 }
 0x158   : > { %v2254_v34 = vpop.f32.mrf.mxu0 }
 0x159   : > { %v596_v35 = vpop.f32.mrf.mxu1  ;;  %v602_v6 = vadd.f32 %v2282_v33, %v2254_v34 }
 0x15a   : > { %v491_v36 = vpop.f32.mrf.mxu0 }
 0x15b   : > { %v2285_v37 = vpop.f32.mrf.mxu1  ;;  %v597_v12 = vadd.f32 %v596_v35, %v491_v36 }
 0x15c   : > { %v2257_v38 = vpop.f32.mrf.mxu0 }
 0x15d   : > { %v606_v39 = vpop.f32.mrf.mxu1  ;;  %v612_v19 = vadd.f32 %v2285_v37, %v2257_v38 }
 0x15e   : > { %v501_v40 = vpop.f32.mrf.mxu0 }
 0x15f   : > { %v2332_v41 = vpop.f32.mrf.mxu1  ;;  %v607_v28 = vadd.f32 %v606_v39, %v501_v40 }
 0x160   : > { %v2304_v44 = vpop.f32.mrf.mxu0 }
 0x161   : > { %v815_v46 = vpop.f32.mrf.mxu1  ;;  %v733_v58 = vadd.f32 %v2304_v44, %v582_v54 }
 0x162   : > { %v693_v45 = vpop.f32.mrf.mxu0 }
 0x163   : > { %v2335_v51 = vpop.f32.mrf.mxu1  ;;  %v732_v63 = vadd.f32 %v693_v45, %v577_v57  ;;  %v855_v5 = vadd.f32 %v2332_v41, %v733_v58 }
 0x164   : > { %v2307_v48 = vpop.f32.mrf.mxu0 }
 0x165   : > { %v825_v60 = vpop.f32.mrf.mxu1  ;;  %v735_v2 = vadd.f32 %v2307_v48, %v592_v62  ;;  %v854_v11 = vadd.f32 %v815_v46, %v732_v63 }
 0x166   : > { %v703_v50 = vpop.f32.mrf.mxu0 }
 0x167   : > { %v2338_v4 = vpop.f32.mrf.mxu1  ;;  %v734_v9 = vadd.f32 %v703_v50, %v587_v1  ;;  %v857_v18 = vadd.f32 %v2335_v51, %v735_v2 }
 0x168   : > { %v2310_v52 = vpop.f32.mrf.mxu0 }
 0x169   : > { %v737_v13 = vadd.f32 %v2310_v52, %v602_v6  ;;  %v835_v15 = vpop.f32.mrf.mxu1  ;;  %v856_v27 = vadd.f32 %v825_v60, %v734_v9 }
 0x16a   : > { %v713_v56 = vpop.f32.mrf.mxu0 }
 0x16b   : > { %v736_v20 = vadd.f32 %v713_v56, %v597_v12  ;;  %v2341_v22 = vpop.f32.mrf.mxu1  ;;  %v859_v31 = vadd.f32 %v2338_v4, %v737_v13 }
 0x16c   : > { %v2313_v61 = vpop.f32.mrf.mxu0 }
 0x16d   : > { %v739_v29 = vadd.f32 %v2313_v61, %v612_v19  ;;  %v858_v41 = vadd.f32 %v835_v15, %v736_v20  ;;  %v845_v44 = vpop.f32.mrf.mxu1  ;;  %v3135_v15 = vld [vmem:[%s3402_s3 + $0xb8] sm:$0xff]  ;;  %v1056_v19 = vpop.permute.xlu0 %1055  ;;  %v2037_v20 = vld [vmem:[%s3402_s3 + $0xe8] sm:$0xff] }
 0x16e   : > { %v723_v0 = vpop.f32.mrf.mxu0 }
 0x16f   : > { %v738_v35 = vadd.f32 %v723_v0, %v607_v28  ;;  %v861_v46 = vadd.f32 %v2341_v22, %v739_v29  ;;  %v2035_v28 = vld [vmem:[%s3402_s3 + $0xd8] sm:$0xff] }
 0x170   : > { %v2360_v7 = vpop.f32.mrf.mxu0 }
 0x171   : > { %v977_v10 = vadd.f32 %v2360_v7, %v855_v5  ;;  %v860_v51 = vadd.f32 %v845_v44, %v738_v35 }
 0x172   : > { %v937_v14 = vpop.f32.mrf.mxu0 }
 0x173   : > { %v992_v16 = vadd.f32 %v1986_v8, %v977_v10  ;;  %v976_v17 = vadd.f32 %v937_v14, %v854_v11  ;;  %v1995_v11 = vld [vmem:[%s3402_s3 + $0x40] sm:$0xff]  ;;  %v1058_v14 = vpop.permute.xlu1 %1057 }
 0x174   : > { %v2363_v21 = vpop.f32.mrf.mxu0  ;;  %2384 = vmatprep.subr.mxu1 %v1995_v11 }
 0x175   : > { %v1988_v23 = vmul.f32 -1.442695, %v992_v16  ;;  %v991_v24 = vadd.f32 %v1986_v8, %v976_v17  ;;  %v979_v26 = vadd.f32 %v2363_v21, %v857_v18  ;;  %2385 = vmatpush3.msra.mxu1 %v1995_v11  ;;  %v2038_v16 = vld [vmem:[%s3402_s3 + $0xf0] sm:$0xff] }
 0x176   : > { %v947_v30 = vpop.f32.mrf.mxu0  ;;  %2426 = vmatprep.subr.mxu1 %v3135_v15 }
 0x177   : > { %2570 = vpow2.f32 %v1988_v23  ;;  %v1987_v32 = vmul.f32 -1.442695, %v991_v24  ;;  %v994_v33 = vadd.f32 %v1986_v8, %v979_v26  ;;  %v978_v34 = vadd.f32 %v947_v30, %v856_v27  ;;  %v2036_v23 = vld [vmem:[%s3402_s3 + $0xe0] sm:$0xff]  ;;  %v1062_v27 = vpop.permute.xlu1 %1061 }
 0x178   : > { %v2366_v36 = vpop.f32.mrf.mxu0 }
 0x179   : > { %2572 = vpow2.f32 %v1987_v32  ;;  %v1990_v37 = vmul.f32 -1.442695, %v994_v33  ;;  %v993_v38 = vadd.f32 %v1986_v8, %v978_v34  ;;  %v981_v45 = vadd.f32 %v2366_v36, %v859_v31  ;;  %v1060_v31 = vpop.permute.xlu0 %1059  ;;  %v2034_v32 = vld [vmem:[%s3402_s3 + $0xd0] sm:$0xff]  ;;  %v2033_v36 = vld [vmem:[%s3402_s3 + $0xc8] sm:$0xff] }
 0x17a   : > { %v957_v48 = vpop.f32.mrf.mxu0 }
 0x17b   : > { %2574 = vpow2.f32 %v1990_v37  ;;  %v1989_v50 = vmul.f32 -1.442695, %v993_v38  ;;  %v996_v39 = vadd.f32 %v1986_v8, %v981_v45  ;;  %v980_v40 = vadd.f32 %v957_v48, %v858_v41  ;;  %v1066_v44 = vpop.permute.xlu1 %1065  ;;  %v2032_v38 = vld [vmem:[%s3402_s3 + $0xc0] sm:$0xff] }
 0x17c   : > { %v2369_v52 = vpop.f32.mrf.mxu0 }
 0x17d   : > { %2576 = vpow2.f32 %v1989_v50  ;;  %v1992_v54 = vmul.f32 -1.442695, %v996_v39  ;;  %v995_v56 = vadd.f32 %v1986_v8, %v980_v40  ;;  %v983_v57 = vadd.f32 %v2369_v52, %v861_v46  ;;  %v1064_v46 = vpop.permute.xlu0 %1063 }
 0x17e   : > { %v967_v58 = vpop.f32.mrf.mxu0 }
 0x17f   : > { %2578 = vpow2.f32 %v1992_v54  ;;  %v1991_v60 = vmul.f32 -1.442695, %v995_v56  ;;  %v998_v61 = vadd.f32 %v1986_v8, %v983_v57  ;;  %v982_v62 = vadd.f32 %v967_v58, %v860_v51  ;;  %v1070_v51 = vpop.permute.xlu1 %1069 }
 0x181   : > { %2580 = vpow2.f32 %v1991_v60  ;;  %v1994_v63 = vmul.f32 -1.442695, %v998_v61  ;;  %v997_v0 = vadd.f32 %v1986_v8, %v982_v62  ;;  %v2039_v8 = vld [vmem:[%s3402_s3 + $0xf8] sm:$0xff]  ;;  %v1068_v56 = vpop.permute.xlu0 %1067 }
 0x182   : > { %2454 = vmatprep.subr.mxu0 %v2039_v8 }
 0x183   : > { %2582 = vpow2.f32 %v1994_v63  ;;  %v1993_v1 = vmul.f32 -1.442695, %v997_v0  ;;  %2455 = vmatpush3.msra.mxu0 %v2039_v8  ;;  %v2022_v0 = vld [vmem:[%s3402_s3 + $0xb0] sm:$0xff]  ;;  %v2017_v8 = vld [vmem:[%s3402_s3 + $0x88] sm:$0xff] }
 0x184   : > { %v2571_v2 = vpop.eup %2570  ;;  %2456 = vmatprep.subr.mxu0 %v2038_v16 }
 0x185   : > { %v1024_v4 = vadd.f32 1.0, %v2571_v2  ;;  %2584 = vpow2.f32 %v1993_v1  ;;  %2457 = vmatpush3.msra.mxu0 %v2038_v16  ;;  %v2051_v16 = vld [vmem:[%s3402_s3 + $0x120] sm:$0xff] }
 0x186   : > { %v2573_v5 = vpop.eup %2572  ;;  %2458 = vmatprep.subr.mxu0 %v2037_v20 }
 0x187   : > { %2586 = vrcp.f32 %v1024_v4  ;;  %v1023_v6 = vadd.f32 1.0, %v2573_v5  ;;  %2459 = vmatpush3.msra.mxu0 %v2037_v20  ;;  %v2020_v5 = vld [vmem:[%s3402_s3 + $0xa0] sm:$0xff] }
 0x188   : > { %v2575_v7 = vpop.eup %2574  ;;  %2460 = vmatprep.subr.mxu0 %v2036_v23  ;;  %v2047_v20 = vld [vmem:[%s3402_s3 + $0x100] sm:$0xff] }
 0x189   : > { %2588 = vrcp.f32 %v1023_v6  ;;  %v1026_v9 = vadd.f32 1.0, %v2575_v7  ;;  %2461 = vmatpush3.msra.mxu0 %v2036_v23 }
 0x18a   : > { %v2577_v10 = vpop.eup %2576  ;;  %2462 = vmatprep.subr.mxu0 %v2035_v28 }
 0x18b   : > { %2590 = vrcp.f32 %v1026_v9  ;;  %v1025_v12 = vadd.f32 1.0, %v2577_v10  ;;  %2463 = vmatpush3.msra.mxu0 %v2035_v28  ;;  %v2019_v9 = vld [vmem:[%s3402_s3 + $0x98] sm:$0xff]  ;;  %v2018_v10 = vld [vmem:[%s3402_s3 + $0x90] sm:$0xff] }
 0x18c   : > { %v2579_v13 = vpop.eup %2578  ;;  %2464 = vmatprep.subr.mxu0 %v2034_v32 }
 0x18d   : > { %2592 = vrcp.f32 %v1025_v12  ;;  %v1028_v17 = vadd.f32 1.0, %v2579_v13  ;;  %2465 = vmatpush3.msra.mxu0 %v2034_v32  ;;  %v2054_v13 = vld [vmem:[%s3402_s3 + $0x138] sm:$0xff] }
 0x18e   : > { %v2581_v18 = vpop.eup %2580  ;;  %2466 = vmatprep.subr.mxu0 %v2033_v36 }
 0x18f   : > { %2594 = vrcp.f32 %v1028_v17  ;;  %v1027_v21 = vadd.f32 1.0, %v2581_v18  ;;  %2467 = vmatpush3.msra.mxu0 %v2033_v36  ;;  %v2050_v17 = vld [vmem:[%s3402_s3 + $0x118] sm:$0xff] }
 0x190   : > { %v2583_v22 = vpop.eup %2582  ;;  %2468 = vmatprep.subr.mxu0 %v2032_v38 }
 0x191   : > { %2596 = vrcp.f32 %v1027_v21  ;;  %v1030_v24 = vadd.f32 1.0, %v2583_v22  ;;  %2469 = vmatpush3.msra.mxu0 %v2032_v38  ;;  %v2416_v21 = vpop.f32.mrf.mxu0 }
 0x192   : > { %v2585_v26 = vpop.eup %2584 }
 0x193   : > { %2598 = vrcp.f32 %v1030_v24  ;;  %v1029_v29 = vadd.f32 1.0, %v2585_v26  ;;  %v1336_v22 = vpop.f32.mrf.mxu0 }
 0x194   : > { %v3150_v30 = vpop.eup %2586 }
 0x195   : > { %2600 = vrcp.f32 %v1029_v29  ;;  %v1080_v33 = vmul.f32 %v3150_v30, %v1058_v14  ;;  %v2052_v14 = vld [vmem:[%s3402_s3 + $0x128] sm:$0xff] }
 0x196   : > { %v3156_v34 = vpop.eup %2588 }
 0x197   : > { %v1079_v35 = vmul.f32 %v3156_v34, %v1056_v19  ;;  %1097 = vrot.lane.b32.xlu1 %v1080_v33, %s2706_s28  ;;  %v2049_v19 = vld [vmem:[%s3402_s3 + $0x110] sm:$0xff] }
 0x198   : > { %v3162_v41 = vpop.eup %2590 }
 0x199   : > { %v1082_v37 = vmul.f32 %v3162_v41, %v1062_v27  ;;  %1095 = vrot.lane.b32.xlu0 %v1079_v35, %s2706_s28 }
 0x19a   : > { %v3168_v45 = vpop.eup %2592 }
 0x19b   : > { %v1081_v48 = vmul.f32 %v3168_v45, %v1060_v31  ;;  %1101 = vrot.lane.b32.xlu1 %v1082_v37, %s2706_s28 }
 0x19c   : > { %v3171_v50 = vpop.eup %2594 }
 0x19d   : > { %v1084_v39 = vmul.f32 %v3171_v50, %v1066_v44  ;;  %1099 = vrot.lane.b32.xlu0 %v1081_v48, %s2706_s28 }
 0x19e   : > { %v3174_v40 = vpop.eup %2596 }
 0x19f   : > { %v1083_v52 = vmul.f32 %v3174_v40, %v1064_v46  ;;  %1105 = vrot.lane.b32.xlu1 %v1084_v39, %s2706_s28 }
 0x1a0   : > { %v3177_v54 = vpop.eup %2598 }
 0x1a1   : > { %v1086_v57 = vmul.f32 %v3177_v54, %v1070_v51  ;;  %1103 = vrot.lane.b32.xlu0 %v1083_v52, %s2706_s28 }
 0x1a2   : > { %v3180_v58 = vpop.eup %2600 }
 0x1a3   : > { %v1085_v60 = vmul.f32 %v3180_v58, %v1068_v56  ;;  %1109 = vrot.lane.b32.xlu1 %v1086_v57, %s2706_s28 }
 0x1a5   : > { %1107 = vrot.lane.b32.xlu0 %v1085_v60, %s2706_s28  ;;  %s3314_s28 = scalar_lea.vmem [#allocation2], %s1915_s8 }
 0x1a6   : > { %s1814_s18 = sshll.u32 %s3314_s28, 4  ;;  %s3346_s18 = int_to_ptr.vmem [resolvable:$true] %s1814_s18 }
 0x1a7   : > { %p2633_p1 = scmp.lt.s32.totalorder %s3346_s18, %s2631_s16 }
 0x209   : > { %v1098_v61 = vpop.permute.xlu1 %1097 }
 0x20a   : > { %v1120_v1 = vsel %vm354_vm0, %v1098_v61, %v2947_v47 }
 0x20b   : > { %v1096_v62 = vpop.permute.xlu0 %1095 }
 0x20c   : > { %v1119_v63 = vsel %vm354_vm0, %v1096_v62, %v2932_v42  ;;  %v2021_v42 = vld [vmem:[%s3402_s3 + $0xa8] sm:$0xff] }
 0x20d   : > { %2387 = vmatmul.mubr.msk.f32.vlgmr.msra.gmra.mxu1 %vm380_vm1, %v1119_v63  ;;  %2417 = vmatprep.mubr.msk.f32.mxu0 %vm380_vm1, %v1119_v63  ;;  %v1102_v2 = vpop.permute.xlu1 %1101 }
 0x20e   : > { %2427 = vmatpush3.msra.mxu1 %v3135_v15  ;;  %2389 = vmatprep.mubr.msk.f32.mxu1 %vm380_vm1, %v1120_v1  ;;  %v3209_v6 = vsel %vm354_vm0, %v1102_v2, %v2952_v49 }
 0x20f   : > { %2418 = vmatmul.mubr.msk.f32.gmra.mxu0 %vm380_vm1, %v1120_v1  ;;  %2428 = vmatprep.subr.mxu1 %v2022_v0  ;;  %v1100_v4 = vpop.permute.xlu0 %1099 }
 0x210   : > { %2429 = vmatpush3.msra.mxu1 %v2022_v0  ;;  %v3200_v47 = vsel %vm354_vm0, %v1100_v4, %v2934_v43 }
 0x211   : > { %2430 = vmatprep.subr.mxu1 %v2021_v42  ;;  %2390 = vmatmul.mubr.msk.f32.gmra.mxu1 %vm380_vm1, %v3200_v47  ;;  %v1106_v7 = vpop.permute.xlu1 %1105 }
 0x212   : > { %2420 = vmatprep.mubr.msk.f32.mxu0 %vm380_vm1, %v3200_v47  ;;  %2431 = vmatpush3.msra.mxu1 %v2021_v42  ;;  %v1124_v11 = vsel %vm354_vm0, %v1106_v7, %v2974_v55  ;;  %v2016_v55 = vld [vmem:[%s3402_s3 + $0x80] sm:$0xff] }
 0x213   : > { %2392 = vmatprep.mubr.msk.f32.mxu1 %vm380_vm1, %v3209_v6  ;;  %2421 = vmatmul.mubr.msk.f32.gmra.mxu0 %vm380_vm1, %v3209_v6  ;;  %v1104_v43 = vpop.permute.xlu0 %1103 }
 0x214   : > { %2432 = vmatprep.subr.mxu1 %v2020_v5  ;;  %v3222_v49 = vsel %vm354_vm0, %v1104_v43, %v2969_v53 }
 0x215   : > { %2433 = vmatpush3.msra.mxu1 %v2020_v5  ;;  %2423 = vmatprep.mubr.msk.f32.mxu0 %vm380_vm1, %v3222_v49  ;;  %v1110_v15 = vpop.permute.xlu1 %1109 }
 0x216   : > { %2434 = vmatprep.subr.mxu1 %v2019_v9  ;;  %2393 = vmatmul.mubr.msk.f32.gmra.mxu1 %vm380_vm1, %v3222_v49  ;;  %v1126_v18 = vsel %vm354_vm0, %v1110_v15, %v3035_v3  ;;  %v2048_v3 = vld [vmem:[%s3402_s3 + $0x108] sm:$0xff] }
 0x217   : > { %2435 = vmatpush3.msra.mxu1 %v2019_v9  ;;  %2395 = vmatprep.mubr.msk.f32.mxu1 %vm380_vm1, %v1124_v11  ;;  %v1108_v53 = vpop.permute.xlu0 %1107 }
 0x218   : > { %2424 = vmatmul.mubr.msk.f32.gmra.mxu0 %vm380_vm1, %v1124_v11  ;;  %2436 = vmatprep.subr.mxu1 %v2018_v10  ;;  %v1125_v12 = vsel %vm354_vm0, %v1108_v53, %v2995_v59  ;;  %v2053_v59 = vld [vmem:[%s3402_s3 + $0x130] sm:$0xff] }
 0x219   : > { %2437 = vmatpush3.msra.mxu1 %v2018_v10  ;;  %2470 = vmatprep.mubr.msk.f32.mxu0 %vm380_vm1, %v1120_v1 }
 0x21a   : > { %2438 = vmatprep.subr.mxu1 %v2017_v8  ;;  %2396 = vmatmul.mubr.msk.f32.gmra.mxu1 %vm380_vm1, %v1125_v12 }
 0x21b   : > { %2439 = vmatpush3.msra.mxu1 %v2017_v8  ;;  %2442 = vmatprep.mubr.msk.f32.mxu1 %vm380_vm1, %v1119_v63 }
 0x21c   : > { %2440 = vmatprep.subr.mxu1 %v2016_v55  ;;  %2471 = vmatmul.mubr.msk.f32.vlgmr.msra.gmra.mxu0 %vm380_vm1, %v3200_v47 }
 0x21d   : > { %2441 = vmatpush3.msra.mxu1 %v2016_v55  ;;  %2473 = vmatprep.mubr.msk.f32.mxu0 %vm380_vm1, %v3209_v6 }
 0x21e   : > { %2482 = vmatprep.subr.mxu1 %v2054_v13  ;;  %2443 = vmatmul.mubr.msk.f32.vlgmr.msra.gmra.mxu1 %vm380_vm1, %v1120_v1 }
 0x21f   : > { %2483 = vmatpush3.msra.mxu1 %v2054_v13  ;;  %2445 = vmatprep.mubr.msk.f32.mxu1 %vm380_vm1, %v3200_v47 }
 0x220   : > { %2474 = vmatmul.mubr.msk.f32.gmra.mxu0 %vm380_vm1, %v3222_v49  ;;  %2484 = vmatprep.subr.mxu1 %v2053_v59 }
 0x221   : > { %2476 = vmatprep.mubr.msk.f32.mxu0 %vm380_vm1, %v1124_v11  ;;  %2485 = vmatpush3.msra.mxu1 %v2053_v59 }
 0x222   : > { %2486 = vmatprep.subr.mxu1 %v2052_v14  ;;  %2446 = vmatmul.mubr.msk.f32.gmra.mxu1 %vm380_vm1, %v3209_v6 }
 0x223   : > { %2487 = vmatpush3.msra.mxu1 %v2052_v14  ;;  %2448 = vmatprep.mubr.msk.f32.mxu1 %vm380_vm1, %v3222_v49 }
 0x224   : > { %2477 = vmatmul.mubr.msk.f32.gmra.mxu0 %vm380_vm1, %v1125_v12  ;;  %2488 = vmatprep.subr.mxu1 %v2051_v16 }
 0x225   : > { %2479 = vmatprep.mubr.msk.f32.mxu0 %vm380_vm1, %v1126_v18  ;;  %2489 = vmatpush3.msra.mxu1 %v2051_v16 }
 0x226   : > { %2490 = vmatprep.subr.mxu1 %v2050_v17  ;;  %2449 = vmatmul.mubr.msk.f32.gmra.mxu1 %vm380_vm1, %v1124_v11 }
 0x227   : > { %2491 = vmatpush3.msra.mxu1 %v2050_v17  ;;  %2451 = vmatprep.mubr.msk.f32.mxu1 %vm380_vm1, %v1125_v12 }
 0x228   : > { %2492 = vmatprep.subr.mxu1 %v2049_v19  ;;  %2480 = vmatmul.mubr.f32.gmra.mxu0 %v2705_v25 }
 0x229   : > { %2493 = vmatpush3.msra.mxu1 %v2049_v19 }
 0x22a   : > { %2494 = vmatprep.subr.mxu1 %v2048_v3  ;;  %2452 = vmatmul.mubr.msk.f32.gmra.mxu1 %vm380_vm1, %v1126_v18 }
 0x22b   : > { %2495 = vmatpush3.msra.mxu1 %v2048_v3  ;;  %2498 = vmatprep.mubr.msk.f32.mxu1 %vm380_vm1, %v3200_v47 }
 0x22c   : > { %2496 = vmatprep.subr.mxu1 %v2047_v20 }
 0x22d   : > { %2497 = vmatpush3.msra.mxu1 %v2047_v20 }
 0x22e   : > { %2499 = vmatmul.mubr.msk.f32.vlgmr.msra.gmra.mxu1 %vm380_vm1, %v3209_v6 }
 0x22f   : > { %2501 = vmatprep.mubr.msk.f32.mxu1 %vm380_vm1, %v3222_v49  ;;  %v2061_v49 = vld [vmem:[%s3404_s5] ss:$0 sm:$0xff] }
 0x232   : > { %2502 = vmatmul.mubr.msk.f32.gmra.mxu1 %vm380_vm1, %v1124_v11 }
 0x233   : > { %2504 = vmatprep.mubr.msk.f32.mxu1 %vm380_vm1, %v1125_v12 }
 0x236   : > { %2505 = vmatmul.mubr.msk.f32.gmra.mxu1 %vm380_vm1, %v1126_v18 }
 0x237   : > { %2507 = vmatprep.mubr.f32.mxu1 %v2705_v25 }
 0x23a   : > { %2508 = vmatmul.mubr.f32.gmra.mxu1 %v2705_v25 }
 0x2cd   : > { %v2388_v23 = vpop.f32.mrf.mxu1 }
 0x2ce   : > { %v1342_v60 = vadd.f32 %v2416_v21, %v2388_v23 }
 0x2cf   : > { %v2419_v24 = vpop.f32.mrf.mxu0  ;;  %v1231_v26 = vpop.f32.mrf.mxu1 }
 0x2d0   : > { %v1337_v62 = vadd.f32 %v1336_v22, %v1231_v26 }
 0x2d1   : > { %v1346_v27 = vpop.f32.mrf.mxu0  ;;  %v2391_v28 = vpop.f32.mrf.mxu1 }
 0x2d2   : > { %v1352_v2 = vadd.f32 %v2419_v24, %v2391_v28 }
 0x2d3   : > { %v2422_v29 = vpop.f32.mrf.mxu0  ;;  %v1241_v31 = vpop.f32.mrf.mxu1 }
 0x2d4   : > { %v1347_v47 = vadd.f32 %v1346_v27, %v1241_v31 }
 0x2d5   : > { %v1356_v32 = vpop.f32.mrf.mxu0 }
 0x2d6   : > { %v2394_v33 = vpop.f32.mrf.mxu1 }
 0x2d7   : > { %v1362_v7 = vadd.f32 %v2422_v29, %v2394_v33 }
 0x2d8   : > { %v2425_v35 = vpop.f32.mrf.mxu0  ;;  %v1251_v36 = vpop.f32.mrf.mxu1 }
 0x2d9   : > { %v1357_v8 = vadd.f32 %v1356_v32, %v1251_v36 }
 0x2da   : > { %v1366_v44 = vpop.f32.mrf.mxu0  ;;  %v2397_v37 = vpop.f32.mrf.mxu1 }
 0x2db   : > { %v1372_v15 = vadd.f32 %v2425_v35, %v2397_v37 }
 0x2dc   : > { %v1261_v38 = vpop.f32.mrf.mxu1  ;;  %v2472_v46 = vpop.f32.mrf.mxu0 }
 0x2dd   : > { %v1367_v21 = vadd.f32 %v1366_v44, %v1261_v38 }
 0x2de   : > { %v2444_v48 = vpop.f32.mrf.mxu1  ;;  %v1575_v25 = vpop.f32.mrf.mxu0 }
 0x2df   : > { %v1493_v63 = vadd.f32 %v2444_v48, %v1342_v60 }
 0x2e0   : > { %v1453_v39 = vpop.f32.mrf.mxu1  ;;  %v2475_v56 = vpop.f32.mrf.mxu0 }
 0x2e1   : > { %v1492_v42 = vadd.f32 %v1453_v39, %v1337_v62  ;;  %v1615_v6 = vadd.f32 %v2472_v46, %v1493_v63  ;;  %v2618_v62 = vld [vmem:[%s2884_s20 + $0x8] sm:$0xff] }
 0x2e2   : > { %v2447_v51 = vpop.f32.mrf.mxu1  ;;  %v1585_v0 = vpop.f32.mrf.mxu0 }
 0x2e3   : > { %v1495_v5 = vadd.f32 %v2447_v51, %v1352_v2  ;;  %v1614_v53 = vadd.f32 %v1575_v25, %v1492_v42  ;;  %v2619_v2 = vld [vmem:[%s2884_s20] sm:$0xff] }
 0x2e4   : > { %v1463_v52 = vpop.f32.mrf.mxu1  ;;  %v2478_v43 = vpop.f32.mrf.mxu0 }
 0x2e5   : > { %v1494_v10 = vadd.f32 %v1463_v52, %v1347_v47  ;;  %v1617_v14 = vadd.f32 %v2475_v56, %v1495_v5 }
 0x2e6   : > { %v2450_v57 = vpop.f32.mrf.mxu1  ;;  %v1595_v16 = vpop.f32.mrf.mxu0 }
 0x2e7   : > { %v1497_v12 = vadd.f32 %v2450_v57, %v1362_v7  ;;  %v1616_v20 = vadd.f32 %v1585_v0, %v1494_v10 }
 0x2e8   : > { %v1473_v61 = vpop.f32.mrf.mxu1  ;;  %v2481_v22 = vpop.f32.mrf.mxu0 }
 0x2e9   : > { %v1496_v17 = vadd.f32 %v1473_v61, %v1357_v8  ;;  %v1619_v24 = vadd.f32 %v2478_v43, %v1497_v12  ;;  %v2622_v8 = vld [vmem:[%s2884_s20 + $0x28] sm:$0xff] }
 0x2ea   : > { %v2453_v1 = vpop.f32.mrf.mxu1  ;;  %v1605_v36 = vpop.f32.mrf.mxu0 }
 0x2eb   : > { %v1499_v26 = vadd.f32 %v2453_v1, %v1372_v15  ;;  %v1618_v31 = vadd.f32 %v1595_v16, %v1496_v17  ;;  %v2624_v17 = vld [vmem:[%s2884_s20 + $0x38] sm:$0xff] }
 0x2ec   : > { %v1483_v4 = vpop.f32.mrf.mxu1 }
 0x2ed   : > { %v1498_v32 = vadd.f32 %v1483_v4, %v1367_v21  ;;  %v1621_v46 = vadd.f32 %v2481_v22, %v1499_v26 }
 0x2ee   : > { %v2500_v9 = vpop.f32.mrf.mxu1 }
 0x2ef   : > { %v1737_v11 = vadd.f32 %v2500_v9, %v1615_v6  ;;  %v1620_v39 = vadd.f32 %v1605_v36, %v1498_v32  ;;  %v2620_v6 = vld [vmem:[%s2884_s20 + $0x18] sm:$0xff] }
 0x2f0   : > { %v1697_v55 = vpop.f32.mrf.mxu1 }
 0x2f1   : > { %v1752_v13 = vadd.f32 %v2061_v49, %v1737_v11  ;;  %v1736_v59 = vadd.f32 %v1697_v55, %v1614_v53 }
 0x2f2   : > { %v2503_v18 = vpop.f32.mrf.mxu1 }
 0x2f3   : > { %2602 = vtanh.f32 %v1752_v13  ;;  %v1751_v19 = vadd.f32 %v2061_v49, %v1736_v59  ;;  %v1739_v3 = vadd.f32 %v2503_v18, %v1617_v14  ;;  %v2623_v59 = vld [vmem:[%s2884_s20 + $0x20] sm:$0xff] }
 0x2f4   : > { %v1707_v23 = vpop.f32.mrf.mxu1 }
 0x2f5   : > { %2604 = vtanh.f32 %v1751_v19  ;;  %v1754_v27 = vadd.f32 %v2061_v49, %v1739_v3  ;;  %v1738_v28 = vadd.f32 %v1707_v23, %v1616_v20  ;;  %v2625_v20 = vld [vmem:[%s2884_s20 + $0x30] sm:$0xff] }
 0x2f6   : > { %v2506_v29 = vpop.f32.mrf.mxu1 }
 0x2f7   : > { %2606 = vtanh.f32 %v1754_v27  ;;  %v1753_v33 = vadd.f32 %v2061_v49, %v1738_v28  ;;  %v1741_v35 = vadd.f32 %v2506_v29, %v1619_v24 }
 0x2f8   : > { %v1717_v37 = vpop.f32.mrf.mxu1 }
 0x2f9   : > { %2608 = vtanh.f32 %v1753_v33  ;;  %v1756_v44 = vadd.f32 %v2061_v49, %v1741_v35  ;;  %v1740_v38 = vadd.f32 %v1717_v37, %v1618_v31 }
 0x2fa   : > { %v2509_v48 = vpop.f32.mrf.mxu1 }
 0x2fb   : > { %2610 = vtanh.f32 %v1756_v44  ;;  %v1755_v25 = vadd.f32 %v2061_v49, %v1740_v38  ;;  %v1743_v51 = vadd.f32 %v2509_v48, %v1621_v46 }
 0x2fc   : > { %v1727_v52 = vpop.f32.mrf.mxu1 }
 0x2fd   : > { %2612 = vtanh.f32 %v1755_v25  ;;  %v1758_v56 = vadd.f32 %v2061_v49, %v1743_v51  ;;  %v1742_v57 = vadd.f32 %v1727_v52, %v1620_v39 }
 0x2ff   : > { %2614 = vtanh.f32 %v1758_v56  ;;  %v1757_v60 = vadd.f32 %v2061_v49, %v1742_v57  ;;  %v2621_v49 = vld [vmem:[%s2884_s20 + $0x10] sm:$0xff]  ;;  %s2626_s20 = scalar_lea.vmem %s3346_s18, 1024 }
 0x300   : > { %v2603_v61 = vpop.eup %2602  ;;  %p2627_p12 = scmp.ne.s32.totalorder %s3346_s18, %s2626_s20  ;;  %p2634_p2 = scmp.lt.s32.totalorder %s2632_s17, %s2626_s20 }
 0x301   : > { %v1768_v63 = vsub.f32 %v2603_v61, %v2618_v62  ;;  %2616 = vtanh.f32 %v1757_v60 }
 0x302   : > { %v2605_v0 = vpop.eup %2604  ;;  %p2628_p13 = pnand %p2627_p12, %p2785_p4  ;;  %p2635_p3 = por %p2634_p2, %p2633_p1 }
 0x303   : > { %v1776_v1 = vmul.f32 %v3150_v30, %v1768_v63  ;;  %v1767_v42 = vsub.f32 %v2605_v0, %v2619_v2 }
 0x304   : > { %v2607_v4 = vpop.eup %2606  ;;  %p2629_p0 = pneg %p2628_p13 }
 0x305   : > { %v1784_v47 = vadd.f32 %v2618_v62, %v1776_v1  ;;  %v1775_v5 = vmul.f32 %v3156_v34, %v1767_v42  ;;  %v1770_v7 = vsub.f32 %v2607_v4, %v2620_v6 }
 0x306   : > { %v2609_v43 = vpop.eup %2608  ;;  %p2636_p5 = pnand %p2635_p3, %p2629_p0 }
 0x307   : > { %1792 = vst.msk [vmem:[%s3314_s28 + $0x8] sm:$0xff] %vm354_vm0, %v1784_v47  ;;  %v1783_v9 = vadd.f32 %v2619_v2, %v1775_v5  ;;  %v1778_v30 = vmul.f32 %v3162_v41, %v1770_v7  ;;  %v1769_v10 = vsub.f32 %v2609_v43, %v2621_v49 }
 0x308   : > { %v2611_v11 = vpop.eup %2610 }
 0x309   : > { %1791 = vst.msk [vmem:[%s3314_s28] sm:$0xff] %vm354_vm0, %v1783_v9  ;;  %v1786_v34 = vadd.f32 %v2620_v6, %v1778_v30  ;;  %v1777_v53 = vmul.f32 %v3168_v45, %v1769_v10  ;;  %v1772_v12 = vsub.f32 %v2611_v11, %v2622_v8 }
 0x30a   : > { %v2613_v55 = vpop.eup %2612 }
 0x30b   : > { %1794 = vst.msk [vmem:[%s3314_s28 + $0x18] sm:$0xff] %vm354_vm0, %v1786_v34  ;;  %v1785_v13 = vadd.f32 %v2621_v49, %v1777_v53  ;;  %v1780_v41 = vmul.f32 %v3171_v50, %v1772_v12  ;;  %v1771_v14 = vsub.f32 %v2613_v55, %v2623_v59 }
 0x30c   : > { %v2615_v15 = vpop.eup %2614 }
 0x30d   : > { %1793 = vst.msk [vmem:[%s3314_s28 + $0x10] sm:$0xff] %vm354_vm0, %v1785_v13  ;;  %v1788_v16 = vadd.f32 %v2622_v8, %v1780_v41  ;;  %v1779_v45 = vmul.f32 %v3174_v40, %v1771_v14  ;;  %v1774_v18 = vsub.f32 %v2615_v15, %v2624_v17 }
 0x30e   : > { %v2617_v19 = vpop.eup %2616 }
 0x30f   : > { %1796 = vst.msk [vmem:[%s3314_s28 + $0x28] sm:$0xff] %vm354_vm0, %v1788_v16  ;;  %v1787_v3 = vadd.f32 %v2623_v59, %v1779_v45  ;;  %v1782_v50 = vmul.f32 %v3177_v54, %v1774_v18  ;;  %v1773_v21 = vsub.f32 %v2617_v19, %v2625_v20 }
 0x311   : > { %1795 = vst.msk [vmem:[%s3314_s28 + $0x20] sm:$0xff] %vm354_vm0, %v1787_v3  ;;  %v1790_v22 = vadd.f32 %v2624_v17, %v1782_v50  ;;  %v1781_v40 = vmul.f32 %v3180_v58, %v1773_v21 }
 0x313   : > { %1798 = vst.msk [vmem:[%s3314_s28 + $0x38] sm:$0xff] %vm354_vm0, %v1790_v22  ;;  %v1789_v54 = vadd.f32 %v2625_v20, %v1781_v40 }
 0x315   : > { %1797 = vst.msk [vmem:[%s3314_s28 + $0x30] sm:$0xff] %vm354_vm0, %v1789_v54 }
 0x316   : > { %2639 = shalt.err (!%p2636_p5)
}
 0x317   : > { %s2640_s13 = scalar_lea.hbm %s3344_s14, 1024  ;;  %s2644_s8 = scalar_lea.hbm %s3405_s6, 2048 }
 0x318   : > { %p2641_p6 = scmp.ne.s32.totalorder %s3344_s14, %s2640_s13  ;;  %p2645_p10 = scmp.lt.s32.totalorder %s3344_s14, %s3405_s6 }
 0x319   : > { %p2646_p11 = scmp.lt.s32.totalorder %s2644_s8, %s2640_s13 }
 0x31a   : > { %p2642_p7 = pnand %p2641_p6, %p2785_p4 }
 0x31b   : > { %p2647_p12 = por %p2646_p11, %p2645_p10 }
 0x31c   : > { %p2643_p9 = pneg %p2642_p7 }
 0x31e   : > { %p2648_p13 = pnand %p2647_p12, %p2643_p9 }
 0x320   : > { %2651 = shalt.err (!%p2648_p13)
}
 0x321   : > { %s2708_s11 = smov 128   ;;  %s2709_s12 = smov 8  }
 0x322   : > { %2510 = dma.vmem_to_hbm [thread:$0]  (%p2785_p4), %s3346_s18, 1024, %s3344_s14, %s3354_s24, %s2708_s11, %s2708_s11, %s2709_s12  }
 0x323 PF: > { %p2516_p0 = scmp.ge.s32.totalorder %s2702_s26, 2  ;;  %s1829_s20 = sand.u32 1, %s2682_s21  }
 0x324   : > { %s1830_s15 = scalar_lea.sflag [#allocation3], %s1829_s20 }
 0x325   : > { %p2513_p1 = pnand %p2516_p0, %p2792_p8 }
 0x327   : > { %p2514_p2 = pneg %p2513_p1 }
 0x329   : > { %2677 = dma.done.wait (%p2514_p2), %s1830_s15, 1024  }
 0x32a   : > { %2679 = vsyncadd (%p2514_p2), %s1830_s15, 4294966272  ;;  %s19_s26 = sadd.s32 1, %s2702_s26   ;;  %s3408_s21 = smov %s2686_s22 }
 0x32b   : > { %p16_p3 = scmp.ge.s32.totalorder %s19_s26, 4   ;;  %s3409_s22 = smov %s2690_s23 }
 0x32c   : > { %s3410_s23 = smov %s2798_s10  ;;  %s3411_s24 = smov %s2698_s25 }
 0x32d   : > { %s3412_s25 = smov %s3414_s29  ;;  %18 = sbr.rel (!%p16_p3) target bundleno = 4 (0x4), region = 90 }
 0x332   :  { %1835 = vsyncpa [#allocation3], 1 }
 0x333   :  { %1837 = vsyncpa [#allocation3 + $0x1], 1 }

// kernel: _forward_jit.2
= control target key start
LH: loop header
LB: loop body
LE: loop exit
PB: predicated region body
PF: predicated region fallthrough
CT: control target
= control target key end

     0   :  { %s2974_s21 = smov 0   ;;  %s3791_s0 = inlined_call_operand.vmem [shape: f32[16,8,32], index: 0, kind: input, shape index: {}]   ;;  %s3792_s1 = inlined_call_operand.vmem [shape: f32[16,8,32], index: 1, kind: input, shape index: {}]   ;;  %s3793_s2 = inlined_call_operand.vmem [shape: f32[5,64,64], index: 2, kind: input, shape index: {}]   ;;  %s3794_s3 = inlined_call_operand.vmem [shape: f32[5,64,32], index: 3, kind: input, shape index: {}]   ;;  %s3795_s4 = inlined_call_operand.vmem [shape: f32[1,64], index: 4, kind: input, shape index: {}]   ;;  %s3796_s5 = inlined_call_operand.vmem [shape: f32[1,32], index: 5, kind: input, shape index: {}]   ;;  %s3797_s6 = inlined_call_operand.vmem [shape: f32[16,8,32], index: 6, kind: output, shape index: {}]  }
   0x1 LB: > { %s2256_s22 = sadd.s32 4294967295, %s2935_s21   ;;  %p2260_p0 = scmp.ge.s32.totalorder %s2935_s21, 1  ;;  %s2935_s21 = sphi %s2974_s21, %s16_s21  }
   0x2   : > { %p224_p1 = scmp.lt.s32.totalorder %s2935_s21, 3 }
   0x4   : > { %p225_p2 = pnand %p2260_p0, %p224_p1 }
   0x5   : > { %s2261_s23 = sshll.u32 (!%p225_p2), %s2256_s22, 3  ;;  %s2937_s25 = smov (!%p225_p2), 32  }
   0x6   : > { %228 = sbr.rel (%p225_p2) target bundleno = 811 (0x32b), region = 44  ;;  %p260_p3 = scmp.lt.s32.totalorder (!%p225_p2), %s2261_s23, 15 }
   0x7   : > { %s2938_s20 = smov (!%p225_p2), 96  }
   0xb   : > { %v382_v0 = vld [vmem:[%s3793_s2 + $0x38] sm:$0xff]  ;;  %v381_v2 = vld [vmem:[%s3793_s2 + $0x30] sm:$0xff]  ;;  %v380_v4 = vld [vmem:[%s3793_s2 + $0x28] sm:$0xff]  ;;  %s3799_s23 = smov (!%p260_p3, %s2261_s23), 15  ;;  %vm325_vm0 = vcmask 261120   ;;  %vm358_vm1 = vcmask 1041408  }
   0xc   : > { %v2274_v1 = vld [vmem:[%s3793_s2 + $0x78] sm:$0xff]  ;;  %2611 = vmatprep.subr.mxu1 %v382_v0  ;;  %v2273_v3 = vld [vmem:[%s3793_s2 + $0x70] sm:$0xff]  ;;  %v2272_v5 = vld [vmem:[%s3793_s2 + $0x68] sm:$0xff]  ;;  %s3006_s16 = sshll.u32 %s3799_s23, 3  ;;  %vm433_vm2 = vcmask 523264   ;;  %vm408_vm3 = vcmask 1046528  }
   0xd   : > { %2583 = vmatprep.subr.mxu0 %v2274_v1  ;;  %2612 = vmatpush3.msra.mxu1 %v382_v0  ;;  %v379_v6 = vld [vmem:[%s3793_s2 + $0x20] sm:$0xff]  ;;  %s3012_s19 = scalar_lea.vmem %s3792_s1, %s3006_s16  ;;  %v378_v8 = vld [vmem:[%s3793_s2 + $0x18] sm:$0xff]  ;;  %v377_v14 = vld [vmem:[%s3793_s2 + $0x10] sm:$0xff]  ;;  %s3064_s23 = scalar_lea.vmem %s3791_s0, %s3006_s16  ;;  %vm848_vm4 = vcmask 1044480   ;;  %vm685_vm5 = vcmask 1045504   ;;  %vm1011_vm6 = vcmask 1043456  }
   0xe   : > { %2584 = vmatpush3.msra.mxu0 %v2274_v1  ;;  %2613 = vmatprep.subr.mxu1 %v381_v2  ;;  %v2271_v7 = vld [vmem:[%s3793_s2 + $0x60] sm:$0xff]  ;;  %v287_v10 = vld [vmem:[%s3012_s19 + $0x10] sm:$0xff]  ;;  %v2270_v11 = vld [vmem:[%s3793_s2 + $0x58] sm:$0xff]  ;;  %s3757_s28 = scalar_lea.vmem %s3797_s6, %s3006_s16 }
   0xf   : > { %2585 = vmatprep.subr.mxu0 %v2273_v3  ;;  %2614 = vmatpush3.msra.mxu1 %v381_v2  ;;  %v285_v9 = vld [vmem:[%s3012_s19] sm:$0xff]  ;;  %v286_v12 = vld [vmem:[%s3012_s19 + $0x8] sm:$0xff]  ;;  %v288_v13 = vld [vmem:[%s3012_s19 + $0x18] sm:$0xff] }
  0x10   : > { %2586 = vmatpush3.msra.mxu0 %v2273_v3  ;;  %2615 = vmatprep.subr.mxu1 %v380_v4  ;;  %v2269_v15 = vld [vmem:[%s3793_s2 + $0x50] sm:$0xff]  ;;  %v376_v16 = vld [vmem:[%s3793_s2 + $0x8] sm:$0xff]  ;;  %v289_v18 = vld [vmem:[%s3012_s19 + $0x20] sm:$0xff] }
  0x11   : > { %2587 = vmatprep.subr.mxu0 %v2272_v5  ;;  %2616 = vmatpush3.msra.mxu1 %v380_v4  ;;  %v2268_v17 = vld [vmem:[%s3793_s2 + $0x48] sm:$0xff]  ;;  %v375_v20 = vld [vmem:[%s3793_s2] sm:$0xff]  ;;  %v291_v22 = vld [vmem:[%s3012_s19 + $0x30] sm:$0xff] }
  0x12   : > { %2588 = vmatpush3.msra.mxu0 %v2272_v5  ;;  %2617 = vmatprep.subr.mxu1 %v379_v6  ;;  %v290_v19 = vld [vmem:[%s3012_s19 + $0x28] sm:$0xff]  ;;  %v2267_v21 = vld [vmem:[%s3793_s2 + $0x40] sm:$0xff]  ;;  %v292_v23 = vld [vmem:[%s3012_s19 + $0x38] sm:$0xff] }
  0x13   : > { %2589 = vmatprep.subr.mxu0 %v2271_v7  ;;  %301 = vrot.lane.b32.xlu0 %v285_v9, %s2937_s25  ;;  %v2314_v24 = vld [vmem:[%s3793_s2 + $0xf8] sm:$0xff]  ;;  %v277_v26 = vld [vmem:[%s3064_s23] sm:$0xff]  ;;  %v278_v27 = vld [vmem:[%s3064_s23 + $0x8] sm:$0xff] }
  0x14   : > { %305 = vrot.lane.b32.xlu1 %v287_v10, %s2937_s25  ;;  %2618 = vmatpush3.msra.mxu1 %v379_v6  ;;  %v3058_v25 = vld [vmem:[%s3793_s2 + $0xb8] sm:$0xff]  ;;  %v279_v28 = vld [vmem:[%s3064_s23 + $0x10] sm:$0xff]  ;;  %v281_v30 = vld [vmem:[%s3064_s23 + $0x20] sm:$0xff] }
  0x15   : > { %2590 = vmatpush3.msra.mxu0 %v2271_v7  ;;  %2619 = vmatprep.subr.mxu1 %v378_v8  ;;  %v280_v29 = vld [vmem:[%s3064_s23 + $0x18] sm:$0xff]  ;;  %v282_v31 = vld [vmem:[%s3064_s23 + $0x28] sm:$0xff]  ;;  %v3082_v32 = vld [vmem:[%s3064_s23 + $0x30] sm:$0xff] }
  0x16   : > { %2591 = vmatprep.subr.mxu0 %v2270_v11  ;;  %2620 = vmatpush3.msra.mxu1 %v378_v8  ;;  %v3085_v33 = vld [vmem:[%s3064_s23 + $0x38] sm:$0xff]  ;;  %v2313_v56 = vld [vmem:[%s3793_s2 + $0xf0] sm:$0xff]  ;;  %v2312_v0 = vld [vmem:[%s3793_s2 + $0xe8] sm:$0xff] }
  0x17   : > { %2592 = vmatpush3.msra.mxu0 %v2270_v11  ;;  %303 = vrot.lane.b32.xlu0 %v286_v12, %s2937_s25  ;;  %v2311_v6 = vld [vmem:[%s3793_s2 + $0xe0] sm:$0xff] }
  0x18   : > { %307 = vrot.lane.b32.xlu1 %v288_v13, %s2937_s25  ;;  %2621 = vmatprep.subr.mxu1 %v377_v14 }
  0x19   : > { %2593 = vmatprep.subr.mxu0 %v2269_v15  ;;  %2622 = vmatpush3.msra.mxu1 %v377_v14 }
  0x1a   : > { %2594 = vmatpush3.msra.mxu0 %v2269_v15  ;;  %2623 = vmatprep.subr.mxu1 %v376_v16 }
  0x1b   : > { %2595 = vmatprep.subr.mxu0 %v2268_v17  ;;  %309 = vrot.lane.b32.xlu0 %v289_v18, %s2937_s25 }
  0x1c   : > { %311 = vrot.lane.b32.xlu1 %v290_v19, %s2937_s25  ;;  %2624 = vmatpush3.msra.mxu1 %v376_v16  ;;  %v2297_v16 = vld [vmem:[%s3793_s2 + $0xb0] sm:$0xff] }
  0x1d   : > { %2596 = vmatpush3.msra.mxu0 %v2268_v17  ;;  %2625 = vmatprep.subr.mxu1 %v375_v20 }
  0x1e   : > { %2597 = vmatprep.subr.mxu0 %v2267_v21  ;;  %2626 = vmatpush3.msra.mxu1 %v375_v20  ;;  %v2296_v20 = vld [vmem:[%s3793_s2 + $0xa8] sm:$0xff] }
  0x1f   : > { %2598 = vmatpush3.msra.mxu0 %v2267_v21  ;;  %313 = vrot.lane.b32.xlu0 %v291_v22, %s2937_s25 }
  0x20   : > { %315 = vrot.lane.b32.xlu1 %v292_v23, %s2937_s25  ;;  %2667 = vmatprep.subr.mxu1 %v2314_v24 }
  0x21   : > { %2639 = vmatprep.subr.mxu0 %v3058_v25 }
  0x23   : > { %1236 = vrot.lane.b32.xlu0 %v277_v26, %s2937_s25 }
  0x24   : > { %1238 = vrot.lane.b32.xlu1 %v278_v27, %s2937_s25 }
  0x27   : > { %1240 = vrot.lane.b32.xlu0 %v279_v28, %s2937_s25 }
  0x28   : > { %1242 = vrot.lane.b32.xlu1 %v280_v29, %s2937_s25 }
  0x2b   : > { %1244 = vrot.lane.b32.xlu0 %v281_v30, %s2937_s25 }
  0x2c   : > { %1246 = vrot.lane.b32.xlu1 %v282_v31, %s2937_s25 }
  0x2f   : > { %1248 = vrot.lane.b32.xlu0 %v3082_v32, %s2937_s25 }
  0x30   : > { %1250 = vrot.lane.b32.xlu1 %v3085_v33, %s2937_s25 }
  0x85   : > { %v3091_v34 = vpop.permute.xlu0 %301 }
  0x86   : > { %v3093_v35 = vpop.permute.xlu1 %305  ;;  %v326_v36 = vsel %vm325_vm0, %v277_v26, %v3091_v34 }
  0x87   : > { %v328_v37 = vsel %vm325_vm0, %v279_v28, %v3093_v35  ;;  %v342_v38 = vrot.slane %v326_v36, 6  ;;  %v2310_v28 = vld [vmem:[%s3793_s2 + $0xd8] sm:$0xff] }
  0x88   : > { %v344_v39 = vrot.slane %v328_v37, 6  ;;  %v2309_v37 = vld [vmem:[%s3793_s2 + $0xd0] sm:$0xff] }
  0x89   : > { %v3100_v40 = vsel %vm358_vm1, 0.0, %v342_v38  ;;  %v3103_v41 = vsel %vm358_vm1, %v342_v38, 0.0  ;;  %v3105_v42 = vpop.permute.xlu0 %303 }
  0x8a   : > { %v3107_v43 = vpop.permute.xlu1 %307  ;;  %v327_v44 = vsel %vm325_vm0, %v278_v27, %v3105_v42  ;;  %2627 = vmatprep.mubr.msk.f32.mxu1 %vm433_vm2, %v3100_v40  ;;  %v409_v46 = vrot.slane %v3100_v40, 1  ;;  %v410_v47 = vrot.slane %v3103_v41, 1  ;;  %v3118_v48 = vsel %vm358_vm1, 0.0, %v344_v39  ;;  %v2295_v27 = vld [vmem:[%s3793_s2 + $0xa0] sm:$0xff] }
  0x8b   : > { %v329_v45 = vsel %vm325_vm0, %v280_v29, %v3107_v43  ;;  %v3121_v49 = vsel %vm358_vm1, %v344_v39, 0.0  ;;  %v343_v50 = vrot.slane %v327_v44, 6  ;;  %v415_v60 = vrot.slane %v3118_v48, 1 }
  0x8c   : > { %v345_v51 = vrot.slane %v329_v45, 6  ;;  %v411_v52 = vsel %vm408_vm3, %v409_v46, %v410_v47  ;;  %v416_v61 = vrot.slane %v3121_v49, 1  ;;  %v2293_v45 = vld [vmem:[%s3793_s2 + $0x90] sm:$0xff]  ;;  %v2308_v46 = vld [vmem:[%s3793_s2 + $0xc8] sm:$0xff]  ;;  %v849_v47 = vrot.slane %v3100_v40, 3 }
  0x8d   : > { %v3125_v53 = vsel %vm358_vm1, 0.0, %v343_v50  ;;  %v3128_v54 = vsel %vm358_vm1, %v343_v50, 0.0  ;;  %2599 = vmatprep.mubr.msk.f32.mxu0 %vm433_vm2, %v411_v52  ;;  %v3131_v55 = vpop.permute.xlu0 %309  ;;  %v850_v50 = vrot.slane %v3103_v41, 3 }
  0x8e   : > { %v3136_v57 = vpop.permute.xlu1 %311  ;;  %v3139_v58 = vsel %vm358_vm1, 0.0, %v345_v51  ;;  %v3142_v59 = vsel %vm358_vm1, %v345_v51, 0.0  ;;  %2628 = vmatmul.mubr.msk.f32.vlgmr.msra.gmra.mxu1 %vm433_vm2, %v3125_v53  ;;  %v330_v62 = vsel %vm325_vm0, %v281_v30, %v3131_v55  ;;  %v412_v3 = vrot.slane %v3125_v53, 1 }
  0x8f   : > { %2630 = vmatprep.mubr.msk.f32.mxu1 %vm433_vm2, %v3118_v48  ;;  %2668 = vmatpush3.msra.mxu1 %v2314_v24  ;;  %v331_v63 = vsel %vm325_vm0, %v282_v31, %v3136_v57  ;;  %v346_v1 = vrot.slane %v330_v62, 6  ;;  %v413_v4 = vrot.slane %v3128_v54, 1  ;;  %v418_v8 = vrot.slane %v3139_v58, 1 }
  0x90   : > { %2669 = vmatprep.subr.mxu1 %v2313_v56  ;;  %v347_v2 = vrot.slane %v331_v63, 6  ;;  %v419_v9 = vrot.slane %v3142_v59, 1  ;;  %v417_v13 = vsel %vm408_vm3, %v415_v60, %v416_v61  ;;  %v2292_v60 = vld [vmem:[%s3793_s2 + $0x88] sm:$0xff]  ;;  %v2307_v61 = vld [vmem:[%s3793_s2 + $0xc0] sm:$0xff]  ;;  %v686_v62 = vrot.slane %v3100_v40, 2 }
  0x91   : > { %2670 = vmatpush3.msra.mxu1 %v2313_v56  ;;  %v3159_v5 = vpop.permute.xlu0 %313  ;;  %v3169_v10 = vsel %vm358_vm1, 0.0, %v346_v1  ;;  %v3172_v11 = vsel %vm358_vm1, %v346_v1, 0.0  ;;  %v414_v15 = vsel %vm408_vm3, %v412_v3, %v413_v4  ;;  %v687_v63 = vrot.slane %v3103_v41, 2 }
  0x92   : > { %v3164_v7 = vpop.permute.xlu1 %315  ;;  %v3175_v12 = vsel %vm358_vm1, 0.0, %v347_v2  ;;  %2631 = vmatmul.mubr.msk.f32.gmra.mxu1 %vm433_vm2, %v3139_v58  ;;  %2671 = vmatprep.subr.mxu1 %v2312_v0  ;;  %v3181_v14 = vsel %vm358_vm1, %v347_v2, 0.0  ;;  %v332_v17 = vsel %vm325_vm0, %v3082_v32, %v3159_v5  ;;  %v420_v21 = vsel %vm408_vm3, %v418_v8, %v419_v9  ;;  %v2294_v32 = vld [vmem:[%s3793_s2 + $0x98] sm:$0xff] }
  0x93   : > { %2672 = vmatpush3.msra.mxu1 %v2312_v0  ;;  %v333_v18 = vsel %vm325_vm0, %v3085_v33, %v3164_v7  ;;  %2600 = vmatmul.mubr.msk.f32.vlgmr.msra.gmra.mxu0 %vm433_vm2, %v414_v15  ;;  %v348_v19 = vrot.slane %v332_v17, 6  ;;  %v421_v22 = vrot.slane %v3169_v10, 1  ;;  %v422_v23 = vrot.slane %v3172_v11, 1 }
  0x94   : > { %2673 = vmatprep.subr.mxu1 %v2311_v6  ;;  %2640 = vmatpush3.msra.mxu0 %v3058_v25  ;;  %v349_v24 = vrot.slane %v333_v18, 6  ;;  %v424_v26 = vrot.slane %v3175_v12, 1  ;;  %v425_v25 = vrot.slane %v3181_v14, 1  ;;  %v852_v0 = vrot.slane %v3125_v53, 3 }
  0x95   : > { %2602 = vmatprep.mubr.msk.f32.mxu0 %vm433_vm2, %v417_v13  ;;  %2641 = vmatprep.subr.mxu0 %v2297_v16  ;;  %v3213_v29 = vsel %vm358_vm1, 0.0, %v348_v19  ;;  %v3216_v30 = vsel %vm358_vm1, %v348_v19, 0.0  ;;  %v423_v31 = vsel %vm408_vm3, %v421_v22, %v422_v23  ;;  %v853_v1 = vrot.slane %v3128_v54, 3  ;;  %v2291_v13 = vld [vmem:[%s3793_s2 + $0x80] sm:$0xff]  ;;  %v2330_v19 = vld [vmem:[%s3793_s2 + $0x138] sm:$0xff] }
  0x96   : > { %2633 = vmatprep.mubr.msk.f32.mxu1 %vm433_vm2, %v3169_v10  ;;  %2642 = vmatpush3.msra.mxu0 %v2297_v16  ;;  %v3226_v33 = vsel %vm358_vm1, 0.0, %v349_v24  ;;  %v3229_v36 = vsel %vm358_vm1, %v349_v24, 0.0  ;;  %v426_v38 = vsel %vm408_vm3, %v424_v26, %v425_v25  ;;  %v427_v39 = vrot.slane %v3213_v29, 1  ;;  %v2329_v25 = vld [vmem:[%s3793_s2 + $0x130] sm:$0xff] }
  0x97   : > { %2674 = vmatpush3.msra.mxu1 %v2311_v6  ;;  %2643 = vmatprep.subr.mxu0 %v2296_v20  ;;  %v428_v44 = vrot.slane %v3216_v30, 1  ;;  %v430_v51 = vrot.slane %v3226_v33, 1  ;;  %v431_v52 = vrot.slane %v3229_v36, 1  ;;  %v851_v2 = vsel %vm848_vm4, %v849_v47, %v850_v50 }
  0x98   : > { %2603 = vmatmul.mubr.msk.f32.gmra.mxu0 %vm433_vm2, %v420_v21  ;;  %2634 = vmatmul.mubr.msk.f32.gmra.mxu1 %vm433_vm2, %v3175_v12  ;;  %v855_v4 = vrot.slane %v3118_v48, 3  ;;  %v856_v6 = vrot.slane %v3121_v49, 3  ;;  %v689_v8 = vrot.slane %v3125_v53, 2  ;;  %v690_v9 = vrot.slane %v3128_v54, 2 }
  0x99   : > { %2644 = vmatpush3.msra.mxu0 %v2296_v20  ;;  %2675 = vmatprep.subr.mxu1 %v2310_v28  ;;  %v429_v56 = vsel %vm408_vm3, %v427_v39, %v428_v44  ;;  %v432_v3 = vsel %vm408_vm3, %v430_v51, %v431_v52  ;;  %v688_v15 = vsel %vm685_vm5, %v686_v62, %v687_v63  ;;  %v692_v16 = vrot.slane %v3118_v48, 2  ;;  %v2328_v39 = vld [vmem:[%s3793_s2 + $0x128] sm:$0xff]  ;;  %v2327_v52 = vld [vmem:[%s3793_s2 + $0x120] sm:$0xff] }
  0x9a   : > { %2645 = vmatprep.subr.mxu0 %v2295_v27  ;;  %2676 = vmatpush3.msra.mxu1 %v2310_v28  ;;  %v693_v17 = vrot.slane %v3121_v49, 2  ;;  %v854_v18 = vsel %vm848_vm4, %v852_v0, %v853_v1  ;;  %v858_v20 = vrot.slane %v3139_v58, 3  ;;  %v859_v21 = vrot.slane %v3142_v59, 3  ;;  %v2326_v1 = vld [vmem:[%s3793_s2 + $0x118] sm:$0xff] }
  0x9b   : > { %2646 = vmatpush3.msra.mxu0 %v2295_v27  ;;  %2605 = vmatprep.mubr.msk.f32.mxu0 %vm433_vm2, %v423_v31  ;;  %v857_v22 = vsel %vm848_vm4, %v855_v4, %v856_v6  ;;  %v861_v23 = vrot.slane %v3169_v10, 3  ;;  %v862_v24 = vrot.slane %v3172_v11, 3  ;;  %v691_v26 = vsel %vm685_vm5, %v689_v8, %v690_v9  ;;  %v2325_v8 = vld [vmem:[%s3793_s2 + $0x110] sm:$0xff] }
  0x9c   : > { %2647 = vmatprep.subr.mxu0 %v2294_v32  ;;  %2677 = vmatprep.subr.mxu1 %v2309_v37  ;;  %v695_v27 = vrot.slane %v3139_v58, 2  ;;  %v696_v28 = vrot.slane %v3142_v59, 2  ;;  %v694_v31 = vsel %vm685_vm5, %v692_v16, %v693_v17  ;;  %v864_v44 = vrot.slane %v3175_v12, 3 }
  0x9d   : > { %2606 = vmatmul.mubr.msk.f32.gmra.mxu0 %vm433_vm2, %v426_v38  ;;  %2636 = vmatprep.mubr.msk.f32.mxu1 %vm433_vm2, %v3213_v29  ;;  %v860_v38 = vsel %vm848_vm4, %v858_v20, %v859_v21  ;;  %v867_v47 = vrot.slane %v3213_v29, 3  ;;  %v868_v50 = vrot.slane %v3216_v30, 3  ;;  %v704_v62 = vrot.slane %v3213_v29, 2 }
  0x9e   : > { %2648 = vmatpush3.msra.mxu0 %v2294_v32  ;;  %2678 = vmatpush3.msra.mxu1 %v2309_v37  ;;  %v698_v32 = vrot.slane %v3169_v10, 2  ;;  %v699_v37 = vrot.slane %v3172_v11, 2  ;;  %v697_v51 = vsel %vm685_vm5, %v695_v27, %v696_v28  ;;  %v705_v63 = vrot.slane %v3216_v30, 2 }
  0x9f   : > { %2649 = vmatprep.subr.mxu0 %v2293_v45  ;;  %2637 = vmatmul.mubr.msk.f32.gmra.mxu1 %vm433_vm2, %v3226_v33  ;;  %v869_v4 = vsel %vm848_vm4, %v867_v47, %v868_v50  ;;  %v707_v9 = vrot.slane %v3226_v33, 2  ;;  %v1012_v16 = vrot.slane %v3100_v40, 4  ;;  %v1013_v17 = vrot.slane %v3103_v41, 4  ;;  %v2323_v41 = vld [vmem:[%s3793_s2 + $0x100] sm:$0xff] }
  0xa0   : > { %2679 = vmatprep.subr.mxu1 %v2308_v46  ;;  %2650 = vmatpush3.msra.mxu0 %v2293_v45  ;;  %v865_v45 = vrot.slane %v3181_v14, 3  ;;  %v1015_v20 = vrot.slane %v3125_v53, 4  ;;  %v1016_v21 = vrot.slane %v3128_v54, 4  ;;  %v1021_v54 = vrot.slane %v3139_v58, 4 }
  0xa1   : > { %2680 = vmatpush3.msra.mxu1 %v2308_v46  ;;  %2683 = vmatprep.mubr.msk.f32.mxu1 %vm433_vm2, %v851_v2  ;;  %v863_v46 = vsel %vm848_vm4, %v861_v23, %v862_v24  ;;  %v870_v2 = vrot.slane %v3226_v33, 3  ;;  %v1018_v23 = vrot.slane %v3118_v48, 4  ;;  %v1019_v24 = vrot.slane %v3121_v49, 4 }
  0xa2   : > { %2608 = vmatprep.mubr.msk.f32.mxu0 %vm433_vm2, %v429_v56  ;;  %2651 = vmatprep.subr.mxu0 %v2292_v60  ;;  %v701_v56 = vrot.slane %v3175_v12, 2  ;;  %v866_v0 = vsel %vm848_vm4, %v864_v44, %v865_v45  ;;  %v1017_v53 = vsel %vm1011_vm6, %v1015_v20, %v1016_v21  ;;  %v1024_v27 = vrot.slane %v3169_v10, 4  ;;  %v1352_v44 = vld [vmem:[%s3794_s3 + $0x20] sm:$0xff] }
  0xa3   : > { %2681 = vmatprep.subr.mxu1 %v2307_v61  ;;  %2609 = vmatmul.mubr.msk.f32.gmra.mxu0 %vm433_vm2, %v432_v3  ;;  %v871_v3 = vrot.slane %v3229_v36, 3  ;;  %v1025_v48 = vrot.slane %v3172_v11, 4  ;;  %v1027_v28 = vrot.slane %v3175_v12, 4  ;;  %v1033_v11 = vrot.slane %v3226_v33, 4  ;;  %v1354_v33 = vld [vmem:[%s3794_s3 + $0x30] sm:$0xff]  ;;  %v2352_v45 = vld [vmem:[%s3794_s3 + $0x60] sm:$0xff] }
  0xa4   : > { %2682 = vmatpush3.msra.mxu1 %v2307_v61  ;;  %2652 = vmatpush3.msra.mxu0 %v2292_v60  ;;  %v702_v60 = vrot.slane %v3181_v14, 2  ;;  %v700_v61 = vsel %vm685_vm5, %v698_v32, %v699_v37  ;;  %v1031_v32 = vrot.slane %v3216_v30, 4  ;;  %v1034_v37 = vrot.slane %v3229_v36, 4  ;;  %v2355_v30 = vld [vmem:[%s3794_s3 + $0x78] sm:$0xff] }
  0xa5   : > { %2655 = vmatprep.mubr.msk.f32.mxu0 %vm433_vm2, %v688_v15  ;;  %2653 = vmatprep.subr.mxu0 %v2291_v13  ;;  %v706_v15 = vsel %vm685_vm5, %v704_v62, %v705_v63  ;;  %v1026_v58 = vsel %vm1011_vm6, %v1024_v27, %v1025_v48 }
  0xa6   : > { %2684 = vmatmul.mubr.msk.f32.vlgmr.msra.gmra.mxu1 %vm433_vm2, %v854_v18  ;;  %2654 = vmatpush3.msra.mxu0 %v2291_v13  ;;  %v703_v6 = vsel %vm685_vm5, %v701_v56, %v702_v60  ;;  %v708_v13 = vrot.slane %v3229_v36, 2  ;;  %v872_v18 = vsel %vm848_vm4, %v870_v2, %v871_v3  ;;  %v2354_v36 = vld [vmem:[%s3794_s3 + $0x70] sm:$0xff] }
  0xa7   : > { %2686 = vmatprep.mubr.msk.f32.mxu1 %vm433_vm2, %v857_v22  ;;  %2695 = vmatprep.subr.mxu0 %v2330_v19  ;;  %v1014_v22 = vsel %vm1011_vm6, %v1012_v16, %v1013_v17 }
  0xa8   : > { %2656 = vmatmul.mubr.msk.f32.vlgmr.msra.gmra.mxu0 %vm433_vm2, %v691_v26  ;;  %v709_v40 = vsel %vm685_vm5, %v707_v9, %v708_v13  ;;  %v1022_v26 = vrot.slane %v3142_v59, 4  ;;  %v1030_v59 = vrot.slane %v3213_v29, 4  ;;  %v1355_v29 = vld [vmem:[%s3794_s3 + $0x38] sm:$0xff]  ;;  %2723 = vmatprep.subr.mxu1 %v2355_v30 }
  0xa9   : > { %2696 = vmatpush3.msra.mxu0 %v2330_v19  ;;  %2658 = vmatprep.mubr.msk.f32.mxu0 %vm433_vm2, %v694_v31  ;;  %v2324_v19 = vld [vmem:[%s3793_s2 + $0x108] sm:$0xff]  ;;  %v1028_v31 = vrot.slane %v3181_v14, 4  ;;  %v1035_v14 = vsel %vm1011_vm6, %v1033_v11, %v1034_v37 }
  0xaa   : > { %2687 = vmatmul.mubr.msk.f32.gmra.mxu1 %vm433_vm2, %v860_v38  ;;  %2697 = vmatprep.subr.mxu0 %v2329_v25  ;;  %v1023_v49 = vsel %vm1011_vm6, %v1021_v54, %v1022_v26  ;;  %v1032_v12 = vsel %vm1011_vm6, %v1030_v59, %v1031_v32  ;;  %v1353_v38 = vld [vmem:[%s3794_s3 + $0x28] sm:$0xff] }
  0xab   : > { %2689 = vmatprep.mubr.msk.f32.mxu1 %vm433_vm2, %v863_v46  ;;  %2698 = vmatpush3.msra.mxu0 %v2329_v25  ;;  %v1020_v25 = vsel %vm1011_vm6, %v1018_v23, %v1019_v24  ;;  %v1029_v10 = vsel %vm1011_vm6, %v1027_v28, %v1028_v31  ;;  %v1351_v46 = vld [vmem:[%s3794_s3 + $0x18] sm:$0xff] }
  0xac   : > { %2699 = vmatprep.subr.mxu0 %v2328_v39  ;;  %2659 = vmatmul.mubr.msk.f32.gmra.mxu0 %vm433_vm2, %v697_v51 }
  0xad   : > { %2700 = vmatpush3.msra.mxu0 %v2328_v39  ;;  %2661 = vmatprep.mubr.msk.f32.mxu0 %vm433_vm2, %v700_v61  ;;  %v2353_v39 = vld [vmem:[%s3794_s3 + $0x68] sm:$0xff] }
  0xae   : > { %2690 = vmatmul.mubr.msk.f32.gmra.mxu1 %vm433_vm2, %v866_v0  ;;  %2701 = vmatprep.subr.mxu0 %v2327_v52 }
  0xaf   : > { %2692 = vmatprep.mubr.msk.f32.mxu1 %vm433_vm2, %v869_v4  ;;  %2702 = vmatpush3.msra.mxu0 %v2327_v52 }
  0xb0   : > { %2703 = vmatprep.subr.mxu0 %v2326_v1  ;;  %2662 = vmatmul.mubr.msk.f32.gmra.mxu0 %vm433_vm2, %v703_v6 }
  0xb1   : > { %2704 = vmatpush3.msra.mxu0 %v2326_v1  ;;  %2664 = vmatprep.mubr.msk.f32.mxu0 %vm433_vm2, %v706_v15 }
  0xb2   : > { %2693 = vmatmul.mubr.msk.f32.gmra.mxu1 %vm433_vm2, %v872_v18  ;;  %2705 = vmatprep.subr.mxu0 %v2325_v8 }
  0xb3   : > { %2706 = vmatpush3.msra.mxu0 %v2325_v8  ;;  %2724 = vmatpush3.msra.mxu1 %v2355_v30 }
  0xb4   : > { %2707 = vmatprep.subr.mxu0 %v2324_v19  ;;  %2665 = vmatmul.mubr.msk.f32.gmra.mxu0 %vm433_vm2, %v709_v40 }
  0xb5   : > { %2708 = vmatpush3.msra.mxu0 %v2324_v19  ;;  %2711 = vmatprep.mubr.msk.f32.mxu0 %vm433_vm2, %v1014_v22 }
  0xb6   : > { %2709 = vmatprep.subr.mxu0 %v2323_v41  ;;  %2725 = vmatprep.subr.mxu1 %v2354_v36 }
  0xb7   : > { %2710 = vmatpush3.msra.mxu0 %v2323_v41  ;;  %2726 = vmatpush3.msra.mxu1 %v2354_v36 }
  0xb8   : > { %2712 = vmatmul.mubr.msk.f32.vlgmr.msra.gmra.mxu0 %vm433_vm2, %v1017_v53  ;;  %2751 = vmatprep.subr.mxu0 %v1355_v29 }
  0xb9   : > { %2714 = vmatprep.mubr.msk.f32.mxu0 %vm433_vm2, %v1020_v25  ;;  %2752 = vmatpush3.msra.mxu0 %v1355_v29 }
  0xba   : > { %2753 = vmatprep.subr.mxu0 %v1354_v33  ;;  %2727 = vmatprep.subr.mxu1 %v2353_v39 }
  0xbb   : > { %2754 = vmatpush3.msra.mxu0 %v1354_v33  ;;  %2728 = vmatpush3.msra.mxu1 %v2353_v39 }
  0xbc   : > { %2715 = vmatmul.mubr.msk.f32.gmra.mxu0 %vm433_vm2, %v1023_v49  ;;  %2755 = vmatprep.subr.mxu0 %v1353_v38 }
  0xbd   : > { %2717 = vmatprep.mubr.msk.f32.mxu0 %vm433_vm2, %v1026_v58  ;;  %2756 = vmatpush3.msra.mxu0 %v1353_v38  ;;  %v2339_v58 = vld [vmem:[%s3795_s4] ss:$0 sm:$0xff] }
  0xbe   : > { %2757 = vmatprep.subr.mxu0 %v1352_v44  ;;  %2729 = vmatprep.subr.mxu1 %v2352_v45 }
  0xbf   : > { %2758 = vmatpush3.msra.mxu0 %v1352_v44  ;;  %2730 = vmatpush3.msra.mxu1 %v2352_v45 }
  0xc0   : > { %2718 = vmatmul.mubr.msk.f32.gmra.mxu0 %vm433_vm2, %v1029_v10  ;;  %2759 = vmatprep.subr.mxu0 %v1351_v46 }
  0xc1   : > { %2720 = vmatprep.mubr.msk.f32.mxu0 %vm433_vm2, %v1032_v12  ;;  %2760 = vmatpush3.msra.mxu0 %v1351_v46 }
  0xc4   : > { %2721 = vmatmul.mubr.msk.f32.gmra.mxu0 %vm433_vm2, %v1035_v14 }
 0x14e   : > { %v2629_v47 = vpop.f32.mrf.mxu1 }
 0x150   : > { %v637_v50 = vpop.f32.mrf.mxu1 }
 0x152   : > { %v2632_v51 = vpop.f32.mrf.mxu1 }
 0x153   : > { %v2601_v52 = vpop.f32.mrf.mxu0 }
 0x154   : > { %v647_v56 = vpop.f32.mrf.mxu1  ;;  %v643_v21 = vadd.f32 %v2629_v47, %v2601_v52 }
 0x155   : > { %v516_v60 = vpop.f32.mrf.mxu0 }
 0x156   : > { %v638_v41 = vadd.f32 %v637_v50, %v516_v60 }
 0x158   : > { %v2604_v61 = vpop.f32.mrf.mxu0  ;;  %v2635_v62 = vpop.f32.mrf.mxu1 }
 0x159   : > { %v653_v53 = vadd.f32 %v2632_v51, %v2604_v61 }
 0x15a   : > { %v526_v63 = vpop.f32.mrf.mxu0  ;;  %v657_v0 = vpop.f32.mrf.mxu1 }
 0x15b   : > { %v648_v25 = vadd.f32 %v647_v56, %v526_v63 }
 0x15d   : > { %v2607_v1 = vpop.f32.mrf.mxu0 }
 0x15e   : > { %v663_v28 = vadd.f32 %v2635_v62, %v2607_v1 }
 0x15f   : > { %v2638_v2 = vpop.f32.mrf.mxu1  ;;  %v536_v3 = vpop.f32.mrf.mxu0 }
 0x160   : > { %v658_v11 = vadd.f32 %v657_v0, %v536_v3 }
 0x161   : > { %v667_v4 = vpop.f32.mrf.mxu1 }
 0x163   : > { %v2610_v6 = vpop.f32.mrf.mxu0 }
 0x164   : > { %v673_v36 = vadd.f32 %v2638_v2, %v2610_v6 }
 0x165   : > { %v546_v8 = vpop.f32.mrf.mxu0 }
 0x166   : > { %v2685_v9 = vpop.f32.mrf.mxu1  ;;  %v668_v50 = vadd.f32 %v667_v4, %v546_v8 }
 0x168   : > { %v2657_v13 = vpop.f32.mrf.mxu0  ;;  %v955_v16 = vpop.f32.mrf.mxu1 }
 0x169   : > { %v832_v22 = vadd.f32 %v2657_v13, %v643_v21 }
 0x16a   : > { %v792_v15 = vpop.f32.mrf.mxu0  ;;  %v2688_v19 = vpop.f32.mrf.mxu1 }
 0x16b   : > { %v831_v54 = vadd.f32 %v792_v15, %v638_v41  ;;  %v995_v49 = vadd.f32 %v2685_v9, %v832_v22 }
 0x16c   : > { %v2660_v17 = vpop.f32.mrf.mxu0  ;;  %v965_v23 = vpop.f32.mrf.mxu1 }
 0x16d   : > { %v834_v27 = vadd.f32 %v2660_v17, %v653_v53  ;;  %v994_v10 = vadd.f32 %v955_v16, %v831_v54 }
 0x16e   : > { %v802_v18 = vpop.f32.mrf.mxu0  ;;  %v2691_v48 = vpop.f32.mrf.mxu1 }
 0x16f   : > { %v833_v59 = vadd.f32 %v802_v18, %v648_v25  ;;  %v997_v33 = vadd.f32 %v2688_v19, %v834_v27 }
 0x170   : > { %v2663_v20 = vpop.f32.mrf.mxu0  ;;  %v975_v14 = vpop.f32.mrf.mxu1 }
 0x171   : > { %v836_v37 = vadd.f32 %v2663_v20, %v663_v28  ;;  %v996_v47 = vadd.f32 %v965_v23, %v833_v59 }
 0x172   : > { %v812_v40 = vpop.f32.mrf.mxu0  ;;  %v2694_v60 = vpop.f32.mrf.mxu1 }
 0x173   : > { %v835_v38 = vadd.f32 %v812_v40, %v658_v11  ;;  %v999_v56 = vadd.f32 %v2691_v48, %v836_v37  ;;  %v1239_v11 = vpop.permute.xlu1 %1238 }
 0x174   : > { %v2666_v24 = vpop.f32.mrf.mxu0  ;;  %v985_v16 = vpop.f32.mrf.mxu1 }
 0x175   : > { %v838_v51 = vadd.f32 %v2666_v24, %v673_v36  ;;  %v998_v3 = vadd.f32 %v975_v14, %v835_v38  ;;  %v2350_v36 = vld [vmem:[%s3794_s3 + $0x50] sm:$0xff]  ;;  %v1349_v38 = vld [vmem:[%s3794_s3 + $0x8] sm:$0xff] }
 0x176   : > { %v822_v26 = vpop.f32.mrf.mxu0 }
 0x177   : > { %v837_v0 = vadd.f32 %v822_v26, %v668_v50  ;;  %v1001_v15 = vadd.f32 %v2694_v60, %v838_v51  ;;  %v1348_v50 = vld [vmem:[%s3794_s3] sm:$0xff]  ;;  %v3440_v60 = vld [vmem:[%s3794_s3 + $0xf8] sm:$0xff] }
 0x178   : > { %v2713_v31 = vpop.f32.mrf.mxu0  ;;  %v2348_v51 = vld [vmem:[%s3794_s3 + $0x40] sm:$0xff] }
 0x179   : > { %v1158_v32 = vadd.f32 %v2713_v31, %v995_v49  ;;  %v1000_v19 = vadd.f32 %v985_v16, %v837_v0 }
 0x17a   : > { %v1118_v12 = vpop.f32.mrf.mxu0 }
 0x17b   : > { %v1173_v29 = vadd.f32 %v2339_v58, %v1158_v32  ;;  %v1157_v30 = vadd.f32 %v1118_v12, %v994_v10 }
 0x17c   : > { %v2716_v39 = vpop.f32.mrf.mxu0 }
 0x17d   : > { %v2341_v44 = vmul.f32 -1.442695, %v1173_v29  ;;  %v1172_v45 = vadd.f32 %v2339_v58, %v1157_v30  ;;  %v1160_v46 = vadd.f32 %v2716_v39, %v997_v33  ;;  %v2351_v29 = vld [vmem:[%s3794_s3 + $0x58] sm:$0xff]  ;;  %v1350_v30 = vld [vmem:[%s3794_s3 + $0x10] sm:$0xff] }
 0x17e   : > { %v1128_v52 = vpop.f32.mrf.mxu0  ;;  %2731 = vmatprep.subr.mxu1 %v2351_v29  ;;  %2761 = vmatprep.subr.mxu0 %v1350_v30 }
 0x17f   : > { %2873 = vpow2.f32 %v2341_v44  ;;  %v2340_v61 = vmul.f32 -1.442695, %v1172_v45  ;;  %v1175_v62 = vadd.f32 %v2339_v58, %v1160_v46  ;;  %v1159_v63 = vadd.f32 %v1128_v52, %v996_v47  ;;  %2732 = vmatpush3.msra.mxu1 %v2351_v29  ;;  %2762 = vmatpush3.msra.mxu0 %v1350_v30  ;;  %v1243_v45 = vpop.permute.xlu1 %1242  ;;  %v2349_v47 = vld [vmem:[%s3794_s3 + $0x48] sm:$0xff] }
 0x180   : > { %v2719_v1 = vpop.f32.mrf.mxu0  ;;  %2733 = vmatprep.subr.mxu1 %v2350_v36  ;;  %2763 = vmatprep.subr.mxu0 %v1349_v38 }
 0x181   : > { %2875 = vpow2.f32 %v2340_v61  ;;  %v2343_v2 = vmul.f32 -1.442695, %v1175_v62  ;;  %v1174_v6 = vadd.f32 %v2339_v58, %v1159_v63  ;;  %v1162_v9 = vadd.f32 %v2719_v1, %v999_v56  ;;  %2734 = vmatpush3.msra.mxu1 %v2350_v36  ;;  %2764 = vmatpush3.msra.mxu0 %v1349_v38  ;;  %v3449_v63 = vld [vmem:[%s3794_s3 + $0xb8] sm:$0xff] }
 0x182   : > { %v1138_v13 = vpop.f32.mrf.mxu0  ;;  %2735 = vmatprep.subr.mxu1 %v2349_v47  ;;  %2765 = vmatprep.subr.mxu0 %v1348_v50 }
 0x183   : > { %2877 = vpow2.f32 %v2343_v2  ;;  %v2342_v4 = vmul.f32 -1.442695, %v1174_v6  ;;  %v1177_v8 = vadd.f32 %v2339_v58, %v1162_v9  ;;  %v1161_v17 = vadd.f32 %v1138_v13, %v998_v3  ;;  %2736 = vmatpush3.msra.mxu1 %v2349_v47  ;;  %2766 = vmatpush3.msra.mxu0 %v1348_v50  ;;  %v1247_v3 = vpop.permute.xlu1 %1246  ;;  %v2378_v47 = vld [vmem:[%s3794_s3 + $0xb0] sm:$0xff] }
 0x184   : > { %v2722_v18 = vpop.f32.mrf.mxu0  ;;  %2737 = vmatprep.subr.mxu1 %v2348_v51  ;;  %2807 = vmatprep.subr.mxu0 %v3440_v60 }
 0x185   : > { %2879 = vpow2.f32 %v2342_v4  ;;  %v2345_v20 = vmul.f32 -1.442695, %v1177_v8  ;;  %v1176_v21 = vadd.f32 %v2339_v58, %v1161_v17  ;;  %v1164_v40 = vadd.f32 %v2722_v18, %v1001_v15  ;;  %2738 = vmatpush3.msra.mxu1 %v2348_v51 }
 0x186   : > { %v1148_v41 = vpop.f32.mrf.mxu0  ;;  %2779 = vmatprep.subr.mxu1 %v3449_v63 }
 0x187   : > { %2881 = vpow2.f32 %v2345_v20  ;;  %v2344_v22 = vmul.f32 -1.442695, %v1176_v21  ;;  %v1179_v23 = vadd.f32 %v2339_v58, %v1164_v40  ;;  %v1163_v24 = vadd.f32 %v1148_v41, %v1000_v19  ;;  %v1251_v8 = vpop.permute.xlu1 %1250 }
 0x189   : > { %2883 = vpow2.f32 %v2344_v22  ;;  %v2347_v53 = vmul.f32 -1.442695, %v1179_v23  ;;  %v1178_v54 = vadd.f32 %v2339_v58, %v1163_v24  ;;  %v1237_v58 = vpop.permute.xlu0 %1236 }
 0x18b   : > { %2885 = vpow2.f32 %v2347_v53  ;;  %v2346_v26 = vmul.f32 -1.442695, %v1178_v54 }
 0x18c   : > { %v2874_v25 = vpop.eup %2873 }
 0x18d   : > { %v1205_v27 = vadd.f32 1.0, %v2874_v25  ;;  %2887 = vpow2.f32 %v2346_v26  ;;  %v1241_v56 = vpop.permute.xlu0 %1240 }
 0x18e   : > { %v2876_v48 = vpop.eup %2875 }
 0x18f   : > { %2889 = vrcp.f32 %v1205_v27  ;;  %v1204_v49 = vadd.f32 1.0, %v2876_v48 }
 0x190   : > { %v2878_v28 = vpop.eup %2877 }
 0x191   : > { %2891 = vrcp.f32 %v1204_v49  ;;  %v1207_v31 = vadd.f32 1.0, %v2878_v28  ;;  %v1245_v9 = vpop.permute.xlu0 %1244 }
 0x192   : > { %v2880_v59 = vpop.eup %2879 }
 0x193   : > { %2893 = vrcp.f32 %v1207_v31  ;;  %v1206_v32 = vadd.f32 1.0, %v2880_v59 }
 0x194   : > { %v2882_v10 = vpop.eup %2881 }
 0x195   : > { %2895 = vrcp.f32 %v1206_v32  ;;  %v1209_v37 = vadd.f32 1.0, %v2882_v10  ;;  %v1249_v19 = vpop.permute.xlu0 %1248 }
 0x196   : > { %v2884_v12 = vpop.eup %2883 }
 0x197   : > { %2897 = vrcp.f32 %v1209_v37  ;;  %v1208_v14 = vadd.f32 1.0, %v2884_v12 }
 0x198   : > { %v2886_v33 = vpop.eup %2885 }
 0x199   : > { %2899 = vrcp.f32 %v1208_v14  ;;  %v1211_v39 = vadd.f32 1.0, %v2886_v33 }
 0x19a   : > { %v2888_v44 = vpop.eup %2887 }
 0x19b   : > { %2901 = vrcp.f32 %v1211_v39  ;;  %v1210_v46 = vadd.f32 1.0, %v2888_v44  ;;  %v2393_v39 = vld [vmem:[%s3794_s3 + $0xe8] sm:$0xff] }
 0x19c   : > { %v3435_v52 = vpop.eup %2889 }
 0x19d   : > { %2903 = vrcp.f32 %v1210_v46  ;;  %v1261_v61 = vmul.f32 %v3435_v52, %v1239_v11 }
 0x19e   : > { %v3443_v62 = vpop.eup %2891 }
 0x19f   : > { %v1260_v0 = vmul.f32 %v3443_v62, %v1237_v58  ;;  %1278 = vrot.lane.b32.xlu1 %v1261_v61, %s2938_s20  ;;  %v2394_v58 = vld [vmem:[%s3794_s3 + $0xf0] sm:$0xff] }
 0x1a0   : > { %v3452_v1 = vpop.eup %2893 }
 0x1a1   : > { %v1263_v2 = vmul.f32 %v3452_v1, %v1243_v45  ;;  %1276 = vrot.lane.b32.xlu0 %v1260_v0, %s2938_s20 }
 0x1a2   : > { %v3456_v6 = vpop.eup %2895 }
 0x1a3   : > { %v1262_v13 = vmul.f32 %v3456_v6, %v1241_v56  ;;  %1282 = vrot.lane.b32.xlu1 %v1263_v2, %s2938_s20  ;;  %v2377_v2 = vld [vmem:[%s3794_s3 + $0xa8] sm:$0xff] }
 0x1a4   : > { %v3459_v15 = vpop.eup %2897 }
 0x1a5   : > { %v1265_v16 = vmul.f32 %v3459_v15, %v1247_v3  ;;  %1280 = vrot.lane.b32.xlu0 %v1262_v13, %s2938_s20 }
 0x1a6   : > { %v3462_v4 = vpop.eup %2899 }
 0x1a7   : > { %v1264_v17 = vmul.f32 %v3462_v4, %v1245_v9  ;;  %1286 = vrot.lane.b32.xlu1 %v1265_v16, %s2938_s20  ;;  %v2392_v9 = vld [vmem:[%s3794_s3 + $0xe0] sm:$0xff] }
 0x1a8   : > { %v3465_v18 = vpop.eup %2901 }
 0x1a9   : > { %v1267_v20 = vmul.f32 %v3465_v18, %v1251_v8  ;;  %1284 = vrot.lane.b32.xlu0 %v1264_v17, %s2938_s20 }
 0x1aa   : > { %v3468_v21 = vpop.eup %2903 }
 0x1ab   : > { %v1266_v40 = vmul.f32 %v3468_v21, %v1249_v19  ;;  %1290 = vrot.lane.b32.xlu1 %v1267_v20, %s2938_s20 }
 0x1ad   : > { %1288 = vrot.lane.b32.xlu0 %v1266_v40, %s2938_s20 }
 0x211   : > { %v1279_v41 = vpop.permute.xlu1 %1278 }
 0x212   : > { %v1301_v22 = vsel %vm325_vm0, %v1279_v41, %v3105_v42  ;;  %v2391_v41 = vld [vmem:[%s3794_s3 + $0xd8] sm:$0xff] }
 0x213   : > { %v1317_v23 = vrot.slane %v1301_v22, 6  ;;  %v1277_v24 = vpop.permute.xlu0 %1276 }
 0x214   : > { %v1300_v53 = vsel %vm325_vm0, %v1277_v24, %v3091_v34 }
 0x215   : > { %v3476_v54 = vsel %vm358_vm1, 0.0, %v1317_v23  ;;  %v3479_v26 = vsel %vm358_vm1, %v1317_v23, 0.0  ;;  %v1316_v25 = vrot.slane %v1300_v53, 6  ;;  %v1283_v27 = vpop.permute.xlu1 %1282 }
 0x216   : > { %v1384_v48 = vrot.slane %v3476_v54, 1  ;;  %v1385_v49 = vrot.slane %v3479_v26, 1  ;;  %v1303_v34 = vsel %vm325_vm0, %v1283_v27, %v3107_v43  ;;  %v2375_v27 = vld [vmem:[%s3794_s3 + $0x98] sm:$0xff] }
 0x217   : > { %v1281_v28 = vpop.permute.xlu0 %1280  ;;  %v3484_v42 = vsel %vm358_vm1, 0.0, %v1316_v25  ;;  %v3487_v31 = vsel %vm358_vm1, %v1316_v25, 0.0  ;;  %v1319_v32 = vrot.slane %v1303_v34, 6 }
 0x218   : > { %v1302_v59 = vsel %vm325_vm0, %v1281_v28, %v3093_v35  ;;  %2767 = vmatprep.mubr.msk.f32.mxu0 %vm433_vm2, %v3484_v42  ;;  %v1381_v37 = vrot.slane %v3484_v42, 1  ;;  %v1382_v12 = vrot.slane %v3487_v31, 1  ;;  %v1386_v46 = vsel %vm408_vm3, %v1384_v48, %v1385_v49  ;;  %v2390_v48 = vld [vmem:[%s3794_s3 + $0xd0] sm:$0xff] }
 0x219   : > { %v1318_v10 = vrot.slane %v1302_v59, 6  ;;  %v1287_v11 = vpop.permute.xlu1 %1286  ;;  %2768 = vmatmul.mubr.msk.f32.vlgmr.msra.gmra.mxu0 %vm433_vm2, %v3476_v54  ;;  %v3505_v43 = vsel %vm358_vm1, 0.0, %v1319_v32  ;;  %v3508_v14 = vsel %vm358_vm1, %v1319_v32, 0.0 }
 0x21a   : > { %v1305_v35 = vsel %vm325_vm0, %v1287_v11, %v3136_v57  ;;  %2808 = vmatpush3.msra.mxu0 %v3440_v60  ;;  %v1383_v38 = vsel %vm408_vm3, %v1381_v37, %v1382_v12  ;;  %v1390_v51 = vrot.slane %v3505_v43, 1  ;;  %v1391_v56 = vrot.slane %v3508_v14, 1  ;;  %v2389_v12 = vld [vmem:[%s3794_s3 + $0xc8] sm:$0xff] }
 0x21b   : > { %v3511_v29 = vsel %vm358_vm1, 0.0, %v1318_v10  ;;  %v3514_v30 = vsel %vm358_vm1, %v1318_v10, 0.0  ;;  %v1285_v33 = vpop.permute.xlu0 %1284  ;;  %v1321_v36 = vrot.slane %v1305_v35, 6  ;;  %2809 = vmatprep.subr.mxu0 %v2394_v58  ;;  %2739 = vmatprep.mubr.msk.f32.mxu1 %vm433_vm2, %v1383_v38  ;;  %v2374_v10 = vld [vmem:[%s3794_s3 + $0x90] sm:$0xff]  ;;  %v1818_v11 = vrot.slane %v3484_v42, 3 }
 0x21c   : > { %v1304_v57 = vsel %vm325_vm0, %v1285_v33, %v3131_v55  ;;  %2770 = vmatprep.mubr.msk.f32.mxu0 %vm433_vm2, %v3511_v29  ;;  %v1387_v44 = vrot.slane %v3511_v29, 1  ;;  %2810 = vmatpush3.msra.mxu0 %v2394_v58  ;;  %v1388_v50 = vrot.slane %v3514_v30, 1  ;;  %v1392_v40 = vsel %vm408_vm3, %v1390_v51, %v1391_v56 }
 0x21d   : > { %v1320_v45 = vrot.slane %v1304_v57, 6  ;;  %v1291_v55 = vpop.permute.xlu1 %1290  ;;  %2740 = vmatmul.mubr.msk.f32.vlgmr.msra.gmra.mxu1 %vm433_vm2, %v1386_v46  ;;  %2771 = vmatmul.mubr.msk.f32.gmra.mxu0 %vm433_vm2, %v3505_v43  ;;  %v3538_v60 = vsel %vm358_vm1, 0.0, %v1321_v36  ;;  %v3561_v19 = vsel %vm358_vm1, %v1321_v36, 0.0  ;;  %v1819_v37 = vrot.slane %v3487_v31, 3  ;;  %v2373_v36 = vld [vmem:[%s3794_s3 + $0x88] sm:$0xff]  ;;  %v2388_v57 = vld [vmem:[%s3794_s3 + $0xc0] sm:$0xff] }
 0x21e   : > { %2780 = vmatpush3.msra.mxu1 %v3449_v63  ;;  %2811 = vmatprep.subr.mxu0 %v2393_v39  ;;  %v1389_v3 = vsel %vm408_vm3, %v1387_v44, %v1388_v50  ;;  %v1307_v16 = vsel %vm325_vm0, %v1291_v55, %v3164_v7  ;;  %v2376_v7 = vld [vmem:[%s3794_s3 + $0xa0] sm:$0xff]  ;;  %v1396_v22 = vrot.slane %v3538_v60, 1  ;;  %v1397_v25 = vrot.slane %v3561_v19, 1 }
 0x21f   : > { %v3541_v61 = vsel %vm358_vm1, 0.0, %v1320_v45  ;;  %v3544_v0 = vsel %vm358_vm1, %v1320_v45, 0.0  ;;  %v1289_v13 = vpop.permute.xlu0 %1288  ;;  %2781 = vmatprep.subr.mxu1 %v2378_v47  ;;  %2812 = vmatpush3.msra.mxu0 %v2393_v39  ;;  %v1820_v38 = vsel %vm848_vm4, %v1818_v11, %v1819_v37  ;;  %v1656_v39 = vrot.slane %v3484_v42, 2  ;;  %v2372_v55 = vld [vmem:[%s3794_s3 + $0x80] sm:$0xff] }
 0x220   : > { %v1306_v63 = vsel %vm325_vm0, %v1289_v13, %v3159_v5  ;;  %v1393_v8 = vrot.slane %v3541_v61, 1  ;;  %v1394_v17 = vrot.slane %v3544_v0, 1  ;;  %2782 = vmatpush3.msra.mxu1 %v2378_v47  ;;  %2742 = vmatprep.mubr.msk.f32.mxu1 %vm433_vm2, %v1389_v3  ;;  %v1323_v5 = vrot.slane %v1307_v16, 6 }
 0x221   : > { %v1322_v20 = vrot.slane %v1306_v63, 6  ;;  %2783 = vmatprep.subr.mxu1 %v2377_v2  ;;  %2813 = vmatprep.subr.mxu0 %v2392_v9  ;;  %v1398_v32 = vsel %vm408_vm3, %v1396_v22, %v1397_v25  ;;  %v1657_v44 = vrot.slane %v3487_v31, 2  ;;  %v1821_v45 = vrot.slane %v3476_v54, 3 }
 0x222   : > { %2743 = vmatmul.mubr.msk.f32.gmra.mxu1 %vm433_vm2, %v1392_v40  ;;  %2773 = vmatprep.mubr.msk.f32.mxu0 %vm433_vm2, %v3541_v61  ;;  %v1395_v53 = vsel %vm408_vm3, %v1393_v8, %v1394_v17  ;;  %v3592_v49 = vsel %vm358_vm1, 0.0, %v1323_v5  ;;  %v3595_v28 = vsel %vm358_vm1, %v1323_v5, 0.0  ;;  %v1822_v46 = vrot.slane %v3479_v26, 3 }
 0x223   : > { %v3576_v23 = vsel %vm358_vm1, 0.0, %v1322_v20  ;;  %v3579_v24 = vsel %vm358_vm1, %v1322_v20, 0.0  ;;  %2784 = vmatpush3.msra.mxu1 %v2377_v2  ;;  %2814 = vmatpush3.msra.mxu0 %v2392_v9  ;;  %v1402_v58 = vrot.slane %v3592_v49, 1  ;;  %v1403_v35 = vrot.slane %v3595_v28, 1  ;;  %v2411_v9 = vld [vmem:[%s3794_s3 + $0x138] sm:$0xff] }
 0x224   : > { %2774 = vmatmul.mubr.msk.f32.gmra.mxu0 %vm433_vm2, %v3538_v60  ;;  %2785 = vmatprep.subr.mxu1 %v2376_v7  ;;  %v1399_v34 = vrot.slane %v3576_v23, 1  ;;  %v1400_v59 = vrot.slane %v3579_v24, 1  ;;  %v1824_v50 = vrot.slane %v3511_v29, 3  ;;  %v1825_v51 = vrot.slane %v3514_v30, 3 }
 0x225   : > { %2815 = vmatprep.subr.mxu0 %v2391_v41  ;;  %2786 = vmatpush3.msra.mxu1 %v2376_v7  ;;  %v1404_v47 = vsel %vm408_vm3, %v1402_v58, %v1403_v35  ;;  %v1659_v56 = vrot.slane %v3476_v54, 2  ;;  %v1660_v3 = vrot.slane %v3479_v26, 2  ;;  %v1658_v2 = vsel %vm685_vm5, %v1656_v39, %v1657_v44  ;;  %v2408_v35 = vld [vmem:[%s3794_s3 + $0x120] sm:$0xff] }
 0x226   : > { %2816 = vmatpush3.msra.mxu0 %v2391_v41  ;;  %2745 = vmatprep.mubr.msk.f32.mxu1 %vm433_vm2, %v1395_v53  ;;  %v1401_v33 = vsel %vm408_vm3, %v1399_v34, %v1400_v59  ;;  %v1662_v13 = vrot.slane %v3511_v29, 2  ;;  %v1663_v16 = vrot.slane %v3514_v30, 2  ;;  %v1823_v63 = vsel %vm848_vm4, %v1821_v45, %v1822_v46  ;;  %v2410_v41 = vld [vmem:[%s3794_s3 + $0x130] sm:$0xff]  ;;  %v2409_v59 = vld [vmem:[%s3794_s3 + $0x128] sm:$0xff]  ;;  %v2407_v45 = vld [vmem:[%s3794_s3 + $0x118] sm:$0xff] }
 0x227   : > { %2787 = vmatprep.subr.mxu1 %v2375_v27  ;;  %2817 = vmatprep.subr.mxu0 %v2390_v48  ;;  %v1827_v8 = vrot.slane %v3505_v43, 3  ;;  %v1828_v17 = vrot.slane %v3508_v14, 3  ;;  %v1826_v20 = vsel %vm848_vm4, %v1824_v50, %v1825_v51  ;;  %v1830_v40 = vrot.slane %v3541_v61, 3  ;;  %v2406_v51 = vld [vmem:[%s3794_s3 + $0x110] sm:$0xff] }
 0x228   : > { %2746 = vmatmul.mubr.msk.f32.gmra.mxu1 %vm433_vm2, %v1398_v32  ;;  %2776 = vmatprep.mubr.msk.f32.mxu0 %vm433_vm2, %v3576_v23  ;;  %v1831_v7 = vrot.slane %v3544_v0, 3  ;;  %v1661_v5 = vsel %vm685_vm5, %v1659_v56, %v1660_v3  ;;  %v1665_v22 = vrot.slane %v3505_v43, 2  ;;  %v1666_v53 = vrot.slane %v3508_v14, 2 }
 0x229   : > { %2788 = vmatpush3.msra.mxu1 %v2375_v27  ;;  %2818 = vmatpush3.msra.mxu0 %v2390_v48  ;;  %v1664_v25 = vsel %vm685_vm5, %v1662_v13, %v1663_v16  ;;  %v1668_v27 = vrot.slane %v3541_v61, 2  ;;  %v1669_v48 = vrot.slane %v3544_v0, 2  ;;  %v1829_v34 = vsel %vm848_vm4, %v1827_v8, %v1828_v17 }
 0x22a   : > { %2777 = vmatmul.mubr.msk.f32.gmra.mxu0 %vm433_vm2, %v3592_v49  ;;  %2789 = vmatprep.subr.mxu1 %v2374_v10  ;;  %v1833_v32 = vrot.slane %v3538_v60, 3  ;;  %v1832_v11 = vsel %vm848_vm4, %v1830_v40, %v1831_v7  ;;  %v1836_v37 = vrot.slane %v3576_v23, 3  ;;  %v1667_v58 = vsel %vm685_vm5, %v1665_v22, %v1666_v53 }
 0x22b   : > { %2819 = vmatprep.subr.mxu0 %v2389_v12  ;;  %2790 = vmatpush3.msra.mxu1 %v2374_v10  ;;  %v1834_v10 = vrot.slane %v3561_v19, 3  ;;  %v1675_v39 = vrot.slane %v3579_v24, 2  ;;  %v1839_v46 = vrot.slane %v3592_v49, 3  ;;  %v1677_v56 = vrot.slane %v3592_v49, 2 }
 0x22c   : > { %2820 = vmatpush3.msra.mxu0 %v2389_v12  ;;  %2823 = vmatprep.mubr.msk.f32.mxu0 %vm433_vm2, %v1820_v38  ;;  %v1837_v12 = vrot.slane %v3579_v24, 3  ;;  %v1670_v38 = vsel %vm685_vm5, %v1668_v27, %v1669_v48  ;;  %v1678_v3 = vrot.slane %v3595_v28, 2  ;;  %v1981_v13 = vrot.slane %v3487_v31, 4  ;;  %v2404_v31 = vld [vmem:[%s3794_s3 + $0x100] sm:$0xff] }
 0x22d   : > { %2748 = vmatprep.mubr.msk.f32.mxu1 %vm433_vm2, %v1401_v33  ;;  %2791 = vmatprep.subr.mxu1 %v2373_v36  ;;  %v1671_v33 = vrot.slane %v3538_v60, 2  ;;  %v1835_v44 = vsel %vm848_vm4, %v1833_v32, %v1834_v10  ;;  %v1983_v8 = vrot.slane %v3476_v54, 4  ;;  %v1984_v17 = vrot.slane %v3479_v26, 4 }
 0x22e   : > { %2821 = vmatprep.subr.mxu0 %v2388_v57  ;;  %2749 = vmatmul.mubr.msk.f32.gmra.mxu1 %vm433_vm2, %v1404_v47  ;;  %v1840_v47 = vrot.slane %v3595_v28, 3  ;;  %v1986_v40 = vrot.slane %v3511_v29, 4  ;;  %v1987_v7 = vrot.slane %v3514_v30, 4  ;;  %v1989_v26 = vrot.slane %v3505_v43, 4 }
 0x22f   : > { %2792 = vmatpush3.msra.mxu1 %v2373_v36  ;;  %2822 = vmatpush3.msra.mxu0 %v2388_v57  ;;  %v1672_v36 = vrot.slane %v3561_v19, 2  ;;  %v1674_v57 = vrot.slane %v3576_v23, 2  ;;  %v1985_v54 = vsel %vm1011_vm6, %v1983_v8, %v1984_v17  ;;  %v1992_v22 = vrot.slane %v3541_v61, 4 }
 0x230   : > { %2793 = vmatprep.subr.mxu1 %v2372_v55  ;;  %2795 = vmatprep.mubr.msk.f32.mxu1 %vm433_vm2, %v1658_v2  ;;  %v1841_v16 = vsel %vm848_vm4, %v1839_v46, %v1840_v47  ;;  %v1993_v29 = vrot.slane %v3544_v0, 4  ;;  %v1995_v53 = vrot.slane %v3538_v60, 4  ;;  %v1999_v27 = vrot.slane %v3579_v24, 4 }
 0x231   : > { %2824 = vmatmul.mubr.msk.f32.vlgmr.msra.gmra.mxu0 %vm433_vm2, %v1823_v63  ;;  %2794 = vmatpush3.msra.mxu1 %v2372_v55  ;;  %v1838_v55 = vsel %vm848_vm4, %v1836_v37, %v1837_v12  ;;  %v1673_v50 = vsel %vm685_vm5, %v1671_v33, %v1672_v36  ;;  %v1676_v2 = vsel %vm685_vm5, %v1674_v57, %v1675_v39  ;;  %v2405_v63 = vld [vmem:[%s3794_s3 + $0x108] sm:$0xff]  ;;  %v2001_v0 = vrot.slane %v3592_v49, 4 }
 0x232   : > { %2826 = vmatprep.mubr.msk.f32.mxu0 %vm433_vm2, %v1826_v20  ;;  %2835 = vmatprep.subr.mxu1 %v2411_v9  ;;  %v1994_v43 = vsel %vm1011_vm6, %v1992_v22, %v1993_v29  ;;  %v2002_v48 = vrot.slane %v3595_v28, 4 }
 0x233   : > { %2796 = vmatmul.mubr.msk.f32.vlgmr.msra.gmra.mxu1 %vm433_vm2, %v1661_v5  ;;  %v1990_v5 = vrot.slane %v3508_v14, 4  ;;  %v1998_v14 = vrot.slane %v3576_v23, 4 }
 0x234   : > { %2836 = vmatpush3.msra.mxu1 %v2411_v9  ;;  %2798 = vmatprep.mubr.msk.f32.mxu1 %vm433_vm2, %v1664_v25  ;;  %v1980_v9 = vrot.slane %v3484_v42, 4  ;;  %v1679_v42 = vsel %vm685_vm5, %v1677_v56, %v1678_v3  ;;  %v1996_v25 = vrot.slane %v3561_v19, 4  ;;  %v2003_v19 = vsel %vm1011_vm6, %v2001_v0, %v2002_v48 }
 0x235   : > { %2827 = vmatmul.mubr.msk.f32.gmra.mxu0 %vm433_vm2, %v1829_v34  ;;  %2837 = vmatprep.subr.mxu1 %v2410_v41  ;;  %v1991_v30 = vsel %vm1011_vm6, %v1989_v26, %v1990_v5  ;;  %v2000_v60 = vsel %vm1011_vm6, %v1998_v14, %v1999_v27 }
 0x236   : > { %2829 = vmatprep.mubr.msk.f32.mxu0 %vm433_vm2, %v1832_v11  ;;  %2838 = vmatpush3.msra.mxu1 %v2410_v41  ;;  %v1982_v20 = vsel %vm1011_vm6, %v1980_v9, %v1981_v13  ;;  %v1988_v41 = vsel %vm1011_vm6, %v1986_v40, %v1987_v7  ;;  %v1997_v61 = vsel %vm1011_vm6, %v1995_v53, %v1996_v25 }
 0x237   : > { %2839 = vmatprep.subr.mxu1 %v2409_v59  ;;  %2799 = vmatmul.mubr.msk.f32.gmra.mxu1 %vm433_vm2, %v1667_v58 }
 0x238   : > { %2840 = vmatpush3.msra.mxu1 %v2409_v59  ;;  %2801 = vmatprep.mubr.msk.f32.mxu1 %vm433_vm2, %v1670_v38 }
 0x239   : > { %2830 = vmatmul.mubr.msk.f32.gmra.mxu0 %vm433_vm2, %v1835_v44  ;;  %2841 = vmatprep.subr.mxu1 %v2408_v35 }
 0x23a   : > { %2832 = vmatprep.mubr.msk.f32.mxu0 %vm433_vm2, %v1838_v55  ;;  %2842 = vmatpush3.msra.mxu1 %v2408_v35 }
 0x23b   : > { %2843 = vmatprep.subr.mxu1 %v2407_v45  ;;  %2802 = vmatmul.mubr.msk.f32.gmra.mxu1 %vm433_vm2, %v1673_v50 }
 0x23c   : > { %2844 = vmatpush3.msra.mxu1 %v2407_v45  ;;  %2804 = vmatprep.mubr.msk.f32.mxu1 %vm433_vm2, %v1676_v2 }
 0x23d   : > { %2833 = vmatmul.mubr.msk.f32.gmra.mxu0 %vm433_vm2, %v1841_v16  ;;  %2845 = vmatprep.subr.mxu1 %v2406_v51 }
 0x23e   : > { %2846 = vmatpush3.msra.mxu1 %v2406_v51 }
 0x23f   : > { %2847 = vmatprep.subr.mxu1 %v2405_v63  ;;  %2805 = vmatmul.mubr.msk.f32.gmra.mxu1 %vm433_vm2, %v1679_v42 }
 0x240   : > { %2848 = vmatpush3.msra.mxu1 %v2405_v63  ;;  %2851 = vmatprep.mubr.msk.f32.mxu1 %vm433_vm2, %v1982_v20 }
 0x241   : > { %2849 = vmatprep.subr.mxu1 %v2404_v31 }
 0x242   : > { %2850 = vmatpush3.msra.mxu1 %v2404_v31 }
 0x243   : > { %2852 = vmatmul.mubr.msk.f32.vlgmr.msra.gmra.mxu1 %vm433_vm2, %v1985_v54  ;;  %v2420_v54 = vld [vmem:[%s3796_s5] ss:$0 sm:$0xff] }
 0x244   : > { %2854 = vmatprep.mubr.msk.f32.mxu1 %vm433_vm2, %v1988_v41 }
 0x247   : > { %2855 = vmatmul.mubr.msk.f32.gmra.mxu1 %vm433_vm2, %v1991_v30 }
 0x248   : > { %2857 = vmatprep.mubr.msk.f32.mxu1 %vm433_vm2, %v1994_v43 }
 0x24b   : > { %2858 = vmatmul.mubr.msk.f32.gmra.mxu1 %vm433_vm2, %v1997_v61 }
 0x24c   : > { %2860 = vmatprep.mubr.msk.f32.mxu1 %vm433_vm2, %v2000_v60 }
 0x24f   : > { %2861 = vmatmul.mubr.msk.f32.gmra.mxu1 %vm433_vm2, %v2003_v19 }
 0x2d9   : > { %v2769_v23 = vpop.f32.mrf.mxu0 }
 0x2db   : > { %v1608_v24 = vpop.f32.mrf.mxu0 }
 0x2dd   : > { %v2741_v34 = vpop.f32.mrf.mxu1  ;;  %v2772_v59 = vpop.f32.mrf.mxu0 }
 0x2de   : > { %v1614_v51 = vadd.f32 %v2769_v23, %v2741_v34 }
 0x2df   : > { %v1487_v32 = vpop.f32.mrf.mxu1  ;;  %v1618_v10 = vpop.f32.mrf.mxu0 }
 0x2e0   : > { %v1609_v3 = vadd.f32 %v1608_v24, %v1487_v32 }
 0x2e2   : > { %v2744_v11 = vpop.f32.mrf.mxu1 }
 0x2e3   : > { %v1624_v16 = vadd.f32 %v2772_v59, %v2744_v11 }
 0x2e4   : > { %v2775_v49 = vpop.f32.mrf.mxu0  ;;  %v1497_v37 = vpop.f32.mrf.mxu1 }
 0x2e5   : > { %v1619_v17 = vadd.f32 %v1618_v10, %v1497_v37 }
 0x2e6   : > { %v1628_v28 = vpop.f32.mrf.mxu0 }
 0x2e8   : > { %v2747_v12 = vpop.f32.mrf.mxu1 }
 0x2e9   : > { %v1634_v20 = vadd.f32 %v2775_v49, %v2747_v12 }
 0x2ea   : > { %v1507_v58 = vpop.f32.mrf.mxu1  ;;  %v2778_v35 = vpop.f32.mrf.mxu0 }
 0x2eb   : > { %v1629_v22 = vadd.f32 %v1628_v28, %v1507_v58 }
 0x2ec   : > { %v1638_v36 = vpop.f32.mrf.mxu0 }
 0x2ee   : > { %v2750_v33 = vpop.f32.mrf.mxu1 }
 0x2ef   : > { %v1644_v14 = vadd.f32 %v2778_v35, %v2750_v33 }
 0x2f0   : > { %v1517_v38 = vpop.f32.mrf.mxu1 }
 0x2f1   : > { %v2825_v57 = vpop.f32.mrf.mxu0  ;;  %v1639_v23 = vadd.f32 %v1638_v36, %v1517_v38 }
 0x2f3   : > { %v2797_v39 = vpop.f32.mrf.mxu1  ;;  %v1924_v45 = vpop.f32.mrf.mxu0 }
 0x2f4   : > { %v1802_v2 = vadd.f32 %v2797_v39, %v1614_v51 }
 0x2f5   : > { %v1762_v44 = vpop.f32.mrf.mxu1  ;;  %v2828_v55 = vpop.f32.mrf.mxu0 }
 0x2f6   : > { %v1801_v63 = vadd.f32 %v1762_v44, %v1609_v3  ;;  %v1964_v31 = vadd.f32 %v2825_v57, %v1802_v2  ;;  %v2921_v3 = vld [vmem:[%s3064_s23 + $0x8] sm:$0xff] }
 0x2f7   : > { %v2800_v46 = vpop.f32.mrf.mxu1  ;;  %v1934_v9 = vpop.f32.mrf.mxu0 }
 0x2f8   : > { %v1804_v42 = vadd.f32 %v2800_v46, %v1624_v16  ;;  %v1963_v41 = vadd.f32 %v1924_v45, %v1801_v63  ;;  %v2922_v16 = vld [vmem:[%s3064_s23] sm:$0xff] }
 0x2f9   : > { %v1772_v47 = vpop.f32.mrf.mxu1  ;;  %v2831_v40 = vpop.f32.mrf.mxu0 }
 0x2fa   : > { %v1803_v26 = vadd.f32 %v1772_v47, %v1619_v17  ;;  %v1966_v43 = vadd.f32 %v2828_v55, %v1804_v42 }
 0x2fb   : > { %v2803_v50 = vpop.f32.mrf.mxu1  ;;  %v1944_v27 = vpop.f32.mrf.mxu0 }
 0x2fc   : > { %v1806_v29 = vadd.f32 %v2803_v50, %v1634_v20  ;;  %v1965_v19 = vadd.f32 %v1934_v9, %v1803_v26 }
 0x2fd   : > { %v1782_v56 = vpop.f32.mrf.mxu1  ;;  %v2834_v11 = vpop.f32.mrf.mxu0 }
 0x2fe   : > { %v1805_v61 = vadd.f32 %v1782_v56, %v1629_v22  ;;  %v1968_v34 = vadd.f32 %v2831_v40, %v1806_v29  ;;  %v2925_v22 = vld [vmem:[%s3064_s23 + $0x28] sm:$0xff] }
 0x2ff   : > { %v2806_v13 = vpop.f32.mrf.mxu1  ;;  %v1954_v36 = vpop.f32.mrf.mxu0 }
 0x300   : > { %v1808_v59 = vadd.f32 %v2806_v13, %v1644_v14  ;;  %v1967_v37 = vadd.f32 %v1944_v27, %v1805_v61  ;;  %v2927_v61 = vld [vmem:[%s3064_s23 + $0x38] sm:$0xff] }
 0x301   : > { %v1792_v8 = vpop.f32.mrf.mxu1 }
 0x302   : > { %v1807_v28 = vadd.f32 %v1792_v8, %v1639_v23  ;;  %v1970_v39 = vadd.f32 %v2834_v11, %v1808_v59  ;;  %v2928_v23 = vld [vmem:[%s3064_s23 + $0x30] sm:$0xff] }
 0x303   : > { %v2853_v7 = vpop.f32.mrf.mxu1 }
 0x304   : > { %v2126_v5 = vadd.f32 %v2853_v7, %v1964_v31  ;;  %v1969_v46 = vadd.f32 %v1954_v36, %v1807_v28  ;;  %v2923_v31 = vld [vmem:[%s3064_s23 + $0x18] sm:$0xff] }
 0x305   : > { %v2086_v30 = vpop.f32.mrf.mxu1 }
 0x306   : > { %v2141_v53 = vadd.f32 %v2420_v54, %v2126_v5  ;;  %v2125_v25 = vadd.f32 %v2086_v30, %v1963_v41 }
 0x307   : > { %v2856_v0 = vpop.f32.mrf.mxu1 }
 0x308   : > { %2905 = vtanh.f32 %v2141_v53  ;;  %v2140_v48 = vadd.f32 %v2420_v54, %v2125_v25  ;;  %v2128_v60 = vadd.f32 %v2856_v0, %v1966_v43  ;;  %v2926_v25 = vld [vmem:[%s3064_s23 + $0x20] sm:$0xff] }
 0x309   : > { %v2096_v24 = vpop.f32.mrf.mxu1 }
 0x30a   : > { %2907 = vtanh.f32 %v2140_v48  ;;  %v2143_v32 = vadd.f32 %v2420_v54, %v2128_v60  ;;  %v2127_v10 = vadd.f32 %v2096_v24, %v1965_v19 }
 0x30b   : > { %v2859_v49 = vpop.f32.mrf.mxu1 }
 0x30c   : > { %2909 = vtanh.f32 %v2143_v32  ;;  %v2142_v12 = vadd.f32 %v2420_v54, %v2127_v10  ;;  %v2130_v58 = vadd.f32 %v2859_v49, %v1968_v34 }
 0x30d   : > { %v2106_v35 = vpop.f32.mrf.mxu1 }
 0x30e   : > { %2911 = vtanh.f32 %v2142_v12  ;;  %v2145_v33 = vadd.f32 %v2420_v54, %v2130_v58  ;;  %v2129_v57 = vadd.f32 %v2106_v35, %v1967_v37 }
 0x30f   : > { %v2862_v38 = vpop.f32.mrf.mxu1 }
 0x310   : > { %2913 = vtanh.f32 %v2145_v33  ;;  %v2144_v44 = vadd.f32 %v2420_v54, %v2129_v57  ;;  %v2132_v45 = vadd.f32 %v2862_v38, %v1970_v39 }
 0x311   : > { %v2116_v47 = vpop.f32.mrf.mxu1 }
 0x312   : > { %2915 = vtanh.f32 %v2144_v44  ;;  %v2147_v55 = vadd.f32 %v2420_v54, %v2132_v45  ;;  %v2131_v50 = vadd.f32 %v2116_v47, %v1969_v46 }
 0x314   : > { %2917 = vtanh.f32 %v2147_v55  ;;  %v2146_v51 = vadd.f32 %v2420_v54, %v2131_v50  ;;  %v2924_v54 = vld [vmem:[%s3064_s23 + $0x10] sm:$0xff] }
 0x315   : > { %v2906_v56 = vpop.eup %2905 }
 0x316   : > { %v2157_v2 = vsub.f32 %v2906_v56, %v2921_v3  ;;  %2919 = vtanh.f32 %v2146_v51 }
 0x317   : > { %v2908_v9 = vpop.eup %2907 }
 0x318   : > { %v2165_v13 = vmul.f32 %v3435_v52, %v2157_v2  ;;  %v2156_v63 = vsub.f32 %v2908_v9, %v2922_v16 }
 0x319   : > { %v2910_v8 = vpop.eup %2909 }
 0x31a   : > { %v2173_v17 = vadd.f32 %v2921_v3, %v2165_v13  ;;  %v2164_v42 = vmul.f32 %v3443_v62, %v2156_v63  ;;  %v2159_v20 = vsub.f32 %v2910_v8, %v2923_v31 }
 0x31b   : > { %v2912_v40 = vpop.eup %2911 }
 0x31c   : > { %2181 = vst.msk [vmem:[%s3757_s28 + $0x8] sm:$0xff] %vm325_vm0, %v2173_v17  ;;  %v2172_v52 = vadd.f32 %v2922_v16, %v2164_v42  ;;  %v2167_v7 = vmul.f32 %v3452_v1, %v2159_v20  ;;  %v2158_v26 = vsub.f32 %v2912_v40, %v2924_v54 }
 0x31d   : > { %v2914_v5 = vpop.eup %2913 }
 0x31e   : > { %2180 = vst.msk [vmem:[%s3757_s28] sm:$0xff] %vm325_vm0, %v2172_v52  ;;  %v2175_v41 = vadd.f32 %v2923_v31, %v2167_v7  ;;  %v2166_v62 = vmul.f32 %v3456_v6, %v2158_v26  ;;  %v2161_v29 = vsub.f32 %v2914_v5, %v2925_v22 }
 0x31f   : > { %v2916_v30 = vpop.eup %2915 }
 0x320   : > { %2183 = vst.msk [vmem:[%s3757_s28 + $0x18] sm:$0xff] %vm325_vm0, %v2175_v41  ;;  %v2174_v53 = vadd.f32 %v2924_v54, %v2166_v62  ;;  %v2169_v1 = vmul.f32 %v3459_v15, %v2161_v29  ;;  %v2160_v43 = vsub.f32 %v2916_v30, %v2926_v25 }
 0x321   : > { %v2918_v14 = vpop.eup %2917 }
 0x322   : > { %2182 = vst.msk [vmem:[%s3757_s28 + $0x10] sm:$0xff] %vm325_vm0, %v2174_v53  ;;  %v2177_v27 = vadd.f32 %v2925_v22, %v2169_v1  ;;  %v2168_v6 = vmul.f32 %v3462_v4, %v2160_v43  ;;  %v2163_v0 = vsub.f32 %v2918_v14, %v2927_v61 }
 0x323   : > { %v2920_v48 = vpop.eup %2919 }
 0x324   : > { %2185 = vst.msk [vmem:[%s3757_s28 + $0x28] sm:$0xff] %vm325_vm0, %v2177_v27  ;;  %v2176_v60 = vadd.f32 %v2926_v25, %v2168_v6  ;;  %v2171_v19 = vmul.f32 %v3465_v18, %v2163_v0  ;;  %v2162_v15 = vsub.f32 %v2920_v48, %v2928_v23 }
 0x326   : > { %2184 = vst.msk [vmem:[%s3757_s28 + $0x20] sm:$0xff] %vm325_vm0, %v2176_v60  ;;  %v2179_v24 = vadd.f32 %v2927_v61, %v2171_v19  ;;  %v2170_v34 = vmul.f32 %v3468_v21, %v2162_v15 }
 0x328   : > { %2187 = vst.msk [vmem:[%s3757_s28 + $0x38] sm:$0xff] %vm325_vm0, %v2179_v24  ;;  %v2178_v59 = vadd.f32 %v2928_v23, %v2170_v34 }
 0x32a   : > { %2186 = vst.msk [vmem:[%s3757_s28 + $0x30] sm:$0xff] %vm325_vm0, %v2178_v59 }
 0x32b PF: > { %s16_s21 = sadd.s32 1, %s2935_s21  }
 0x32c   : > { %p13_p4 = scmp.ge.s32.totalorder %s16_s21, 4  }
 0x32e   :  { %15 = sbr.rel (!%p13_p4) target bundleno = 1 (0x1), region = 85 }

</bundles_post_ra>
